<compile_context>
chip_gen: v7x
topology: tpu7x:2x2x1
jax: 0.10.0
libtpu: 0.0.40
codegen_flags: <defaults>
</compile_context>

<pallas_src>
import functools

import jax
import jax.numpy as jnp
from jax.experimental import pallas as pl
from jax.experimental.pallas import tpu as pltpu

IN_FEATURES = 23232          # 3 * 88 * 88, fixed by nn.Linear(23232, 100)
LANE = 128
IN_FEATURES_PADDED = 23296   # round_up(23232, 128)
HIDDEN = 100
DEFAULT_TK = 11648           # 2 grid steps; multiple of 128; divides 23296


def _mlp_kernel(x_ref, w1_ref, b1_ref, w2_ref, b2_ref, w3_ref, b3_ref,
                out_ref, h1_acc):
    k = pl.program_id(0)

    @pl.when(k == 0)
    def _():
        h1_acc[...] = jnp.zeros_like(h1_acc)

    # Partial product of the first Linear over this K-tile.
    h1_acc[...] += jnp.dot(x_ref[...], w1_ref[...],
                           preferred_element_type=jnp.float32)

    @pl.when(k == pl.num_programs(0) - 1)
    def _():
        h1 = h1_acc[...] + b1_ref[...]                      # Linear 1 bias
        h2 = jnp.dot(h1, w2_ref[...],
                     preferred_element_type=jnp.float32) + b2_ref[...]
        out = jnp.dot(h2, w3_ref[...],
                      preferred_element_type=jnp.float32) + b3_ref[...]
        out_ref[...] = out.astype(out_ref.dtype)


def pad_w1(w1):
    """Pad W1 (23232,100) -> (23296,100) ONCE, outside the jitted forward."""
    return jnp.pad(w1, ((0, IN_FEATURES_PADDED - IN_FEATURES), (0, 0)))


@functools.partial(jax.jit, static_argnames=("tk",))
def wr2_forward(x, w1_padded, b1, w2, b2, w3, b3, *, tk=DEFAULT_TK):
    """x: (B, C, H, W) f32 NCHW; w1_padded: (23296, 100). Returns (B, classes)."""
    B = x.shape[0]
    x_flat = x.reshape(B, -1)                    # matches torch x.view(B, -1)
    K = x_flat.shape[1]
    assert K == IN_FEATURES, f"expected {IN_FEATURES} features, got {K}"
    assert w1_padded.shape[0] == IN_FEATURES_PADDED, (
        "pass pad_w1(w1): W1 must be pre-padded outside the forward pass")
    assert IN_FEATURES_PADDED % tk == 0 and tk % LANE == 0
    num_classes = w3.shape[1]

    # Zero-pad only x (B x 64 extra floats) per call; exact for the matmul.
    x_p = jnp.pad(x_flat, ((0, 0), (0, IN_FEATURES_PADDED - K)))

    grid = (IN_FEATURES_PADDED // tk,)

    flops = 2 * B * (IN_FEATURES * HIDDEN + HIDDEN * HIDDEN
                     + HIDDEN * num_classes)
    bytes_accessed = 4 * (w1_padded.size + w2.size + w3.size
                          + b1.size + b2.size + b3.size
                          + x_p.size + B * num_classes)

    out = pl.pallas_call(
        _mlp_kernel,
        out_shape=jax.ShapeDtypeStruct((B, num_classes), jnp.float32),
        grid_spec=pltpu.PrefetchScalarGridSpec(
            num_scalar_prefetch=0,
            grid=grid,
            in_specs=[
                pl.BlockSpec((B, tk), lambda k: (0, k)),                # x
                pl.BlockSpec((tk, HIDDEN), lambda k: (k, 0)),           # W1
                pl.BlockSpec((1, HIDDEN), lambda k: (0, 0)),            # b1
                pl.BlockSpec((HIDDEN, HIDDEN), lambda k: (0, 0)),       # W2
                pl.BlockSpec((1, HIDDEN), lambda k: (0, 0)),            # b2
                pl.BlockSpec((HIDDEN, num_classes), lambda k: (0, 0)),  # W3
                pl.BlockSpec((1, num_classes), lambda k: (0, 0)),       # b3
            ],
            out_specs=pl.BlockSpec((B, num_classes), lambda k: (0, 0)),
            scratch_shapes=[pltpu.VMEM((B, HIDDEN), jnp.float32)],
        ),
        compiler_params=pltpu.CompilerParams(
            dimension_semantics=("arbitrary",),
            vmem_limit_bytes=32 * 1024 * 1024,   # fits v7x's 64 MiB physical
        ),
        cost_estimate=pl.CostEstimate(
            flops=flops, transcendentals=0, bytes_accessed=bytes_accessed),
    )(x_p, w1_padded, b1, w2, b2, w3, b3)
    return out


def init_params(key, num_classes=1000):
    """Deterministic synthetic parameters with the shapes from wR2.__init__."""
    k1, k2, k3, k4, k5, k6 = jax.random.split(key, 6)
    s1 = 1.0 / jnp.sqrt(jnp.float32(IN_FEATURES))
    s2 = 1.0 / jnp.sqrt(jnp.float32(HIDDEN))
    w1 = jax.random.uniform(k1, (IN_FEATURES, HIDDEN), jnp.float32, -s1, s1)
    b1 = jax.random.uniform(k2, (1, HIDDEN), jnp.float32, -s1, s1)
    w2 = jax.random.uniform(k3, (HIDDEN, HIDDEN), jnp.float32, -s2, s2)
    b2 = jax.random.uniform(k4, (1, HIDDEN), jnp.float32, -s2, s2)
    w3 = jax.random.uniform(k5, (HIDDEN, num_classes), jnp.float32, -s2, s2)
    b3 = jax.random.uniform(k6, (1, num_classes), jnp.float32, -s2, s2)
    return w1, b1, w2, b2, w3, b3


def reference_forward(x, w1, b1, w2, b2, w3, b3):
    xf = x.reshape(x.shape[0], -1)
    h1 = xf @ w1 + b1
    h2 = h1 @ w2 + b2
    return h2 @ w3 + b3


if __name__ == "__main__":
    key = jax.random.PRNGKey(0)
    kx, kp = jax.random.split(key)

    num_classes = 1000
    # Small batch; spatial dims fixed by the 23232-wide first Linear (3*88*88).
    x = jax.random.normal(kx, (2, 3, 88, 88), jnp.float32)
    w1, b1, w2, b2, w3, b3 = init_params(kp, num_classes=num_classes)

    # One-time weight preparation (outside the jitted per-call path).
    w1_padded = jax.block_until_ready(pad_w1(w1))

    out = wr2_forward(x, w1_padded, b1, w2, b2, w3, b3)
    out = jax.block_until_ready(out)

    ref = reference_forward(x, w1, b1, w2, b2, w3, b3)
    assert out.shape == (2, num_classes)
    assert jnp.allclose(out, ref, atol=1e-3, rtol=1e-3), "mismatch vs reference"

    print("KERNEL_OK")
</pallas_src>

<mosaic_0001>
module attributes {stable_mosaic.version = 11 : i64} {
  func.func @_mlp_kernel(%arg0: i32, %arg1: memref<2x11648xf32, #tpu.memory_space<vmem>>, %arg2: memref<11648x100xf32, #tpu.memory_space<vmem>>, %arg3: memref<1x100xf32, #tpu.memory_space<vmem>>, %arg4: memref<100x100xf32, #tpu.memory_space<vmem>>, %arg5: memref<1x100xf32, #tpu.memory_space<vmem>>, %arg6: memref<100x1000xf32, #tpu.memory_space<vmem>>, %arg7: memref<1x1000xf32, #tpu.memory_space<vmem>>, %arg8: memref<2x1000xf32, #tpu.memory_space<vmem>>, %arg9: memref<2x100xf32, #tpu.memory_space<vmem>>) attributes {dimension_semantics = [#tpu.dimension_semantics<arbitrary>], iteration_bounds = array<i64: 2>, scalar_prefetch = 0 : i64, scratch_operands = 1 : i64, tpu.core_type = #tpu.core_type<tc>, window_params = [{transform_indices = @transform_0, window_bounds = array<i64: 2, 11648>}, {transform_indices = @transform_1, window_bounds = array<i64: 11648, 100>}, {pipeline_mode = #tpu.pipeline_mode<synchronous>, transform_indices = @transform_2, window_bounds = array<i64: 1, 100>}, {pipeline_mode = #tpu.pipeline_mode<synchronous>, transform_indices = @transform_3, window_bounds = array<i64: 100, 100>}, {pipeline_mode = #tpu.pipeline_mode<synchronous>, transform_indices = @transform_4, window_bounds = array<i64: 1, 100>}, {pipeline_mode = #tpu.pipeline_mode<synchronous>, transform_indices = @transform_5, window_bounds = array<i64: 100, 1000>}, {pipeline_mode = #tpu.pipeline_mode<synchronous>, transform_indices = @transform_6, window_bounds = array<i64: 1, 1000>}, {pipeline_mode = #tpu.pipeline_mode<synchronous>, transform_indices = @transform_7, window_bounds = array<i64: 2, 1000>}]} {
    %c0_i32 = arith.constant 0 : i32
    %0 = arith.cmpi eq, %arg0, %c0_i32 : i32
    %1 = arith.extui %0 : i1 to i32
    %c0_i32_0 = arith.constant 0 : i32
    %2 = arith.cmpi ne, %1, %c0_i32_0 : i32
    scf.if %2 {
      %cst_9 = arith.constant 0.000000e+00 : f32
      %12 = vector.broadcast %cst_9 : f32 to vector<2x100xf32>
      %c0_10 = arith.constant 0 : index
      %c0_11 = arith.constant 0 : index
      %13 = vector.load %arg9[%c0_10, %c0_11] : memref<2x100xf32, #tpu.memory_space<vmem>>, vector<2x100xf32>
      tpu.vector_store %arg9[%c0_10, %c0_11], %12 {strides = array<i32>} : memref<2x100xf32, #tpu.memory_space<vmem>>, vector<2x100xf32>,
    } else {
    }
    %c0 = arith.constant 0 : index
    %c0_1 = arith.constant 0 : index
    %3 = vector.load %arg9[%c0, %c0_1] : memref<2x100xf32, #tpu.memory_space<vmem>>, vector<2x100xf32>
    %c0_2 = arith.constant 0 : index
    %c0_3 = arith.constant 0 : index
    %4 = vector.load %arg1[%c0_2, %c0_3] : memref<2x11648xf32, #tpu.memory_space<vmem>>, vector<2x11648xf32>
    %c0_4 = arith.constant 0 : index
    %c0_5 = arith.constant 0 : index
    %5 = vector.load %arg2[%c0_4, %c0_5] : memref<11648x100xf32, #tpu.memory_space<vmem>>, vector<11648x100xf32>
    %cst = arith.constant dense<0.000000e+00> : vector<2x100xf32>
    %6 = tpu.matmul %4, %5, %cst {dimension_numbers = #tpu.dot_dimension_numbers<[1], [0], [0], [1], [0, 0, 1, 1], [], []>} : vector<2x11648xf32>, vector<11648x100xf32>, vector<2x100xf32> -> vector<2x100xf32>
    %7 = arith.addf %3, %6 : vector<2x100xf32>
    %c0_6 = arith.constant 0 : index
    %c0_7 = arith.constant 0 : index
    %8 = vector.load %arg9[%c0_6, %c0_7] : memref<2x100xf32, #tpu.memory_space<vmem>>, vector<2x100xf32>
    tpu.vector_store %arg9[%c0_6, %c0_7], %7 {strides = array<i32>} : memref<2x100xf32, #tpu.memory_space<vmem>>, vector<2x100xf32>,
    %c1_i32 = arith.constant 1 : i32
    %9 = arith.cmpi eq, %arg0, %c1_i32 : i32
    %10 = arith.extui %9 : i1 to i32
    %c0_i32_8 = arith.constant 0 : i32
    %11 = arith.cmpi ne, %10, %c0_i32_8 : i32
    scf.if %11 {
      %c0_9 = arith.constant 0 : index
      %c0_10 = arith.constant 0 : index
      %12 = vector.load %arg9[%c0_9, %c0_10] : memref<2x100xf32, #tpu.memory_space<vmem>>, vector<2x100xf32>
      %c0_11 = arith.constant 0 : index
      %c0_12 = arith.constant 0 : index
      %13 = vector.load %arg3[%c0_11, %c0_12] : memref<1x100xf32, #tpu.memory_space<vmem>>, vector<1x100xf32>
      %14 = vector.broadcast %13 : vector<1x100xf32> to vector<2x100xf32>
      %15 = arith.addf %12, %14 : vector<2x100xf32>
      %c0_13 = arith.constant 0 : index
      %c0_14 = arith.constant 0 : index
      %16 = vector.load %arg4[%c0_13, %c0_14] : memref<100x100xf32, #tpu.memory_space<vmem>>, vector<100x100xf32>
      %cst_15 = arith.constant dense<0.000000e+00> : vector<2x100xf32>
      %17 = tpu.matmul %15, %16, %cst_15 {dimension_numbers = #tpu.dot_dimension_numbers<[1], [0], [0], [1], [0, 0, 1, 1], [], []>} : vector<2x100xf32>, vector<100x100xf32>, vector<2x100xf32> -> vector<2x100xf32>
      %c0_16 = arith.constant 0 : index
      %c0_17 = arith.constant 0 : index
      %18 = vector.load %arg5[%c0_16, %c0_17] : memref<1x100xf32, #tpu.memory_space<vmem>>, vector<1x100xf32>
      %19 = vector.broadcast %18 : vector<1x100xf32> to vector<2x100xf32>
      %20 = arith.addf %17, %19 : vector<2x100xf32>
      %c0_18 = arith.constant 0 : index
      %c0_19 = arith.constant 0 : index
      %21 = vector.load %arg6[%c0_18, %c0_19] : memref<100x1000xf32, #tpu.memory_space<vmem>>, vector<100x1000xf32>
      %cst_20 = arith.constant dense<0.000000e+00> : vector<2x1000xf32>
      %22 = tpu.matmul %20, %21, %cst_20 {dimension_numbers = #tpu.dot_dimension_numbers<[1], [0], [0], [1], [0, 0, 1, 1], [], []>} : vector<2x100xf32>, vector<100x1000xf32>, vector<2x1000xf32> -> vector<2x1000xf32>
      %c0_21 = arith.constant 0 : index
      %c0_22 = arith.constant 0 : index
      %23 = vector.load %arg7[%c0_21, %c0_22] : memref<1x1000xf32, #tpu.memory_space<vmem>>, vector<1x1000xf32>
      %24 = vector.broadcast %23 : vector<1x1000xf32> to vector<2x1000xf32>
      %25 = arith.addf %22, %24 : vector<2x1000xf32>
      %c0_23 = arith.constant 0 : index
      %c0_24 = arith.constant 0 : index
      %26 = vector.load %arg8[%c0_23, %c0_24] : memref<2x1000xf32, #tpu.memory_space<vmem>>, vector<2x1000xf32>
      tpu.vector_store %arg8[%c0_23, %c0_24], %25 {strides = array<i32>} : memref<2x1000xf32, #tpu.memory_space<vmem>>, vector<2x1000xf32>,
    } else {
    }
    return
  }
  func.func @transform_0(%arg0: i32) -> (i32, i32) {
    %c0_i32 = arith.constant 0 : i32
    %c0_i32_0 = arith.constant 0 : i32
    return %c0_i32, %arg0 : i32, i32
  }
  func.func @transform_1(%arg0: i32) -> (i32, i32) {
    %c0_i32 = arith.constant 0 : i32
    %c0_i32_0 = arith.constant 0 : i32
    return %arg0, %c0_i32 : i32, i32
  }
  func.func @transform_2(%arg0: i32) -> (i32, i32) {
    %c0_i32 = arith.constant 0 : i32
    %c0_i32_0 = arith.constant 0 : i32
    %c0_i32_1 = arith.constant 0 : i32
    return %c0_i32, %c0_i32_0 : i32, i32
  }
  func.func @transform_3(%arg0: i32) -> (i32, i32) {
    %c0_i32 = arith.constant 0 : i32
    %c0_i32_0 = arith.constant 0 : i32
    %c0_i32_1 = arith.constant 0 : i32
    return %c0_i32, %c0_i32_0 : i32, i32
  }
  func.func @transform_4(%arg0: i32) -> (i32, i32) {
    %c0_i32 = arith.constant 0 : i32
    %c0_i32_0 = arith.constant 0 : i32
    %c0_i32_1 = arith.constant 0 : i32
    return %c0_i32, %c0_i32_0 : i32, i32
  }
  func.func @transform_5(%arg0: i32) -> (i32, i32) {
    %c0_i32 = arith.constant 0 : i32
    %c0_i32_0 = arith.constant 0 : i32
    %c0_i32_1 = arith.constant 0 : i32
    return %c0_i32, %c0_i32_0 : i32, i32
  }
  func.func @transform_6(%arg0: i32) -> (i32, i32) {
    %c0_i32 = arith.constant 0 : i32
    %c0_i32_0 = arith.constant 0 : i32
    %c0_i32_1 = arith.constant 0 : i32
    return %c0_i32, %c0_i32_0 : i32, i32
  }
  func.func @transform_7(%arg0: i32) -> (i32, i32) {
    %c0_i32 = arith.constant 0 : i32
    %c0_i32_0 = arith.constant 0 : i32
    %c0_i32_1 = arith.constant 0 : i32
    return %c0_i32, %c0_i32_0 : i32, i32
  }
}

</mosaic_0001>

<bundles_post_ra>
// kernel: wr2_forward.1
= control target key start
LH: loop header
LB: loop body
LE: loop exit
PB: predicated region body
PF: predicated region fallthrough
CT: control target
= control target key end

     0   :  { %12 = vsyncpa [#allocation4], 0  ;;  %s9590_s24 = smov 0   ;;  %s11847_s0 = inlined_call_operand.vmem [shape: f32[2,23296], index: 0, kind: input, shape index: {}]   ;;  %s11848_s1 = inlined_call_operand.vmem [shape: f32[23296,100], index: 1, kind: input, shape index: {}]   ;;  %s11849_s2 = inlined_call_operand.vmem [shape: f32[1,100], index: 2, kind: input, shape index: {}]   ;;  %s11850_s3 = inlined_call_operand.vmem [shape: f32[100,100], index: 3, kind: input, shape index: {}]   ;;  %s11851_s4 = inlined_call_operand.vmem [shape: f32[1,100], index: 4, kind: input, shape index: {}]   ;;  %s11852_s5 = inlined_call_operand.vmem [shape: f32[100,1000], index: 5, kind: input, shape index: {}]   ;;  %s11853_s6 = inlined_call_operand.vmem [shape: f32[1,1000], index: 6, kind: input, shape index: {}]   ;;  %s11854_s7 = inlined_call_operand.hbm [shape: f32[2,1000], index: 7, kind: output, shape index: {}]  }
   0x1 LB: > { %s9596_s25 = sadd.s32 4294967295, %s9539_s24   ;;  %p6184_p0 = scmp.ge.s32.totalorder %s9539_s24, 1  ;;  %s9539_s24 = sphi %s9590_s24, %s18_s24  }
   0x2   : > { %p245_p1 = scmp.lt.s32.totalorder %s9539_s24, 3 }
   0x4   : > { %p246_p2 = pnand %p6184_p0, %p245_p1 }
   0x5   : > { %s277_s26 = smul.u32 (!%p246_p2), 91, %s9596_s25  ;;  %p6187_p5 = scmp.ne.s32.totalorder (!%p246_p2), %s9596_s25, 0 }
   0x6   : > { %249 = sbr.rel (%p246_p2) target bundleno = 1481 (0x5c9), region = 48 }
   0x7   : > { %s283_s27 = smul.u32 (!%p246_p2), 1456, %s9596_s25  ;;  %p278_p3 = scmp.lt.s32.totalorder (!%p246_p2), %s277_s26, 181 }
   0x9   : > { %p284_p4 = scmp.lt.s32.totalorder (!%p246_p2), %s283_s27, 2911 }
   0xd   : > { %s11856_s26 = smov (!%p278_p3, %s277_s26), 181  ;;  %s11858_s27 = smov (!%p284_p4, %s283_s27), 2911 }
   0xe   : > { %s6185_s28 = sshll.u32 %s11856_s26, 1  ;;  %s6186_s9 = sshll.u32 %s11858_s27, 3  ;;  %vm293_vm0 = vcmask (!%p6187_p5), 812032   ;;  %v9541_v0 = vmov (!%p6187_p5), 0.0  }
   0xf   : > { %s9605_s8 = scalar_lea.vmem %s11847_s0, %s6185_s28  ;;  %s9610_s12 = scalar_lea.vmem %s11848_s1, %s6186_s9  ;;  %294 = vst.msk [vmem:[#allocation2] sm:$0x3] (!%p6187_p5), %vm293_vm0, %v9541_v0 }
  0x10   : > { %292 = sbr.rel (%p6187_p5) target bundleno = 23 (0x17), region = 52 }
  0x17 PF: > { %v335_v1 = vld [vmem:[%s9610_s12 + $0x80] sm:$0xff]  ;;  %v336_v2 = vld [vmem:[%s9610_s12 + $0x88] sm:$0xff]  ;;  %v337_v12 = vld [vmem:[%s9610_s12 + $0x90] sm:$0xff]  ;;  %v9542_v48 = vmov 1983009808   ;;  %v1802_v50 = vlaneseq  ;;  %vm9544_vm1 = vmmov 0  }
  0x18   : > { %v367_v3 = vld [vmem:[%s9610_s12 + $0x180] sm:$0xff]  ;;  %v7879_v4 = vpack.c.bf16 %v336_v2, %v335_v1  ;;  %v368_v5 = vld [vmem:[%s9610_s12 + $0x188] sm:$0xff]  ;;  %v338_v14 = vld [vmem:[%s9610_s12 + $0x98] sm:$0xff]  ;;  %v1800_v49 = vunpack.c.l.s4 %v9542_v48  ;;  %vm5500_vm2 = vcmask 812032   ;;  %p6188_p6 = scmp.ne.s32.totalorder %s9596_s25, 1 }
  0x19   : > { %v319_v6 = vld [vmem:[%s9610_s12] sm:$0xff]  ;;  %v320_v7 = vld [vmem:[%s9610_s12 + $0x8] sm:$0xff]  ;;  %v7911_v8 = vpack.c.bf16 %v368_v5, %v367_v3  ;;  %v369_v15 = vld [vmem:[%s9610_s12 + $0x190] sm:$0xff]  ;;  %v7883_v17 = vpack.c.bf16 %v338_v14, %v337_v12  ;;  %v9655_v1 = vshrl.u32 %v1802_v50, 7  ;;  %vm9548_vm3 = vmmov (!%p6188_p6), 0  }
  0x1a   : > { %v7881_v9 = vpack.c.bf16 %v320_v7, %v319_v6  ;;  %v351_v10 = vld [vmem:[%s9610_s12 + $0x100] sm:$0xff]  ;;  %v352_v11 = vld [vmem:[%s9610_s12 + $0x108] sm:$0xff]  ;;  %7880 = vmatprep.subr.bf16.mxu0 %v7879_v4  ;;  %v370_v16 = vld [vmem:[%s9610_s12 + $0x198] sm:$0xff]  ;;  %v1801_v0 = vunpack.c.0.s8 %v1800_v49  ;;  %vm5539_vm4 = vcmask (!%p6188_p6), 1043456   ;;  %vm5535_vm5 = vcmask (!%p6188_p6), 818176  }
  0x1b   : > { %v7913_v13 = vpack.c.bf16 %v352_v11, %v351_v10  ;;  %7912 = vmatprep.subr.bf16.mxu1 %v7911_v8  ;;  %v7915_v18 = vpack.c.bf16 %v370_v16, %v369_v15  ;;  %v321_v19 = vld [vmem:[%s9610_s12 + $0x10] sm:$0xff]  ;;  %v322_v20 = vld [vmem:[%s9610_s12 + $0x18] sm:$0xff]  ;;  %v339_v24 = vld [vmem:[%s9610_s12 + $0xa0] sm:$0xff]  ;;  %vm6115_vm6 = vcmask (!%p6188_p6), 1041408   ;;  %vm6116_vm7 = vcmask (!%p6188_p6), 1043458  }
  0x1c   : > { %7882 = vmatpush3.bf16.msra.mxu0 %v7881_v9  ;;  %v353_v21 = vld [vmem:[%s9610_s12 + $0x110] sm:$0xff]  ;;  %v7885_v22 = vpack.c.bf16 %v322_v20, %v321_v19  ;;  %v354_v23 = vld [vmem:[%s9610_s12 + $0x118] sm:$0xff]  ;;  %v340_v25 = vld [vmem:[%s9610_s12 + $0xa8] sm:$0xff]  ;;  %v9666_v14 = vsub.s32 %v1801_v0, %v9655_v1  ;;  %vm6118_vm9 = vcmask (!%p6188_p6), 1045508   ;;  %vm6120_vm11 = vcmask (!%p6188_p6), 850950  }
  0x1d   : > { %7914 = vmatpush3.bf16.msra.mxu1 %v7913_v13  ;;  %7884 = vmatprep.subr.bf16.mxu0 %v7883_v17  ;;  %v7917_v26 = vpack.c.bf16 %v354_v23, %v353_v21  ;;  %v7887_v27 = vpack.c.bf16 %v340_v25, %v339_v24  ;;  %v371_v28 = vld [vmem:[%s9610_s12 + $0x1a0] sm:$0xff]  ;;  %v372_v29 = vld [vmem:[%s9610_s12 + $0x1a8] sm:$0xff]  ;;  %v341_v36 = vld [vmem:[%s9610_s12 + $0xb0] sm:$0xff] }
  0x1e   : > { %7916 = vmatprep.subr.bf16.mxu1 %v7915_v18  ;;  %v323_v30 = vld [vmem:[%s9610_s12 + $0x20] sm:$0xff]  ;;  %v7919_v31 = vpack.c.bf16 %v372_v29, %v371_v28  ;;  %v324_v32 = vld [vmem:[%s9610_s12 + $0x28] sm:$0xff]  ;;  %v342_v37 = vld [vmem:[%s9610_s12 + $0xb8] sm:$0xff] }
  0x1f   : > { %v355_v33 = vld [vmem:[%s9610_s12 + $0x120] sm:$0xff]  ;;  %v356_v34 = vld [vmem:[%s9610_s12 + $0x128] sm:$0xff]  ;;  %v7889_v35 = vpack.c.bf16 %v324_v32, %v323_v30  ;;  %v373_v38 = vld [vmem:[%s9610_s12 + $0x1b0] sm:$0xff]  ;;  %v7891_v40 = vpack.c.bf16 %v342_v37, %v341_v36 }
  0x20   : > { %7886 = vmatpush3.bf16.msra.mxu0 %v7885_v22  ;;  %v7921_v39 = vpack.c.bf16 %v356_v34, %v355_v33  ;;  %v374_v41 = vld [vmem:[%s9610_s12 + $0x1b8] sm:$0xff]  ;;  %v325_v42 = vld [vmem:[%s9610_s12 + $0x30] sm:$0xff]  ;;  %v343_v47 = vld [vmem:[%s9610_s12 + $0xc0] sm:$0xff] }
  0x21   : > { %7918 = vmatpush3.bf16.msra.mxu1 %v7917_v26  ;;  %7888 = vmatprep.subr.bf16.mxu0 %v7887_v27  ;;  %v326_v43 = vld [vmem:[%s9610_s12 + $0x38] sm:$0xff]  ;;  %v7923_v44 = vpack.c.bf16 %v374_v41, %v373_v38  ;;  %v357_v45 = vld [vmem:[%s9610_s12 + $0x130] sm:$0xff]  ;;  %v344_v51 = vld [vmem:[%s9610_s12 + $0xc8] sm:$0xff] }
  0x22   : > { %7920 = vmatprep.subr.bf16.mxu1 %v7919_v31  ;;  %v358_v46 = vld [vmem:[%s9610_s12 + $0x138] sm:$0xff]  ;;  %v375_v52 = vld [vmem:[%s9610_s12 + $0x1c0] sm:$0xff]  ;;  %v376_v53 = vld [vmem:[%s9610_s12 + $0x1c8] sm:$0xff]  ;;  %v7893_v54 = vpack.c.bf16 %v326_v43, %v325_v42  ;;  %v7895_v56 = vpack.c.bf16 %v344_v51, %v343_v47 }
  0x23   : > { %v7925_v55 = vpack.c.bf16 %v358_v46, %v357_v45  ;;  %v327_v57 = vld [vmem:[%s9610_s12 + $0x40] sm:$0xff]  ;;  %v328_v58 = vld [vmem:[%s9610_s12 + $0x48] sm:$0xff]  ;;  %v7927_v60 = vpack.c.bf16 %v376_v53, %v375_v52  ;;  %v345_v62 = vld [vmem:[%s9610_s12 + $0xd0] sm:$0xff] }
  0x24   : > { %7890 = vmatpush3.bf16.msra.mxu0 %v7889_v35  ;;  %v359_v59 = vld [vmem:[%s9610_s12 + $0x140] sm:$0xff]  ;;  %v360_v61 = vld [vmem:[%s9610_s12 + $0x148] sm:$0xff]  ;;  %v346_v63 = vld [vmem:[%s9610_s12 + $0xd8] sm:$0xff]  ;;  %v7897_v4 = vpack.c.bf16 %v328_v58, %v327_v57 }
  0x25   : > { %7922 = vmatpush3.bf16.msra.mxu1 %v7921_v39  ;;  %7892 = vmatprep.subr.bf16.mxu0 %v7891_v40  ;;  %v377_v2 = vld [vmem:[%s9610_s12 + $0x1d0] sm:$0xff]  ;;  %v378_v3 = vld [vmem:[%s9610_s12 + $0x1d8] sm:$0xff]  ;;  %v7929_v5 = vpack.c.bf16 %v360_v61, %v359_v59  ;;  %v7899_v6 = vpack.c.bf16 %v346_v63, %v345_v62  ;;  %v347_v12 = vld [vmem:[%s9610_s12 + $0xe0] sm:$0xff] }
  0x26   : > { %7924 = vmatprep.subr.bf16.mxu1 %v7923_v44  ;;  %v329_v7 = vld [vmem:[%s9610_s12 + $0x50] sm:$0xff]  ;;  %v330_v8 = vld [vmem:[%s9610_s12 + $0x58] sm:$0xff]  ;;  %v7931_v10 = vpack.c.bf16 %v378_v3, %v377_v2  ;;  %v348_v13 = vld [vmem:[%s9610_s12 + $0xe8] sm:$0xff] }
  0x27   : > { %v361_v9 = vld [vmem:[%s9610_s12 + $0x150] sm:$0xff]  ;;  %v362_v11 = vld [vmem:[%s9610_s12 + $0x158] sm:$0xff]  ;;  %v379_v15 = vld [vmem:[%s9610_s12 + $0x1e0] sm:$0xff]  ;;  %v7901_v17 = vpack.c.bf16 %v330_v8, %v329_v7  ;;  %v7903_v20 = vpack.c.bf16 %v348_v13, %v347_v12 }
  0x28   : > { %7894 = vmatpush3.bf16.msra.mxu0 %v7893_v54  ;;  %v380_v16 = vld [vmem:[%s9610_s12 + $0x1e8] sm:$0xff]  ;;  %v331_v18 = vld [vmem:[%s9610_s12 + $0x60] sm:$0xff]  ;;  %v7933_v19 = vpack.c.bf16 %v362_v11, %v361_v9  ;;  %v349_v26 = vld [vmem:[%s9610_s12 + $0xf0] sm:$0xff] }
  0x29   : > { %7926 = vmatpush3.bf16.msra.mxu1 %v7925_v55  ;;  %7896 = vmatprep.subr.bf16.mxu0 %v7895_v56  ;;  %v332_v21 = vld [vmem:[%s9610_s12 + $0x68] sm:$0xff]  ;;  %v363_v22 = vld [vmem:[%s9610_s12 + $0x160] sm:$0xff]  ;;  %v7935_v24 = vpack.c.bf16 %v380_v16, %v379_v15  ;;  %v350_v27 = vld [vmem:[%s9610_s12 + $0xf8] sm:$0xff] }
  0x2a   : > { %7928 = vmatprep.subr.bf16.mxu1 %v7927_v60  ;;  %v296_v23 = vld [vmem:[%s9605_s8] sm:$0xff]  ;;  %v364_v25 = vld [vmem:[%s9610_s12 + $0x168] sm:$0xff]  ;;  %v381_v30 = vld [vmem:[%s9610_s12 + $0x1f0] sm:$0xff]  ;;  %v7905_v32 = vpack.c.bf16 %v332_v21, %v331_v18  ;;  %v7907_v36 = vpack.c.bf16 %v350_v27, %v349_v26 }
  0x2b   : > { %v1805_v28 = vrot.slane %v296_v23, %v9666_v14  ;;  %v1798_v29 = vcombine.high %v296_v23, %v296_v23  ;;  %v382_v31 = vld [vmem:[%s9610_s12 + $0x1f8] sm:$0xff]  ;;  %v7937_v35 = vpack.c.bf16 %v364_v25, %v363_v22  ;;  %v333_v37 = vld [vmem:[%s9610_s12 + $0x70] sm:$0xff]  ;;  %v399_v43 = vld [vmem:[%s9610_s12 + $0x280] sm:$0xff] }
  0x2c   : > { %7898 = vmatpush3.bf16.msra.mxu0 %v7897_v4  ;;  %v334_v38 = vld [vmem:[%s9610_s12 + $0x78] sm:$0xff]  ;;  %v365_v39 = vld [vmem:[%s9610_s12 + $0x170] sm:$0xff]  ;;  %v7939_v40 = vpack.c.bf16 %v382_v31, %v381_v30  ;;  %v400_v44 = vld [vmem:[%s9610_s12 + $0x288] sm:$0xff] }
  0x2d   : > { %7930 = vmatpush3.bf16.msra.mxu1 %v7929_v5  ;;  %7900 = vmatprep.subr.bf16.mxu0 %v7899_v6  ;;  %v1813_v33 = vcombine.high %v1805_v28, %v1805_v28  ;;  %v1812_v34 = vrot.slane %v1798_v29, %v9666_v14  ;;  %v366_v41 = vld [vmem:[%s9610_s12 + $0x178] sm:$0xff]  ;;  %v431_v45 = vld [vmem:[%s9610_s12 + $0x380] sm:$0xff]  ;;  %v432_v46 = vld [vmem:[%s9610_s12 + $0x388] sm:$0xff]  ;;  %v7909_v47 = vpack.c.bf16 %v334_v38, %v333_v37 }
  0x2e   : > { %7932 = vmatprep.subr.bf16.mxu1 %v7931_v10  ;;  %v7941_v48 = vpack.c.bf16 %v366_v41, %v365_v39  ;;  %v7943_v49 = vpack.c.bf16 %v400_v44, %v399_v43  ;;  %v383_v50 = vld [vmem:[%s9610_s12 + $0x200] sm:$0xff]  ;;  %v384_v51 = vld [vmem:[%s9610_s12 + $0x208] sm:$0xff]  ;;  %v7975_v53 = vpack.c.bf16 %v432_v46, %v431_v45  ;;  %v401_v55 = vld [vmem:[%s9610_s12 + $0x290] sm:$0xff] }
  0x2f   : > { %2343 = vmatprep.mubr.f32.mxu0 %v1813_v33  ;;  %v1814_v42 = vcombine.high %v1812_v34, %v1812_v34  ;;  %v415_v52 = vld [vmem:[%s9610_s12 + $0x300] sm:$0xff]  ;;  %v416_v54 = vld [vmem:[%s9610_s12 + $0x308] sm:$0xff]  ;;  %v402_v56 = vld [vmem:[%s9610_s12 + $0x298] sm:$0xff]  ;;  %v7945_v59 = vpack.c.bf16 %v384_v51, %v383_v50 }
  0x30   : > { %7902 = vmatpush3.bf16.msra.mxu0 %v7901_v17  ;;  %v433_v57 = vld [vmem:[%s9610_s12 + $0x390] sm:$0xff]  ;;  %v434_v58 = vld [vmem:[%s9610_s12 + $0x398] sm:$0xff]  ;;  %v7977_v60 = vpack.c.bf16 %v416_v54, %v415_v52  ;;  %v7947_v61 = vpack.c.bf16 %v402_v56, %v401_v55  ;;  %v403_v4 = vld [vmem:[%s9610_s12 + $0x2a0] sm:$0xff] }
  0x31   : > { %7934 = vmatpush3.bf16.msra.mxu1 %v7933_v19  ;;  %7904 = vmatprep.subr.bf16.mxu0 %v7903_v20  ;;  %v385_v62 = vld [vmem:[%s9610_s12 + $0x210] sm:$0xff]  ;;  %v386_v63 = vld [vmem:[%s9610_s12 + $0x218] sm:$0xff]  ;;  %v7979_v2 = vpack.c.bf16 %v434_v58, %v433_v57  ;;  %v404_v5 = vld [vmem:[%s9610_s12 + $0x2a8] sm:$0xff] }
  0x32   : > { %7936 = vmatprep.subr.bf16.mxu1 %v7935_v24  ;;  %2413 = vmatprep.mubr.f32.mxu1 %v1814_v42  ;;  %v417_v0 = vld [vmem:[%s9610_s12 + $0x310] sm:$0xff]  ;;  %v418_v3 = vld [vmem:[%s9610_s12 + $0x318] sm:$0xff]  ;;  %v435_v6 = vld [vmem:[%s9610_s12 + $0x3a0] sm:$0xff]  ;;  %v7949_v8 = vpack.c.bf16 %v386_v63, %v385_v62  ;;  %v7951_v10 = vpack.c.bf16 %v404_v5, %v403_v4 }
  0x33   : > { %v436_v7 = vld [vmem:[%s9610_s12 + $0x3a8] sm:$0xff]  ;;  %v7981_v9 = vpack.c.bf16 %v418_v3, %v417_v0  ;;  %v387_v11 = vld [vmem:[%s9610_s12 + $0x220] sm:$0xff]  ;;  %v405_v17 = vld [vmem:[%s9610_s12 + $0x2b0] sm:$0xff] }
  0x34   : > { %7906 = vmatpush3.bf16.msra.mxu0 %v7905_v32  ;;  %v388_v12 = vld [vmem:[%s9610_s12 + $0x228] sm:$0xff]  ;;  %v419_v13 = vld [vmem:[%s9610_s12 + $0x320] sm:$0xff]  ;;  %v7983_v15 = vpack.c.bf16 %v436_v7, %v435_v6  ;;  %v406_v18 = vld [vmem:[%s9610_s12 + $0x2b8] sm:$0xff] }
  0x35   : > { %7938 = vmatpush3.bf16.msra.mxu1 %v7937_v35  ;;  %7908 = vmatprep.subr.bf16.mxu0 %v7907_v36  ;;  %v420_v16 = vld [vmem:[%s9610_s12 + $0x328] sm:$0xff]  ;;  %v437_v19 = vld [vmem:[%s9610_s12 + $0x3b0] sm:$0xff]  ;;  %v438_v20 = vld [vmem:[%s9610_s12 + $0x3b8] sm:$0xff]  ;;  %v7953_v21 = vpack.c.bf16 %v388_v12, %v387_v11  ;;  %v7955_v24 = vpack.c.bf16 %v406_v18, %v405_v17 }
  0x36   : > { %7940 = vmatprep.subr.bf16.mxu1 %v7939_v40  ;;  %v389_v22 = vld [vmem:[%s9610_s12 + $0x230] sm:$0xff]  ;;  %v7985_v23 = vpack.c.bf16 %v420_v16, %v419_v13  ;;  %v390_v25 = vld [vmem:[%s9610_s12 + $0x238] sm:$0xff]  ;;  %v407_v29 = vld [vmem:[%s9610_s12 + $0x2c0] sm:$0xff] }
  0x37   : > { %v421_v26 = vld [vmem:[%s9610_s12 + $0x330] sm:$0xff]  ;;  %v422_v27 = vld [vmem:[%s9610_s12 + $0x338] sm:$0xff]  ;;  %v408_v30 = vld [vmem:[%s9610_s12 + $0x2c8] sm:$0xff]  ;;  %v7957_v36 = vpack.c.bf16 %v390_v25, %v389_v22 }
  0x38   : > { %7910 = vmatpush3.bf16.msra.mxu0 %v7909_v47  ;;  %v297_v31 = vld [vmem:[%s9605_s8 + $0x8] sm:$0xff]  ;;  %v439_v32 = vld [vmem:[%s9610_s12 + $0x3c0] sm:$0xff]  ;;  %v7989_v37 = vpack.c.bf16 %v422_v27, %v421_v26  ;;  %v7959_v38 = vpack.c.bf16 %v408_v30, %v407_v29  ;;  %v409_v46 = vld [vmem:[%s9610_s12 + $0x2d0] sm:$0xff] }
  0x39   : > { %7942 = vmatpush3.bf16.msra.mxu1 %v7941_v48  ;;  %7944 = vmatprep.subr.bf16.mxu0 %v7943_v49  ;;  %v440_v33 = vld [vmem:[%s9610_s12 + $0x3c8] sm:$0xff]  ;;  %v1815_v35 = vcombine.high %v297_v31, %v297_v31  ;;  %v391_v39 = vld [vmem:[%s9610_s12 + $0x240] sm:$0xff]  ;;  %v410_v47 = vld [vmem:[%s9610_s12 + $0x2d8] sm:$0xff] }
  0x3a   : > { %7976 = vmatprep.subr.bf16.mxu1 %v7975_v53  ;;  %v392_v40 = vld [vmem:[%s9610_s12 + $0x248] sm:$0xff]  ;;  %v423_v41 = vld [vmem:[%s9610_s12 + $0x340] sm:$0xff]  ;;  %v7991_v44 = vpack.c.bf16 %v440_v33, %v439_v32  ;;  %v441_v48 = vld [vmem:[%s9610_s12 + $0x3d0] sm:$0xff]  ;;  %v7963_v53 = vpack.c.bf16 %v410_v47, %v409_v46 }
  0x3b   : > { %2344 = vmatmul.mubr.f32.vlgmr.msra.gmra.mrb[0].mxu0 %v1805_v28  ;;  %v7987_v28 = vpack.c.bf16 %v438_v20, %v437_v19  ;;  %v9731_v43 = vrot.slane %v1815_v35, %v9666_v14  ;;  %v424_v45 = vld [vmem:[%s9610_s12 + $0x348] sm:$0xff]  ;;  %v442_v49 = vld [vmem:[%s9610_s12 + $0x3d8] sm:$0xff]  ;;  %v7961_v51 = vpack.c.bf16 %v392_v40, %v391_v39  ;;  %v393_v54 = vld [vmem:[%s9610_s12 + $0x250] sm:$0xff] }
  0x3c   : > { %2414 = vmatmul.mubr.f32.vlgmr.msra.gmra.mrb[0].mxu1 %v1812_v34  ;;  %7946 = vmatpush3.bf16.msra.mxu0 %v7945_v59  ;;  %v9723_v34 = vrot.slane %v297_v31, %v9666_v14  ;;  %v7993_v52 = vpack.c.bf16 %v424_v45, %v423_v41  ;;  %v394_v55 = vld [vmem:[%s9610_s12 + $0x258] sm:$0xff]  ;;  %v425_v56 = vld [vmem:[%s9610_s12 + $0x350] sm:$0xff]  ;;  %v7995_v57 = vpack.c.bf16 %v442_v49, %v441_v48  ;;  %v411_v59 = vld [vmem:[%s9610_s12 + $0x2e0] sm:$0xff] }
  0x3d   : > { %7978 = vmatpush3.bf16.msra.mxu1 %v7977_v60  ;;  %7948 = vmatprep.subr.bf16.mxu0 %v7947_v61  ;;  %v1831_v50 = vcombine.high %v9731_v43, %v9731_v43  ;;  %v426_v58 = vld [vmem:[%s9610_s12 + $0x358] sm:$0xff]  ;;  %v412_v60 = vld [vmem:[%s9610_s12 + $0x2e8] sm:$0xff]  ;;  %v443_v61 = vld [vmem:[%s9610_s12 + $0x3e0] sm:$0xff]  ;;  %v7965_v63 = vpack.c.bf16 %v394_v55, %v393_v54 }
  0x3e   : > { %7980 = vmatprep.subr.bf16.mxu1 %v7979_v2  ;;  %v1830_v42 = vcombine.high %v9723_v34, %v9723_v34  ;;  %v444_v62 = vld [vmem:[%s9610_s12 + $0x3e8] sm:$0xff]  ;;  %v7997_v0 = vpack.c.bf16 %v426_v58, %v425_v56  ;;  %v7967_v2 = vpack.c.bf16 %v412_v60, %v411_v59  ;;  %v395_v3 = vld [vmem:[%s9610_s12 + $0x260] sm:$0xff]  ;;  %v446_v11 = vld [vmem:[%s9610_s12 + $0x3f8] sm:$0xff] }
  0x3f   : > { %2553 = vmatprep.mubr.f32.mxu1 %v1831_v50  ;;  %v396_v4 = vld [vmem:[%s9610_s12 + $0x268] sm:$0xff]  ;;  %v427_v5 = vld [vmem:[%s9610_s12 + $0x360] sm:$0xff]  ;;  %v7999_v6 = vpack.c.bf16 %v444_v62, %v443_v61  ;;  %v397_v16 = vld [vmem:[%s9610_s12 + $0x270] sm:$0xff] }
  0x40   : > { %7950 = vmatpush3.bf16.msra.mxu0 %v7949_v8  ;;  %2483 = vmatprep.mubr.f32.mxu0 %v1830_v42  ;;  %v428_v7 = vld [vmem:[%s9610_s12 + $0x368] sm:$0xff]  ;;  %v413_v8 = vld [vmem:[%s9610_s12 + $0x2f0] sm:$0xff]  ;;  %v7969_v12 = vpack.c.bf16 %v396_v4, %v395_v3  ;;  %v398_v17 = vld [vmem:[%s9610_s12 + $0x278] sm:$0xff] }
  0x41   : > { %7982 = vmatpush3.bf16.msra.mxu1 %v7981_v9  ;;  %7952 = vmatprep.subr.bf16.mxu0 %v7951_v10  ;;  %v414_v9 = vld [vmem:[%s9610_s12 + $0x2f8] sm:$0xff]  ;;  %v445_v10 = vld [vmem:[%s9610_s12 + $0x3f0] sm:$0xff]  ;;  %v8001_v13 = vpack.c.bf16 %v428_v7, %v427_v5  ;;  %v464_v22 = vld [vmem:[%s9610_s12 + $0x488] sm:$0xff]  ;;  %v7973_v25 = vpack.c.bf16 %v398_v17, %v397_v16 }
  0x42   : > { %7984 = vmatprep.subr.bf16.mxu1 %v7983_v15  ;;  %v7971_v15 = vpack.c.bf16 %v414_v9, %v413_v8  ;;  %v429_v18 = vld [vmem:[%s9610_s12 + $0x370] sm:$0xff]  ;;  %v8003_v19 = vpack.c.bf16 %v446_v11, %v445_v10  ;;  %v430_v20 = vld [vmem:[%s9610_s12 + $0x378] sm:$0xff]  ;;  %v447_v26 = vld [vmem:[%s9610_s12 + $0x400] sm:$0xff] }
  0x43   : > { %v8005_v27 = vpack.c.bf16 %v430_v20, %v429_v18  ;;  %v448_v29 = vld [vmem:[%s9610_s12 + $0x408] sm:$0xff]  ;;  %v479_v30 = vld [vmem:[%s9610_s12 + $0x500] sm:$0xff]  ;;  %v465_v33 = vld [vmem:[%s9610_s12 + $0x490] sm:$0xff] }
  0x44   : > { %7954 = vmatpush3.bf16.msra.mxu0 %v7953_v21  ;;  %v463_v21 = vld [vmem:[%s9610_s12 + $0x480] sm:$0xff]  ;;  %v480_v31 = vld [vmem:[%s9610_s12 + $0x508] sm:$0xff]  ;;  %v466_v35 = vld [vmem:[%s9610_s12 + $0x498] sm:$0xff] }
  0x45   : > { %7986 = vmatpush3.bf16.msra.mxu1 %v7985_v23  ;;  %7956 = vmatprep.subr.bf16.mxu0 %v7955_v24  ;;  %v495_v23 = vld [vmem:[%s9610_s12 + $0x580] sm:$0xff]  ;;  %v496_v24 = vld [vmem:[%s9610_s12 + $0x588] sm:$0xff]  ;;  %v8041_v39 = vpack.c.bf16 %v480_v31, %v479_v30  ;;  %v298_v40 = vld [vmem:[%s9605_s8 + $0x10] sm:$0xff]  ;;  %v8011_v41 = vpack.c.bf16 %v466_v35, %v465_v33 }
  0x46   : > { %7988 = vmatprep.subr.bf16.mxu1 %v7987_v28  ;;  %v8007_v28 = vpack.c.bf16 %v464_v22, %v463_v21  ;;  %v8039_v32 = vpack.c.bf16 %v496_v24, %v495_v23  ;;  %v449_v42 = vld [vmem:[%s9610_s12 + $0x410] sm:$0xff]  ;;  %v9777_v46 = vrot.slane %v298_v40, %v9666_v14  ;;  %v1832_v47 = vcombine.high %v298_v40, %v298_v40  ;;  %v482_v49 = vld [vmem:[%s9610_s12 + $0x518] sm:$0xff]  ;;  %v467_v50 = vld [vmem:[%s9610_s12 + $0x4a0] sm:$0xff] }
  0x47   : > { %v481_v45 = vld [vmem:[%s9610_s12 + $0x510] sm:$0xff]  ;;  %v451_v58 = vld [vmem:[%s9610_s12 + $0x420] sm:$0xff]  ;;  %v452_v59 = vld [vmem:[%s9610_s12 + $0x428] sm:$0xff] }
  0x48   : > { %7958 = vmatpush3.bf16.msra.mxu0 %v7957_v36  ;;  %v497_v36 = vld [vmem:[%s9610_s12 + $0x590] sm:$0xff]  ;;  %v1847_v54 = vcombine.high %v9777_v46, %v9777_v46  ;;  %v9788_v55 = vrot.slane %v1832_v47, %v9666_v14  ;;  %v483_v60 = vld [vmem:[%s9610_s12 + $0x520] sm:$0xff]  ;;  %v502_v3 = vld [vmem:[%s9610_s12 + $0x5b8] sm:$0xff]  ;;  %v8017_v4 = vpack.c.bf16 %v452_v59, %v451_v58 }
  0x49   : > { %7990 = vmatpush3.bf16.msra.mxu1 %v7989_v37  ;;  %7960 = vmatprep.subr.bf16.mxu0 %v7959_v38  ;;  %v498_v37 = vld [vmem:[%s9610_s12 + $0x598] sm:$0xff]  ;;  %v8009_v38 = vpack.c.bf16 %v448_v29, %v447_v26  ;;  %v453_v7 = vld [vmem:[%s9610_s12 + $0x430] sm:$0xff]  ;;  %v504_v16 = vld [vmem:[%s9610_s12 + $0x5c8] sm:$0xff] }
  0x4a   : > { %7992 = vmatprep.subr.bf16.mxu1 %v7991_v44  ;;  %v450_v44 = vld [vmem:[%s9610_s12 + $0x418] sm:$0xff]  ;;  %v8043_v48 = vpack.c.bf16 %v498_v37, %v497_v36  ;;  %v1848_v61 = vcombine.high %v9788_v55, %v9788_v55  ;;  %v485_v9 = vld [vmem:[%s9610_s12 + $0x530] sm:$0xff]  ;;  %v455_v20 = vld [vmem:[%s9610_s12 + $0x440] sm:$0xff] }
  0x4b   : > { %v8013_v56 = vpack.c.bf16 %v450_v44, %v449_v42  ;;  %v454_v8 = vld [vmem:[%s9610_s12 + $0x438] sm:$0xff]  ;;  %v456_v21 = vld [vmem:[%s9610_s12 + $0x448] sm:$0xff]  ;;  %v487_v22 = vld [vmem:[%s9610_s12 + $0x540] sm:$0xff] }
  0x4c   : > { %7962 = vmatpush3.bf16.msra.mxu0 %v7961_v51  ;;  %v468_v51 = vld [vmem:[%s9610_s12 + $0x4a8] sm:$0xff]  ;;  %v486_v11 = vld [vmem:[%s9610_s12 + $0x538] sm:$0xff]  ;;  %v8021_v17 = vpack.c.bf16 %v454_v8, %v453_v7  ;;  %v8025_v29 = vpack.c.bf16 %v456_v21, %v455_v20  ;;  %v489_v35 = vld [vmem:[%s9610_s12 + $0x550] sm:$0xff] }
  0x4d   : > { %7994 = vmatpush3.bf16.msra.mxu1 %v7993_v52  ;;  %7964 = vmatprep.subr.bf16.mxu0 %v7963_v53  ;;  %v499_v52 = vld [vmem:[%s9610_s12 + $0x5a0] sm:$0xff]  ;;  %v500_v53 = vld [vmem:[%s9610_s12 + $0x5a8] sm:$0xff]  ;;  %v8053_v18 = vpack.c.bf16 %v486_v11, %v485_v9  ;;  %v474_v26 = vld [vmem:[%s9610_s12 + $0x4d8] sm:$0xff] }
  0x4e   : > { %7996 = vmatprep.subr.bf16.mxu1 %v7995_v57  ;;  %v8015_v57 = vpack.c.bf16 %v468_v51, %v467_v50  ;;  %v8047_v62 = vpack.c.bf16 %v500_v53, %v499_v52  ;;  %v488_v24 = vld [vmem:[%s9610_s12 + $0x548] sm:$0xff]  ;;  %v458_v33 = vld [vmem:[%s9610_s12 + $0x458] sm:$0xff]  ;;  %v507_v40 = vld [vmem:[%s9610_s12 + $0x5e0] sm:$0xff] }
  0x4f   : > { %v8057_v30 = vpack.c.bf16 %v488_v24, %v487_v22  ;;  %v490_v37 = vld [vmem:[%s9610_s12 + $0x558] sm:$0xff]  ;;  %v459_v47 = vld [vmem:[%s9610_s12 + $0x460] sm:$0xff]  ;;  %v492_v51 = vld [vmem:[%s9610_s12 + $0x568] sm:$0xff] }
  0x50   : > { %7966 = vmatpush3.bf16.msra.mxu0 %v7965_v63  ;;  %v484_v63 = vld [vmem:[%s9610_s12 + $0x528] sm:$0xff]  ;;  %v8061_v44 = vpack.c.bf16 %v490_v37, %v489_v35  ;;  %v477_v52 = vld [vmem:[%s9610_s12 + $0x4f0] sm:$0xff]  ;;  %v478_v53 = vld [vmem:[%s9610_s12 + $0x4f8] sm:$0xff] }
  0x51   : > { %7998 = vmatpush3.bf16.msra.mxu1 %v7997_v0  ;;  %7968 = vmatprep.subr.bf16.mxu0 %v7967_v2  ;;  %v470_v0 = vld [vmem:[%s9610_s12 + $0x4b8] sm:$0xff]  ;;  %v501_v2 = vld [vmem:[%s9610_s12 + $0x5b0] sm:$0xff]  ;;  %v8049_v5 = vpack.c.bf16 %v484_v63, %v483_v60  ;;  %v8035_v59 = vpack.c.bf16 %v478_v53, %v477_v52  ;;  %v511_v9 = vld [vmem:[%s9610_s12 + $0x600] sm:$0xff] }
  0x52   : > { %8000 = vmatprep.subr.bf16.mxu1 %v7999_v6  ;;  %v8051_v10 = vpack.c.bf16 %v502_v3, %v501_v2  ;;  %v461_v60 = vld [vmem:[%s9610_s12 + $0x470] sm:$0xff]  ;;  %v528_v2 = vld [vmem:[%s9610_s12 + $0x688] sm:$0xff]  ;;  %v559_v3 = vld [vmem:[%s9610_s12 + $0x780] sm:$0xff] }
  0x53   : > { %v543_v11 = vld [vmem:[%s9610_s12 + $0x700] sm:$0xff]  ;;  %v513_v24 = vld [vmem:[%s9610_s12 + $0x610] sm:$0xff]  ;;  %v518_v52 = vld [vmem:[%s9610_s12 + $0x638] sm:$0xff] }
  0x54   : > { %7970 = vmatpush3.bf16.msra.mxu0 %v7969_v12  ;;  %v471_v12 = vld [vmem:[%s9610_s12 + $0x4c0] sm:$0xff]  ;;  %v549_v53 = vld [vmem:[%s9610_s12 + $0x730] sm:$0xff]  ;;  %vm6117_vm8 = vmor (!%p6188_p6), %vm6116_vm7, %vm6115_vm6 }
  0x55   : > { %8002 = vmatpush3.bf16.msra.mxu1 %v8001_v13  ;;  %7972 = vmatprep.subr.bf16.mxu0 %v7971_v15  ;;  %v472_v13 = vld [vmem:[%s9610_s12 + $0x4c8] sm:$0xff]  ;;  %v503_v15 = vld [vmem:[%s9610_s12 + $0x5c0] sm:$0xff]  ;;  %vm6119_vm10 = vmor (!%p6188_p6), %vm6118_vm9, %vm6117_vm8 }
  0x56   : > { %8004 = vmatprep.subr.bf16.mxu1 %v8003_v19  ;;  %v8023_v19 = vpack.c.bf16 %v472_v13, %v471_v12  ;;  %v8055_v23 = vpack.c.bf16 %v504_v16, %v503_v15  ;;  %v544_v13 = vld [vmem:[%s9610_s12 + $0x708] sm:$0xff]  ;;  %v529_v15 = vld [vmem:[%s9610_s12 + $0x690] sm:$0xff]  ;;  %v530_v16 = vld [vmem:[%s9610_s12 + $0x698] sm:$0xff] }
  0x57   : > { %v8105_v22 = vpack.c.bf16 %v544_v13, %v543_v11  ;;  %v521_v11 = vld [vmem:[%s9610_s12 + $0x650] sm:$0xff]  ;;  %vm6121_vm12 = vmor (!%p6188_p6), %vm6120_vm11, %vm6119_vm10 }
  0x58   : > { %7974 = vmatpush3.bf16.msra.mxu0 %v7973_v25  ;;  %v473_v25 = vld [vmem:[%s9610_s12 + $0x4d0] sm:$0xff] }
  0x59   : > { %8006 = vmatpush3.bf16.msra.mxu1 %v8005_v27  ;;  %8008 = vmatprep.subr.bf16.mxu0 %v8007_v28  ;;  %v505_v27 = vld [vmem:[%s9610_s12 + $0x5d0] sm:$0xff]  ;;  %v506_v28 = vld [vmem:[%s9610_s12 + $0x5d8] sm:$0xff]  ;;  %v8027_v31 = vpack.c.bf16 %v474_v26, %v473_v25 }
  0x5a   : > { %8040 = vmatprep.subr.bf16.mxu1 %v8039_v32  ;;  %v457_v32 = vld [vmem:[%s9610_s12 + $0x450] sm:$0xff]  ;;  %v8059_v36 = vpack.c.bf16 %v506_v28, %v505_v27  ;;  %v514_v25 = vld [vmem:[%s9610_s12 + $0x618] sm:$0xff] }
  0x5b   : > { %2484 = vmatmul.mubr.f32.vlgmr.msra.gmra.mrb[2].mxu0 %v9723_v34  ;;  %v8045_v34 = vpack.c.bf16 %v482_v49, %v481_v45  ;;  %v8029_v42 = vpack.c.bf16 %v458_v33, %v457_v32  ;;  %v491_v49 = vld [vmem:[%s9610_s12 + $0x560] sm:$0xff]  ;;  %v545_v26 = vld [vmem:[%s9610_s12 + $0x710] sm:$0xff]  ;;  %v546_v28 = vld [vmem:[%s9610_s12 + $0x718] sm:$0xff] }
  0x5c   : > { %8010 = vmatpush3.bf16.msra.mxu0 %v8009_v38  ;;  %2554 = vmatmul.mubr.f32.vlgmr.msra.gmra.mrb[2].mxu1 %v9731_v43  ;;  %v469_v43 = vld [vmem:[%s9610_s12 + $0x4b0] sm:$0xff]  ;;  %v475_v38 = vld [vmem:[%s9610_s12 + $0x4e0] sm:$0xff]  ;;  %v8065_v58 = vpack.c.bf16 %v492_v51, %v491_v49  ;;  %v564_v33 = vld [vmem:[%s9610_s12 + $0x7a8] sm:$0xff]  ;;  %v8109_v37 = vpack.c.bf16 %v546_v28, %v545_v26 }
  0x5d   : > { %8042 = vmatpush3.bf16.msra.mxu1 %v8041_v39  ;;  %8012 = vmatprep.subr.bf16.mxu0 %v8011_v41  ;;  %v8019_v6 = vpack.c.bf16 %v470_v0, %v469_v43  ;;  %v476_v39 = vld [vmem:[%s9610_s12 + $0x4e8] sm:$0xff]  ;;  %v494_v43 = vld [vmem:[%s9610_s12 + $0x578] sm:$0xff]  ;;  %v527_v0 = vld [vmem:[%s9610_s12 + $0x680] sm:$0xff] }
  0x5e   : > { %8044 = vmatprep.subr.bf16.mxu1 %v8043_v48  ;;  %2623 = vmatprep.mubr.f32.mxu0 %v1847_v54  ;;  %v508_v41 = vld [vmem:[%s9610_s12 + $0x5e8] sm:$0xff]  ;;  %v8031_v45 = vpack.c.bf16 %v476_v39, %v475_v38  ;;  %v509_v54 = vld [vmem:[%s9610_s12 + $0x5f0] sm:$0xff]  ;;  %v8071_v8 = vpack.c.bf16 %v528_v2, %v527_v0  ;;  %v563_v32 = vld [vmem:[%s9610_s12 + $0x7a0] sm:$0xff] }
  0x5f   : > { %2693 = vmatprep.mubr.f32.mxu1 %v1848_v61  ;;  %v460_v48 = vld [vmem:[%s9610_s12 + $0x468] sm:$0xff]  ;;  %v8063_v50 = vpack.c.bf16 %v508_v41, %v507_v40  ;;  %v462_v61 = vld [vmem:[%s9610_s12 + $0x478] sm:$0xff]  ;;  %v515_v39 = vld [vmem:[%s9610_s12 + $0x620] sm:$0xff]  ;;  %v8111_v41 = vpack.c.bf16 %v564_v33, %v563_v32 }
  0x60   : > { %8014 = vmatpush3.bf16.msra.mxu0 %v8013_v56  ;;  %v510_v56 = vld [vmem:[%s9610_s12 + $0x5f8] sm:$0xff]  ;;  %v547_v40 = vld [vmem:[%s9610_s12 + $0x720] sm:$0xff]  ;;  %v517_v51 = vld [vmem:[%s9610_s12 + $0x630] sm:$0xff] }
  0x61   : > { %8046 = vmatpush3.bf16.msra.mxu1 %v8045_v34  ;;  %8016 = vmatprep.subr.bf16.mxu0 %v8015_v57  ;;  %v8033_v34 = vpack.c.bf16 %v460_v48, %v459_v47  ;;  %v299_v57 = vld [vmem:[%s9605_s8 + $0x18] sm:$0xff]  ;;  %v8067_v63 = vpack.c.bf16 %v510_v56, %v509_v54  ;;  %v551_v0 = vld [vmem:[%s9610_s12 + $0x740] sm:$0xff]  ;;  %v553_v13 = vld [vmem:[%s9610_s12 + $0x750] sm:$0xff] }
  0x62   : > { %8048 = vmatprep.subr.bf16.mxu1 %v8047_v62  ;;  %v493_v62 = vld [vmem:[%s9610_s12 + $0x570] sm:$0xff]  ;;  %v566_v47 = vld [vmem:[%s9610_s12 + $0x7b8] sm:$0xff]  ;;  %v523_v26 = vld [vmem:[%s9610_s12 + $0x660] sm:$0xff] }
  0x63   : > { %v8069_v7 = vpack.c.bf16 %v494_v43, %v493_v62  ;;  %v550_v56 = vld [vmem:[%s9610_s12 + $0x738] sm:$0xff]  ;;  %v520_v43 = vld [vmem:[%s9610_s12 + $0x648] sm:$0xff]  ;;  %v555_v28 = vld [vmem:[%s9610_s12 + $0x760] sm:$0xff] }
  0x64   : > { %8018 = vmatpush3.bf16.msra.mxu0 %v8017_v4  ;;  %v560_v4 = vld [vmem:[%s9610_s12 + $0x788] sm:$0xff]  ;;  %v542_v32 = vld [vmem:[%s9610_s12 + $0x6f8] sm:$0xff]  ;;  %v573_v33 = vld [vmem:[%s9610_s12 + $0x7f0] sm:$0xff] }
  0x65   : > { %8050 = vmatpush3.bf16.msra.mxu1 %v8049_v5  ;;  %8020 = vmatprep.subr.bf16.mxu0 %v8019_v6  ;;  %v1849_v5 = vcombine.high %v299_v57, %v299_v57  ;;  %v8037_v6 = vpack.c.bf16 %v462_v61, %v461_v60  ;;  %v8103_v12 = vpack.c.bf16 %v560_v4, %v559_v3  ;;  %v552_v3 = vld [vmem:[%s9610_s12 + $0x748] sm:$0xff]  ;;  %v537_v4 = vld [vmem:[%s9610_s12 + $0x6d0] sm:$0xff] }
  0x66   : > { %8052 = vmatprep.subr.bf16.mxu1 %v8051_v10  ;;  %v512_v10 = vld [vmem:[%s9610_s12 + $0x608] sm:$0xff]  ;;  %v8085_v60 = vpack.c.bf16 %v518_v52, %v517_v51  ;;  %v8117_v61 = vpack.c.bf16 %v550_v56, %v549_v53  ;;  %v575_v53 = vld [vmem:[%s9610_s12 + $0x800] sm:$0xff] }
  0x67   : > { %v9854_v20 = vrot.slane %v1849_v5, %v9666_v14  ;;  %v8073_v21 = vpack.c.bf16 %v512_v10, %v511_v9  ;;  %v538_v5 = vld [vmem:[%s9610_s12 + $0x6d8] sm:$0xff]  ;;  %v8121_v9 = vpack.c.bf16 %v552_v3, %v551_v0  ;;  %v607_v56 = vld [vmem:[%s9610_s12 + $0x900] sm:$0xff]  ;;  %v577_v3 = vld [vmem:[%s9610_s12 + $0x810] sm:$0xff] }
  0x68   : > { %8022 = vmatpush3.bf16.msra.mxu0 %v8021_v17  ;;  %v9849_v17 = vrot.slane %v299_v57, %v9666_v14  ;;  %v536_v57 = vld [vmem:[%s9610_s12 + $0x6c8] sm:$0xff]  ;;  %v8091_v10 = vpack.c.bf16 %v538_v5, %v537_v4  ;;  %v578_v4 = vld [vmem:[%s9610_s12 + $0x818] sm:$0xff]  ;;  %v609_v5 = vld [vmem:[%s9610_s12 + $0x910] sm:$0xff] }
  0x69   : > { %8054 = vmatpush3.bf16.msra.mxu1 %v8053_v18  ;;  %8024 = vmatprep.subr.bf16.mxu0 %v8023_v19  ;;  %v561_v18 = vld [vmem:[%s9610_s12 + $0x790] sm:$0xff]  ;;  %v562_v19 = vld [vmem:[%s9610_s12 + $0x798] sm:$0xff]  ;;  %v1865_v35 = vcombine.high %v9854_v20, %v9854_v20 }
  0x6a   : > { %8056 = vmatprep.subr.bf16.mxu1 %v8055_v23  ;;  %v8075_v23 = vpack.c.bf16 %v530_v16, %v529_v15  ;;  %v8107_v27 = vpack.c.bf16 %v562_v19, %v561_v18  ;;  %v554_v16 = vld [vmem:[%s9610_s12 + $0x758] sm:$0xff]  ;;  %v539_v18 = vld [vmem:[%s9610_s12 + $0x6e0] sm:$0xff]  ;;  %v540_v19 = vld [vmem:[%s9610_s12 + $0x6e8] sm:$0xff] }
  0x6c   : > { %8026 = vmatpush3.bf16.msra.mxu0 %v8025_v29  ;;  %v531_v29 = vld [vmem:[%s9610_s12 + $0x6a0] sm:$0xff] }
  0x6d   : > { %8058 = vmatpush3.bf16.msra.mxu1 %v8057_v30  ;;  %8028 = vmatprep.subr.bf16.mxu0 %v8027_v31  ;;  %v532_v30 = vld [vmem:[%s9610_s12 + $0x6a8] sm:$0xff]  ;;  %v1864_v31 = vcombine.high %v9849_v17, %v9849_v17 }
  0x6e   : > { %8060 = vmatprep.subr.bf16.mxu1 %v8059_v36  ;;  %v8077_v36 = vpack.c.bf16 %v514_v25, %v513_v24  ;;  %v8079_v38 = vpack.c.bf16 %v532_v30, %v531_v29  ;;  %v8125_v24 = vpack.c.bf16 %v554_v16, %v553_v13  ;;  %v8095_v25 = vpack.c.bf16 %v540_v19, %v539_v18  ;;  %v556_v30 = vld [vmem:[%s9610_s12 + $0x768] sm:$0xff]  ;;  %v579_v19 = vld [vmem:[%s9610_s12 + $0x820] sm:$0xff] }
  0x70   : > { %8030 = vmatpush3.bf16.msra.mxu0 %v8029_v42  ;;  %v548_v42 = vld [vmem:[%s9610_s12 + $0x728] sm:$0xff] }
  0x71   : > { %8062 = vmatpush3.bf16.msra.mxu1 %v8061_v44  ;;  %8032 = vmatprep.subr.bf16.mxu0 %v8031_v45  ;;  %v533_v44 = vld [vmem:[%s9610_s12 + $0x6b0] sm:$0xff]  ;;  %v534_v45 = vld [vmem:[%s9610_s12 + $0x6b8] sm:$0xff]  ;;  %v8113_v49 = vpack.c.bf16 %v548_v42, %v547_v40 }
  0x72   : > { %8064 = vmatprep.subr.bf16.mxu1 %v8063_v50  ;;  %v8083_v50 = vpack.c.bf16 %v534_v45, %v533_v44  ;;  %v526_v40 = vld [vmem:[%s9610_s12 + $0x678] sm:$0xff]  ;;  %v591_v45 = vld [vmem:[%s9610_s12 + $0x880] sm:$0xff] }
  0x73   : > { %v558_v44 = vld [vmem:[%s9610_s12 + $0x778] sm:$0xff] }
  0x74   : > { %8034 = vmatpush3.bf16.msra.mxu0 %v8033_v34  ;;  %v535_v34 = vld [vmem:[%s9610_s12 + $0x6c0] sm:$0xff] }
  0x75   : > { %8066 = vmatpush3.bf16.msra.mxu1 %v8065_v58  ;;  %8036 = vmatprep.subr.bf16.mxu0 %v8035_v59  ;;  %v567_v58 = vld [vmem:[%s9610_s12 + $0x7c0] sm:$0xff]  ;;  %v568_v59 = vld [vmem:[%s9610_s12 + $0x7c8] sm:$0xff]  ;;  %v8087_v62 = vpack.c.bf16 %v536_v57, %v535_v34 }
  0x76   : > { %8068 = vmatprep.subr.bf16.mxu1 %v8067_v63  ;;  %v519_v63 = vld [vmem:[%s9610_s12 + $0x640] sm:$0xff]  ;;  %v8119_v2 = vpack.c.bf16 %v568_v59, %v567_v58  ;;  %v608_v57 = vld [vmem:[%s9610_s12 + $0x908] sm:$0xff]  ;;  %v593_v58 = vld [vmem:[%s9610_s12 + $0x890] sm:$0xff] }
  0x77   : > { %v594_v59 = vld [vmem:[%s9610_s12 + $0x898] sm:$0xff]  ;;  %v8169_v0 = vpack.c.bf16 %v608_v57, %v607_v56  ;;  %v585_v56 = vld [vmem:[%s9610_s12 + $0x850] sm:$0xff] }
  0x78   : > { %8038 = vmatpush3.bf16.msra.mxu0 %v8037_v6  ;;  %v569_v6 = vld [vmem:[%s9610_s12 + $0x7d0] sm:$0xff] }
  0x79   : > { %8070 = vmatpush3.bf16.msra.mxu1 %v8069_v7  ;;  %8072 = vmatprep.subr.bf16.mxu0 %v8071_v8  ;;  %v570_v7 = vld [vmem:[%s9610_s12 + $0x7d8] sm:$0xff]  ;;  %v8089_v8 = vpack.c.bf16 %v520_v43, %v519_v63  ;;  %v617_v57 = vld [vmem:[%s9610_s12 + $0x950] sm:$0xff] }
  0x7a   : > { %8104 = vmatprep.subr.bf16.mxu1 %v8103_v12  ;;  %v522_v12 = vld [vmem:[%s9610_s12 + $0x658] sm:$0xff]  ;;  %v8123_v15 = vpack.c.bf16 %v570_v7, %v569_v6 }
  0x7b   : > { %2624 = vmatmul.mubr.f32.vlgmr.msra.gmra.mrb[4].mxu0 %v9777_v46  ;;  %v516_v46 = vld [vmem:[%s9610_s12 + $0x628] sm:$0xff]  ;;  %v610_v7 = vld [vmem:[%s9610_s12 + $0x918] sm:$0xff] }
  0x7c   : > { %8074 = vmatpush3.bf16.msra.mxu0 %v8073_v21  ;;  %2694 = vmatmul.mubr.f32.vlgmr.msra.gmra.mrb[4].mxu1 %v9788_v55  ;;  %v565_v55 = vld [vmem:[%s9610_s12 + $0x7b0] sm:$0xff]  ;;  %v8081_v48 = vpack.c.bf16 %v516_v46, %v515_v39  ;;  %v571_v21 = vld [vmem:[%s9610_s12 + $0x7e0] sm:$0xff]  ;;  %v8173_v16 = vpack.c.bf16 %v610_v7, %v609_v5 }
  0x7d   : > { %8106 = vmatpush3.bf16.msra.mxu1 %v8105_v22  ;;  %8076 = vmatprep.subr.bf16.mxu0 %v8075_v23  ;;  %v8115_v54 = vpack.c.bf16 %v566_v47, %v565_v55  ;;  %v572_v22 = vld [vmem:[%s9610_s12 + $0x7e8] sm:$0xff]  ;;  %v8093_v23 = vpack.c.bf16 %v522_v12, %v521_v11  ;;  %v525_v46 = vld [vmem:[%s9610_s12 + $0x670] sm:$0xff]  ;;  %v623_v47 = vld [vmem:[%s9610_s12 + $0x980] sm:$0xff] }
  0x7e   : > { %8108 = vmatprep.subr.bf16.mxu1 %v8107_v27  ;;  %2763 = vmatprep.mubr.f32.mxu0 %v1864_v31  ;;  %v524_v27 = vld [vmem:[%s9610_s12 + $0x668] sm:$0xff]  ;;  %v8127_v29 = vpack.c.bf16 %v572_v22, %v571_v21  ;;  %v541_v31 = vld [vmem:[%s9610_s12 + $0x6f0] sm:$0xff]  ;;  %v627_v11 = vld [vmem:[%s9610_s12 + $0x9a0] sm:$0xff] }
  0x7f   : > { %2833 = vmatprep.mubr.f32.mxu1 %v1865_v35  ;;  %v574_v35 = vld [vmem:[%s9610_s12 + $0x7f8] sm:$0xff]  ;;  %v8099_v39 = vpack.c.bf16 %v542_v32, %v541_v31  ;;  %v592_v55 = vld [vmem:[%s9610_s12 + $0x888] sm:$0xff]  ;;  %v611_v21 = vld [vmem:[%s9610_s12 + $0x920] sm:$0xff] }
  0x80   : > { %8078 = vmatpush3.bf16.msra.mxu0 %v8077_v36  ;;  %v8097_v36 = vpack.c.bf16 %v524_v27, %v523_v26  ;;  %v8131_v42 = vpack.c.bf16 %v574_v35, %v573_v33  ;;  %v8135_v52 = vpack.c.bf16 %v592_v55, %v591_v45  ;;  %v628_v12 = vld [vmem:[%s9610_s12 + $0x9a8] sm:$0xff]  ;;  %v630_v26 = vld [vmem:[%s9610_s12 + $0x9b8] sm:$0xff]  ;;  %v613_v32 = vld [vmem:[%s9610_s12 + $0x930] sm:$0xff] }
  0x81   : > { %8110 = vmatpush3.bf16.msra.mxu1 %v8109_v37  ;;  %8080 = vmatprep.subr.bf16.mxu0 %v8079_v38  ;;  %v300_v37 = vld [vmem:[%s9605_s8 + $0x20] sm:$0xff]  ;;  %v8129_v38 = vpack.c.bf16 %v556_v30, %v555_v28  ;;  %v8175_v22 = vpack.c.bf16 %v628_v12, %v627_v11  ;;  %v581_v30 = vld [vmem:[%s9610_s12 + $0x830] sm:$0xff]  ;;  %v582_v31 = vld [vmem:[%s9610_s12 + $0x838] sm:$0xff] }
  0x82   : > { %8112 = vmatprep.subr.bf16.mxu1 %v8111_v41  ;;  %v557_v41 = vld [vmem:[%s9610_s12 + $0x770] sm:$0xff]  ;;  %v614_v35 = vld [vmem:[%s9610_s12 + $0x938] sm:$0xff]  ;;  %v615_v45 = vld [vmem:[%s9610_s12 + $0x940] sm:$0xff] }
  0x83   : > { %v8133_v51 = vpack.c.bf16 %v558_v44, %v557_v41  ;;  %v584_v44 = vld [vmem:[%s9610_s12 + $0x848] sm:$0xff]  ;;  %v587_v5 = vld [vmem:[%s9610_s12 + $0x860] sm:$0xff]  ;;  %v606_v11 = vld [vmem:[%s9610_s12 + $0x8f8] sm:$0xff] }
  0x84   : > { %8082 = vmatpush3.bf16.msra.mxu0 %v8081_v48  ;;  %v624_v48 = vld [vmem:[%s9610_s12 + $0x988] sm:$0xff]  ;;  %v619_v7 = vld [vmem:[%s9610_s12 + $0x960] sm:$0xff]  ;;  %v637_v12 = vld [vmem:[%s9610_s12 + $0x9f0] sm:$0xff] }
  0x85   : > { %8114 = vmatpush3.bf16.msra.mxu1 %v8113_v49  ;;  %8084 = vmatprep.subr.bf16.mxu0 %v8083_v50  ;;  %v1866_v49 = vcombine.high %v300_v37, %v300_v37  ;;  %v8101_v50 = vpack.c.bf16 %v526_v40, %v525_v46  ;;  %v8167_v34 = vpack.c.bf16 %v624_v48, %v623_v47  ;;  %v616_v47 = vld [vmem:[%s9610_s12 + $0x948] sm:$0xff]  ;;  %v601_v48 = vld [vmem:[%s9610_s12 + $0x8d0] sm:$0xff] }
  0x86   : > { %8116 = vmatprep.subr.bf16.mxu1 %v8115_v54  ;;  %v576_v54 = vld [vmem:[%s9610_s12 + $0x808] sm:$0xff]  ;;  %v8149_v46 = vpack.c.bf16 %v582_v31, %v581_v30  ;;  %v8181_v40 = vpack.c.bf16 %v614_v35, %v613_v32  ;;  %v639_v32 = vld [vmem:[%s9610_s12 + $0xa00] sm:$0xff] }
  0x87   : > { %v9931_v63 = vrot.slane %v1866_v49, %v9666_v14  ;;  %v8137_v43 = vpack.c.bf16 %v576_v54, %v575_v53  ;;  %v602_v49 = vld [vmem:[%s9610_s12 + $0x8d8] sm:$0xff]  ;;  %v8185_v53 = vpack.c.bf16 %v616_v47, %v615_v45  ;;  %v671_v35 = vld [vmem:[%s9610_s12 + $0xb00] sm:$0xff]  ;;  %v641_v47 = vld [vmem:[%s9610_s12 + $0xa10] sm:$0xff] }
  0x88   : > { %8086 = vmatpush3.bf16.msra.mxu0 %v8085_v60  ;;  %v9926_v60 = vrot.slane %v300_v37, %v9666_v14  ;;  %v600_v37 = vld [vmem:[%s9610_s12 + $0x8c8] sm:$0xff]  ;;  %v8155_v54 = vpack.c.bf16 %v602_v49, %v601_v48  ;;  %v642_v48 = vld [vmem:[%s9610_s12 + $0xa18] sm:$0xff]  ;;  %v673_v49 = vld [vmem:[%s9610_s12 + $0xb10] sm:$0xff] }
  0x89   : > { %8118 = vmatpush3.bf16.msra.mxu1 %v8117_v61  ;;  %8088 = vmatprep.subr.bf16.mxu0 %v8087_v62  ;;  %v625_v61 = vld [vmem:[%s9610_s12 + $0x990] sm:$0xff]  ;;  %v626_v62 = vld [vmem:[%s9610_s12 + $0x998] sm:$0xff]  ;;  %v1882_v13 = vcombine.high %v9931_v63, %v9931_v63 }
  0x8a   : > { %8120 = vmatprep.subr.bf16.mxu1 %v8119_v2  ;;  %v8139_v2 = vpack.c.bf16 %v594_v59, %v593_v58  ;;  %v8171_v6 = vpack.c.bf16 %v626_v62, %v625_v61  ;;  %v618_v59 = vld [vmem:[%s9610_s12 + $0x958] sm:$0xff]  ;;  %v603_v61 = vld [vmem:[%s9610_s12 + $0x8e0] sm:$0xff]  ;;  %v604_v62 = vld [vmem:[%s9610_s12 + $0x8e8] sm:$0xff] }
  0x8c   : > { %8090 = vmatpush3.bf16.msra.mxu0 %v8089_v8  ;;  %v595_v8 = vld [vmem:[%s9610_s12 + $0x8a0] sm:$0xff] }
  0x8d   : > { %8122 = vmatpush3.bf16.msra.mxu1 %v8121_v9  ;;  %8092 = vmatprep.subr.bf16.mxu0 %v8091_v10  ;;  %v596_v9 = vld [vmem:[%s9610_s12 + $0x8a8] sm:$0xff]  ;;  %v1881_v10 = vcombine.high %v9926_v60, %v9926_v60 }
  0x8e   : > { %8124 = vmatprep.subr.bf16.mxu1 %v8123_v15  ;;  %v8141_v15 = vpack.c.bf16 %v578_v4, %v577_v3  ;;  %v8143_v18 = vpack.c.bf16 %v596_v9, %v595_v8  ;;  %v8189_v3 = vpack.c.bf16 %v618_v59, %v617_v57  ;;  %v8159_v4 = vpack.c.bf16 %v604_v62, %v603_v61  ;;  %v620_v9 = vld [vmem:[%s9610_s12 + $0x968] sm:$0xff]  ;;  %v643_v62 = vld [vmem:[%s9610_s12 + $0xa20] sm:$0xff] }
  0x90   : > { %8094 = vmatpush3.bf16.msra.mxu0 %v8093_v23  ;;  %v612_v23 = vld [vmem:[%s9610_s12 + $0x928] sm:$0xff] }
  0x91   : > { %8126 = vmatpush3.bf16.msra.mxu1 %v8125_v24  ;;  %8096 = vmatprep.subr.bf16.mxu0 %v8095_v25  ;;  %v597_v24 = vld [vmem:[%s9610_s12 + $0x8b0] sm:$0xff]  ;;  %v598_v25 = vld [vmem:[%s9610_s12 + $0x8b8] sm:$0xff]  ;;  %v8177_v28 = vpack.c.bf16 %v612_v23, %v611_v21 }
  0x92   : > { %8128 = vmatprep.subr.bf16.mxu1 %v8127_v29  ;;  %v8147_v29 = vpack.c.bf16 %v598_v25, %v597_v24  ;;  %v590_v21 = vld [vmem:[%s9610_s12 + $0x878] sm:$0xff]  ;;  %v655_v25 = vld [vmem:[%s9610_s12 + $0xa80] sm:$0xff] }
  0x93   : > { %v622_v24 = vld [vmem:[%s9610_s12 + $0x978] sm:$0xff] }
  0x94   : > { %8098 = vmatpush3.bf16.msra.mxu0 %v8097_v36  ;;  %v599_v36 = vld [vmem:[%s9610_s12 + $0x8c0] sm:$0xff] }
  0x95   : > { %8130 = vmatpush3.bf16.msra.mxu1 %v8129_v38  ;;  %8100 = vmatprep.subr.bf16.mxu0 %v8099_v39  ;;  %v631_v38 = vld [vmem:[%s9610_s12 + $0x9c0] sm:$0xff]  ;;  %v632_v39 = vld [vmem:[%s9610_s12 + $0x9c8] sm:$0xff]  ;;  %v8151_v41 = vpack.c.bf16 %v600_v37, %v599_v36 }
  0x96   : > { %8132 = vmatprep.subr.bf16.mxu1 %v8131_v42  ;;  %v583_v42 = vld [vmem:[%s9610_s12 + $0x840] sm:$0xff]  ;;  %v8183_v55 = vpack.c.bf16 %v632_v39, %v631_v38  ;;  %v672_v37 = vld [vmem:[%s9610_s12 + $0xb08] sm:$0xff]  ;;  %v657_v38 = vld [vmem:[%s9610_s12 + $0xa90] sm:$0xff] }
  0x97   : > { %v658_v39 = vld [vmem:[%s9610_s12 + $0xa98] sm:$0xff]  ;;  %v8233_v45 = vpack.c.bf16 %v672_v37, %v671_v35  ;;  %v649_v35 = vld [vmem:[%s9610_s12 + $0xa50] sm:$0xff] }
  0x98   : > { %8102 = vmatpush3.bf16.msra.mxu0 %v8101_v50  ;;  %v633_v50 = vld [vmem:[%s9610_s12 + $0x9d0] sm:$0xff] }
  0x99   : > { %8134 = vmatpush3.bf16.msra.mxu1 %v8133_v51  ;;  %8136 = vmatprep.subr.bf16.mxu0 %v8135_v52  ;;  %v634_v51 = vld [vmem:[%s9610_s12 + $0x9d8] sm:$0xff]  ;;  %v8153_v52 = vpack.c.bf16 %v584_v44, %v583_v42  ;;  %v681_v37 = vld [vmem:[%s9610_s12 + $0xb50] sm:$0xff] }
  0x9a   : > { %8168 = vmatprep.subr.bf16.mxu1 %v8167_v34  ;;  %v586_v34 = vld [vmem:[%s9610_s12 + $0x858] sm:$0xff]  ;;  %v8187_v58 = vpack.c.bf16 %v634_v51, %v633_v50 }
  0x9b   : > { %2764 = vmatmul.mubr.f32.vlgmr.msra.gmra.mrb[6].mxu0 %v9849_v17  ;;  %v580_v17 = vld [vmem:[%s9610_s12 + $0x828] sm:$0xff]  ;;  %v674_v51 = vld [vmem:[%s9610_s12 + $0xb18] sm:$0xff] }
  0x9c   : > { %8138 = vmatpush3.bf16.msra.mxu0 %v8137_v43  ;;  %2834 = vmatmul.mubr.f32.vlgmr.msra.gmra.mrb[6].mxu1 %v9854_v20  ;;  %v629_v20 = vld [vmem:[%s9610_s12 + $0x9b0] sm:$0xff]  ;;  %v8145_v27 = vpack.c.bf16 %v580_v17, %v579_v19  ;;  %v635_v43 = vld [vmem:[%s9610_s12 + $0x9e0] sm:$0xff]  ;;  %v8237_v59 = vpack.c.bf16 %v674_v51, %v673_v49 }
  0x9d   : > { %8170 = vmatpush3.bf16.msra.mxu1 %v8169_v0  ;;  %8140 = vmatprep.subr.bf16.mxu0 %v8139_v2  ;;  %v8179_v33 = vpack.c.bf16 %v630_v26, %v629_v20  ;;  %v636_v0 = vld [vmem:[%s9610_s12 + $0x9e8] sm:$0xff]  ;;  %v8157_v2 = vpack.c.bf16 %v586_v34, %v585_v56  ;;  %v589_v17 = vld [vmem:[%s9610_s12 + $0x870] sm:$0xff]  ;;  %v687_v26 = vld [vmem:[%s9610_s12 + $0xb80] sm:$0xff] }
  0x9e   : > { %8172 = vmatprep.subr.bf16.mxu1 %v8171_v6  ;;  %2903 = vmatprep.mubr.f32.mxu0 %v1881_v10  ;;  %v588_v6 = vld [vmem:[%s9610_s12 + $0x868] sm:$0xff]  ;;  %v8191_v8 = vpack.c.bf16 %v636_v0, %v635_v43  ;;  %v605_v10 = vld [vmem:[%s9610_s12 + $0x8f0] sm:$0xff]  ;;  %v691_v56 = vld [vmem:[%s9610_s12 + $0xba0] sm:$0xff] }
  0x9f   : > { %2973 = vmatprep.mubr.f32.mxu1 %v1882_v13  ;;  %v638_v13 = vld [vmem:[%s9610_s12 + $0x9f8] sm:$0xff]  ;;  %v8163_v19 = vpack.c.bf16 %v606_v11, %v605_v10  ;;  %v656_v20 = vld [vmem:[%s9610_s12 + $0xa88] sm:$0xff]  ;;  %v675_v43 = vld [vmem:[%s9610_s12 + $0xb20] sm:$0xff] }
  0xa0   : > { %8142 = vmatpush3.bf16.msra.mxu0 %v8141_v15  ;;  %v8161_v15 = vpack.c.bf16 %v588_v6, %v587_v5  ;;  %v8195_v23 = vpack.c.bf16 %v638_v13, %v637_v12  ;;  %v8199_v31 = vpack.c.bf16 %v656_v20, %v655_v25  ;;  %v692_v34 = vld [vmem:[%s9610_s12 + $0xba8] sm:$0xff]  ;;  %v694_v5 = vld [vmem:[%s9610_s12 + $0xbb8] sm:$0xff]  ;;  %v677_v11 = vld [vmem:[%s9610_s12 + $0xb30] sm:$0xff] }
  0xa1   : > { %8174 = vmatpush3.bf16.msra.mxu1 %v8173_v16  ;;  %8144 = vmatprep.subr.bf16.mxu0 %v8143_v18  ;;  %v301_v16 = vld [vmem:[%s9605_s8 + $0x28] sm:$0xff]  ;;  %v8193_v18 = vpack.c.bf16 %v620_v9, %v619_v7  ;;  %v8239_v0 = vpack.c.bf16 %v692_v34, %v691_v56  ;;  %v645_v9 = vld [vmem:[%s9610_s12 + $0xa30] sm:$0xff]  ;;  %v646_v10 = vld [vmem:[%s9610_s12 + $0xa38] sm:$0xff] }
  0xa2   : > { %8176 = vmatprep.subr.bf16.mxu1 %v8175_v22  ;;  %v621_v22 = vld [vmem:[%s9610_s12 + $0x970] sm:$0xff]  ;;  %v678_v13 = vld [vmem:[%s9610_s12 + $0xb38] sm:$0xff]  ;;  %v679_v25 = vld [vmem:[%s9610_s12 + $0xb40] sm:$0xff] }
  0xa3   : > { %v8197_v30 = vpack.c.bf16 %v622_v24, %v621_v22  ;;  %v648_v24 = vld [vmem:[%s9610_s12 + $0xa48] sm:$0xff]  ;;  %v651_v49 = vld [vmem:[%s9610_s12 + $0xa60] sm:$0xff]  ;;  %v670_v56 = vld [vmem:[%s9610_s12 + $0xaf8] sm:$0xff] }
  0xa4   : > { %8146 = vmatpush3.bf16.msra.mxu0 %v8145_v27  ;;  %v688_v27 = vld [vmem:[%s9610_s12 + $0xb88] sm:$0xff]  ;;  %v683_v51 = vld [vmem:[%s9610_s12 + $0xb60] sm:$0xff]  ;;  %v701_v34 = vld [vmem:[%s9610_s12 + $0xbf0] sm:$0xff] }
  0xa5   : > { %8178 = vmatpush3.bf16.msra.mxu1 %v8177_v28  ;;  %8148 = vmatprep.subr.bf16.mxu0 %v8147_v29  ;;  %v1883_v28 = vcombine.high %v301_v16, %v301_v16  ;;  %v8165_v29 = vpack.c.bf16 %v590_v21, %v589_v17  ;;  %v8231_v36 = vpack.c.bf16 %v688_v27, %v687_v26  ;;  %v680_v26 = vld [vmem:[%s9610_s12 + $0xb48] sm:$0xff]  ;;  %v665_v27 = vld [vmem:[%s9610_s12 + $0xad0] sm:$0xff] }
  0xa6   : > { %8180 = vmatprep.subr.bf16.mxu1 %v8179_v33  ;;  %v640_v33 = vld [vmem:[%s9610_s12 + $0xa08] sm:$0xff]  ;;  %v8213_v17 = vpack.c.bf16 %v646_v10, %v645_v9  ;;  %v8245_v21 = vpack.c.bf16 %v678_v13, %v677_v11  ;;  %v703_v11 = vld [vmem:[%s9610_s12 + $0xc00] sm:$0xff] }
  0xa7   : > { %v10008_v42 = vrot.slane %v1883_v28, %v9666_v14  ;;  %v8201_v44 = vpack.c.bf16 %v640_v33, %v639_v32  ;;  %v666_v28 = vld [vmem:[%s9610_s12 + $0xad8] sm:$0xff]  ;;  %v8249_v32 = vpack.c.bf16 %v680_v26, %v679_v25  ;;  %v735_v13 = vld [vmem:[%s9610_s12 + $0xd00] sm:$0xff]  ;;  %v705_v26 = vld [vmem:[%s9610_s12 + $0xc10] sm:$0xff] }
  0xa8   : > { %8150 = vmatpush3.bf16.msra.mxu0 %v8149_v46  ;;  %v10003_v46 = vrot.slane %v301_v16, %v9666_v14  ;;  %v664_v16 = vld [vmem:[%s9610_s12 + $0xac8] sm:$0xff]  ;;  %v8219_v33 = vpack.c.bf16 %v666_v28, %v665_v27  ;;  %v706_v27 = vld [vmem:[%s9610_s12 + $0xc18] sm:$0xff]  ;;  %v737_v28 = vld [vmem:[%s9610_s12 + $0xd10] sm:$0xff] }
  0xa9   : > { %8182 = vmatpush3.bf16.msra.mxu1 %v8181_v40  ;;  %8152 = vmatprep.subr.bf16.mxu0 %v8151_v41  ;;  %v689_v40 = vld [vmem:[%s9610_s12 + $0xb90] sm:$0xff]  ;;  %v690_v41 = vld [vmem:[%s9610_s12 + $0xb98] sm:$0xff]  ;;  %v1899_v57 = vcombine.high %v10008_v42, %v10008_v42 }
  0xaa   : > { %8184 = vmatprep.subr.bf16.mxu1 %v8183_v55  ;;  %v8203_v55 = vpack.c.bf16 %v658_v39, %v657_v38  ;;  %v8235_v50 = vpack.c.bf16 %v690_v41, %v689_v40  ;;  %v682_v39 = vld [vmem:[%s9610_s12 + $0xb58] sm:$0xff]  ;;  %v667_v40 = vld [vmem:[%s9610_s12 + $0xae0] sm:$0xff]  ;;  %v668_v41 = vld [vmem:[%s9610_s12 + $0xae8] sm:$0xff] }
  0xac   : > { %8154 = vmatpush3.bf16.msra.mxu0 %v8153_v52  ;;  %v659_v52 = vld [vmem:[%s9610_s12 + $0xaa0] sm:$0xff] }
  0xad   : > { %8186 = vmatpush3.bf16.msra.mxu1 %v8185_v53  ;;  %8156 = vmatprep.subr.bf16.mxu0 %v8155_v54  ;;  %v660_v53 = vld [vmem:[%s9610_s12 + $0xaa8] sm:$0xff]  ;;  %v1898_v54 = vcombine.high %v10003_v46, %v10003_v46 }
  0xae   : > { %8188 = vmatprep.subr.bf16.mxu1 %v8187_v58  ;;  %v8205_v58 = vpack.c.bf16 %v642_v48, %v641_v47  ;;  %v8207_v61 = vpack.c.bf16 %v660_v53, %v659_v52  ;;  %v8253_v47 = vpack.c.bf16 %v682_v39, %v681_v37  ;;  %v8223_v48 = vpack.c.bf16 %v668_v41, %v667_v40  ;;  %v684_v53 = vld [vmem:[%s9610_s12 + $0xb68] sm:$0xff]  ;;  %v707_v41 = vld [vmem:[%s9610_s12 + $0xc20] sm:$0xff] }
  0xb0   : > { %8158 = vmatpush3.bf16.msra.mxu0 %v8157_v2  ;;  %v676_v2 = vld [vmem:[%s9610_s12 + $0xb28] sm:$0xff] }
  0xb1   : > { %8190 = vmatpush3.bf16.msra.mxu1 %v8189_v3  ;;  %8160 = vmatprep.subr.bf16.mxu0 %v8159_v4  ;;  %v661_v3 = vld [vmem:[%s9610_s12 + $0xab0] sm:$0xff]  ;;  %v662_v4 = vld [vmem:[%s9610_s12 + $0xab8] sm:$0xff]  ;;  %v8241_v7 = vpack.c.bf16 %v676_v2, %v675_v43 }
  0xb2   : > { %8192 = vmatprep.subr.bf16.mxu1 %v8191_v8  ;;  %v8211_v8 = vpack.c.bf16 %v662_v4, %v661_v3  ;;  %v654_v43 = vld [vmem:[%s9610_s12 + $0xa78] sm:$0xff]  ;;  %v719_v4 = vld [vmem:[%s9610_s12 + $0xc80] sm:$0xff] }
  0xb3   : > { %v686_v3 = vld [vmem:[%s9610_s12 + $0xb78] sm:$0xff] }
  0xb4   : > { %8162 = vmatpush3.bf16.msra.mxu0 %v8161_v15  ;;  %v663_v15 = vld [vmem:[%s9610_s12 + $0xac0] sm:$0xff] }
  0xb5   : > { %8194 = vmatpush3.bf16.msra.mxu1 %v8193_v18  ;;  %8164 = vmatprep.subr.bf16.mxu0 %v8163_v19  ;;  %v695_v18 = vld [vmem:[%s9610_s12 + $0xbc0] sm:$0xff]  ;;  %v696_v19 = vld [vmem:[%s9610_s12 + $0xbc8] sm:$0xff]  ;;  %v8215_v22 = vpack.c.bf16 %v664_v16, %v663_v15 }
  0xb6   : > { %8196 = vmatprep.subr.bf16.mxu1 %v8195_v23  ;;  %v647_v23 = vld [vmem:[%s9610_s12 + $0xa40] sm:$0xff]  ;;  %v8247_v20 = vpack.c.bf16 %v696_v19, %v695_v18  ;;  %v736_v16 = vld [vmem:[%s9610_s12 + $0xd08] sm:$0xff]  ;;  %v721_v18 = vld [vmem:[%s9610_s12 + $0xc90] sm:$0xff] }
  0xb7   : > { %v722_v19 = vld [vmem:[%s9610_s12 + $0xc98] sm:$0xff]  ;;  %v8297_v25 = vpack.c.bf16 %v736_v16, %v735_v13  ;;  %v713_v13 = vld [vmem:[%s9610_s12 + $0xc50] sm:$0xff] }
  0xb8   : > { %8166 = vmatpush3.bf16.msra.mxu0 %v8165_v29  ;;  %v697_v29 = vld [vmem:[%s9610_s12 + $0xbd0] sm:$0xff] }
  0xb9   : > { %8198 = vmatpush3.bf16.msra.mxu1 %v8197_v30  ;;  %8200 = vmatprep.subr.bf16.mxu0 %v8199_v31  ;;  %v698_v30 = vld [vmem:[%s9610_s12 + $0xbd8] sm:$0xff]  ;;  %v8217_v31 = vpack.c.bf16 %v648_v24, %v647_v23  ;;  %v745_v16 = vld [vmem:[%s9610_s12 + $0xd50] sm:$0xff] }
  0xba   : > { %8232 = vmatprep.subr.bf16.mxu1 %v8231_v36  ;;  %v650_v36 = vld [vmem:[%s9610_s12 + $0xa58] sm:$0xff]  ;;  %v8251_v38 = vpack.c.bf16 %v698_v30, %v697_v29 }
  0xbb   : > { %2904 = vmatmul.mubr.f32.vlgmr.msra.gmra.mrb[8].mxu0 %v9926_v60  ;;  %v644_v60 = vld [vmem:[%s9610_s12 + $0xa28] sm:$0xff]  ;;  %v738_v30 = vld [vmem:[%s9610_s12 + $0xd18] sm:$0xff] }
  0xbc   : > { %8202 = vmatpush3.bf16.msra.mxu0 %v8201_v44  ;;  %2974 = vmatmul.mubr.f32.vlgmr.msra.gmra.mrb[8].mxu1 %v9931_v63  ;;  %v693_v63 = vld [vmem:[%s9610_s12 + $0xbb0] sm:$0xff]  ;;  %v8209_v6 = vpack.c.bf16 %v644_v60, %v643_v62  ;;  %v699_v44 = vld [vmem:[%s9610_s12 + $0xbe0] sm:$0xff]  ;;  %v8301_v39 = vpack.c.bf16 %v738_v30, %v737_v28 }
  0xbd   : > { %8234 = vmatpush3.bf16.msra.mxu1 %v8233_v45  ;;  %8204 = vmatprep.subr.bf16.mxu0 %v8203_v55  ;;  %v8243_v12 = vpack.c.bf16 %v694_v5, %v693_v63  ;;  %v700_v45 = vld [vmem:[%s9610_s12 + $0xbe8] sm:$0xff]  ;;  %v8221_v55 = vpack.c.bf16 %v650_v36, %v649_v35  ;;  %v653_v60 = vld [vmem:[%s9610_s12 + $0xa70] sm:$0xff]  ;;  %v751_v5 = vld [vmem:[%s9610_s12 + $0xd80] sm:$0xff] }
  0xbe   : > { %8236 = vmatprep.subr.bf16.mxu1 %v8235_v50  ;;  %3043 = vmatprep.mubr.f32.mxu0 %v1898_v54  ;;  %v652_v50 = vld [vmem:[%s9610_s12 + $0xa68] sm:$0xff]  ;;  %v8255_v52 = vpack.c.bf16 %v700_v45, %v699_v44  ;;  %v669_v54 = vld [vmem:[%s9610_s12 + $0xaf0] sm:$0xff]  ;;  %v755_v35 = vld [vmem:[%s9610_s12 + $0xda0] sm:$0xff] }
  0xbf   : > { %3113 = vmatprep.mubr.f32.mxu1 %v1899_v57  ;;  %v702_v57 = vld [vmem:[%s9610_s12 + $0xbf8] sm:$0xff]  ;;  %v8227_v62 = vpack.c.bf16 %v670_v56, %v669_v54  ;;  %v720_v63 = vld [vmem:[%s9610_s12 + $0xc88] sm:$0xff]  ;;  %v739_v44 = vld [vmem:[%s9610_s12 + $0xd20] sm:$0xff] }
  0xc0   : > { %8206 = vmatpush3.bf16.msra.mxu0 %v8205_v58  ;;  %v8225_v58 = vpack.c.bf16 %v652_v50, %v651_v49  ;;  %v8259_v2 = vpack.c.bf16 %v702_v57, %v701_v34  ;;  %v8263_v10 = vpack.c.bf16 %v720_v63, %v719_v4  ;;  %v756_v36 = vld [vmem:[%s9610_s12 + $0xda8] sm:$0xff]  ;;  %v758_v49 = vld [vmem:[%s9610_s12 + $0xdb8] sm:$0xff]  ;;  %v741_v56 = vld [vmem:[%s9610_s12 + $0xd30] sm:$0xff] }
  0xc1   : > { %8238 = vmatpush3.bf16.msra.mxu1 %v8237_v59  ;;  %8208 = vmatprep.subr.bf16.mxu0 %v8207_v61  ;;  %v302_v59 = vld [vmem:[%s9605_s8 + $0x30] sm:$0xff]  ;;  %v8257_v61 = vpack.c.bf16 %v684_v53, %v683_v51  ;;  %v8303_v45 = vpack.c.bf16 %v756_v36, %v755_v35  ;;  %v710_v54 = vld [vmem:[%s9610_s12 + $0xc38] sm:$0xff]  ;;  %v743_v4 = vld [vmem:[%s9610_s12 + $0xd40] sm:$0xff] }
  0xc2   : > { %8240 = vmatprep.subr.bf16.mxu1 %v8239_v0  ;;  %v685_v0 = vld [vmem:[%s9610_s12 + $0xb70] sm:$0xff]  ;;  %v742_v57 = vld [vmem:[%s9610_s12 + $0xd38] sm:$0xff]  ;;  %v715_v28 = vld [vmem:[%s9610_s12 + $0xc60] sm:$0xff] }
  0xc3   : > { %v8261_v9 = vpack.c.bf16 %v686_v3, %v685_v0  ;;  %v709_v53 = vld [vmem:[%s9610_s12 + $0xc30] sm:$0xff]  ;;  %v712_v3 = vld [vmem:[%s9610_s12 + $0xc48] sm:$0xff]  ;;  %v747_v30 = vld [vmem:[%s9610_s12 + $0xd60] sm:$0xff] }
  0xc4   : > { %8210 = vmatpush3.bf16.msra.mxu0 %v8209_v6  ;;  %v752_v6 = vld [vmem:[%s9610_s12 + $0xd88] sm:$0xff]  ;;  %v734_v35 = vld [vmem:[%s9610_s12 + $0xcf8] sm:$0xff]  ;;  %v765_v36 = vld [vmem:[%s9610_s12 + $0xdf0] sm:$0xff] }
  0xc5   : > { %8242 = vmatpush3.bf16.msra.mxu1 %v8241_v7  ;;  %8212 = vmatprep.subr.bf16.mxu0 %v8211_v8  ;;  %v1900_v7 = vcombine.high %v302_v59, %v302_v59  ;;  %v8229_v8 = vpack.c.bf16 %v654_v43, %v653_v60  ;;  %v8295_v15 = vpack.c.bf16 %v752_v6, %v751_v5  ;;  %v744_v5 = vld [vmem:[%s9610_s12 + $0xd48] sm:$0xff]  ;;  %v729_v6 = vld [vmem:[%s9610_s12 + $0xcd0] sm:$0xff] }
  0xc6   : > { %8244 = vmatprep.subr.bf16.mxu1 %v8243_v12  ;;  %v704_v12 = vld [vmem:[%s9610_s12 + $0xc08] sm:$0xff]  ;;  %v8277_v60 = vpack.c.bf16 %v710_v54, %v709_v53  ;;  %v8309_v43 = vpack.c.bf16 %v742_v57, %v741_v56  ;;  %v767_v56 = vld [vmem:[%s9610_s12 + $0xe00] sm:$0xff] }
  0xc7   : > { %v10085_v23 = vrot.slane %v1900_v7, %v9666_v14  ;;  %v8265_v24 = vpack.c.bf16 %v704_v12, %v703_v11  ;;  %v730_v7 = vld [vmem:[%s9610_s12 + $0xcd8] sm:$0xff]  ;;  %v8313_v11 = vpack.c.bf16 %v744_v5, %v743_v4  ;;  %v799_v57 = vld [vmem:[%s9610_s12 + $0xf00] sm:$0xff]  ;;  %v769_v5 = vld [vmem:[%s9610_s12 + $0xe10] sm:$0xff] }
  0xc8   : > { %8214 = vmatpush3.bf16.msra.mxu0 %v8213_v17  ;;  %v10080_v17 = vrot.slane %v302_v59, %v9666_v14  ;;  %v728_v59 = vld [vmem:[%s9610_s12 + $0xcc8] sm:$0xff]  ;;  %v8283_v12 = vpack.c.bf16 %v730_v7, %v729_v6  ;;  %v770_v6 = vld [vmem:[%s9610_s12 + $0xe18] sm:$0xff]  ;;  %v801_v7 = vld [vmem:[%s9610_s12 + $0xf10] sm:$0xff] }
  0xc9   : > { %8246 = vmatpush3.bf16.msra.mxu1 %v8245_v21  ;;  %8216 = vmatprep.subr.bf16.mxu0 %v8215_v22  ;;  %v753_v21 = vld [vmem:[%s9610_s12 + $0xd90] sm:$0xff]  ;;  %v754_v22 = vld [vmem:[%s9610_s12 + $0xd98] sm:$0xff]  ;;  %v1916_v37 = vcombine.high %v10085_v23, %v10085_v23 }
  0xca   : > { %8248 = vmatprep.subr.bf16.mxu1 %v8247_v20  ;;  %v8267_v20 = vpack.c.bf16 %v722_v19, %v721_v18  ;;  %v8299_v29 = vpack.c.bf16 %v754_v22, %v753_v21  ;;  %v746_v19 = vld [vmem:[%s9610_s12 + $0xd58] sm:$0xff]  ;;  %v731_v21 = vld [vmem:[%s9610_s12 + $0xce0] sm:$0xff]  ;;  %v732_v22 = vld [vmem:[%s9610_s12 + $0xce8] sm:$0xff] }
  0xcc   : > { %8218 = vmatpush3.bf16.msra.mxu0 %v8217_v31  ;;  %v723_v31 = vld [vmem:[%s9610_s12 + $0xca0] sm:$0xff] }
  0xcd   : > { %8250 = vmatpush3.bf16.msra.mxu1 %v8249_v32  ;;  %8220 = vmatprep.subr.bf16.mxu0 %v8219_v33  ;;  %v724_v32 = vld [vmem:[%s9610_s12 + $0xca8] sm:$0xff]  ;;  %v1915_v33 = vcombine.high %v10080_v17, %v10080_v17 }
  0xce   : > { %8252 = vmatprep.subr.bf16.mxu1 %v8251_v38  ;;  %v8269_v38 = vpack.c.bf16 %v706_v27, %v705_v26  ;;  %v8271_v40 = vpack.c.bf16 %v724_v32, %v723_v31  ;;  %v8317_v26 = vpack.c.bf16 %v746_v19, %v745_v16  ;;  %v8287_v27 = vpack.c.bf16 %v732_v22, %v731_v21  ;;  %v748_v32 = vld [vmem:[%s9610_s12 + $0xd68] sm:$0xff]  ;;  %v771_v22 = vld [vmem:[%s9610_s12 + $0xe20] sm:$0xff] }
  0xd0   : > { %8222 = vmatpush3.bf16.msra.mxu0 %v8221_v55  ;;  %v740_v55 = vld [vmem:[%s9610_s12 + $0xd28] sm:$0xff] }
  0xd1   : > { %8254 = vmatpush3.bf16.msra.mxu1 %v8253_v47  ;;  %8224 = vmatprep.subr.bf16.mxu0 %v8223_v48  ;;  %v725_v47 = vld [vmem:[%s9610_s12 + $0xcb0] sm:$0xff]  ;;  %v726_v48 = vld [vmem:[%s9610_s12 + $0xcb8] sm:$0xff]  ;;  %v8305_v51 = vpack.c.bf16 %v740_v55, %v739_v44 }
  0xd2   : > { %8256 = vmatprep.subr.bf16.mxu1 %v8255_v52  ;;  %v8275_v52 = vpack.c.bf16 %v726_v48, %v725_v47  ;;  %v718_v44 = vld [vmem:[%s9610_s12 + $0xc78] sm:$0xff]  ;;  %v783_v48 = vld [vmem:[%s9610_s12 + $0xe80] sm:$0xff] }
  0xd3   : > { %v750_v47 = vld [vmem:[%s9610_s12 + $0xd78] sm:$0xff] }
  0xd4   : > { %8226 = vmatpush3.bf16.msra.mxu0 %v8225_v58  ;;  %v727_v58 = vld [vmem:[%s9610_s12 + $0xcc0] sm:$0xff] }
  0xd5   : > { %8258 = vmatpush3.bf16.msra.mxu1 %v8257_v61  ;;  %8228 = vmatprep.subr.bf16.mxu0 %v8227_v62  ;;  %v759_v61 = vld [vmem:[%s9610_s12 + $0xdc0] sm:$0xff]  ;;  %v760_v62 = vld [vmem:[%s9610_s12 + $0xdc8] sm:$0xff]  ;;  %v8279_v0 = vpack.c.bf16 %v728_v59, %v727_v58 }
  0xd6   : > { %8260 = vmatprep.subr.bf16.mxu1 %v8259_v2  ;;  %v711_v2 = vld [vmem:[%s9610_s12 + $0xc40] sm:$0xff]  ;;  %v8311_v63 = vpack.c.bf16 %v760_v62, %v759_v61  ;;  %v800_v59 = vld [vmem:[%s9610_s12 + $0xf08] sm:$0xff]  ;;  %v785_v61 = vld [vmem:[%s9610_s12 + $0xe90] sm:$0xff] }
  0xd7   : > { %v786_v62 = vld [vmem:[%s9610_s12 + $0xe98] sm:$0xff]  ;;  %v8361_v4 = vpack.c.bf16 %v800_v59, %v799_v57  ;;  %v777_v57 = vld [vmem:[%s9610_s12 + $0xe50] sm:$0xff] }
  0xd8   : > { %8230 = vmatpush3.bf16.msra.mxu0 %v8229_v8  ;;  %v761_v8 = vld [vmem:[%s9610_s12 + $0xdd0] sm:$0xff] }
  0xd9   : > { %8262 = vmatpush3.bf16.msra.mxu1 %v8261_v9  ;;  %8264 = vmatprep.subr.bf16.mxu0 %v8263_v10  ;;  %v762_v9 = vld [vmem:[%s9610_s12 + $0xdd8] sm:$0xff]  ;;  %v8281_v10 = vpack.c.bf16 %v712_v3, %v711_v2  ;;  %v809_v59 = vld [vmem:[%s9610_s12 + $0xf50] sm:$0xff] }
  0xda   : > { %8296 = vmatprep.subr.bf16.mxu1 %v8295_v15  ;;  %v714_v15 = vld [vmem:[%s9610_s12 + $0xc58] sm:$0xff]  ;;  %v8315_v18 = vpack.c.bf16 %v762_v9, %v761_v8 }
  0xdb   : > { %3044 = vmatmul.mubr.f32.vlgmr.msra.gmra.mrb[10].mxu0 %v10003_v46  ;;  %v708_v46 = vld [vmem:[%s9610_s12 + $0xc28] sm:$0xff]  ;;  %v802_v9 = vld [vmem:[%s9610_s12 + $0xf18] sm:$0xff] }
  0xdc   : > { %8266 = vmatpush3.bf16.msra.mxu0 %v8265_v24  ;;  %3114 = vmatmul.mubr.f32.vlgmr.msra.gmra.mrb[10].mxu1 %v10008_v42  ;;  %v757_v42 = vld [vmem:[%s9610_s12 + $0xdb0] sm:$0xff]  ;;  %v8273_v50 = vpack.c.bf16 %v708_v46, %v707_v41  ;;  %v763_v24 = vld [vmem:[%s9610_s12 + $0xde0] sm:$0xff]  ;;  %v8365_v19 = vpack.c.bf16 %v802_v9, %v801_v7 }
  0xdd   : > { %8298 = vmatpush3.bf16.msra.mxu1 %v8297_v25  ;;  %8268 = vmatprep.subr.bf16.mxu0 %v8267_v20  ;;  %v8307_v34 = vpack.c.bf16 %v758_v49, %v757_v42  ;;  %v764_v25 = vld [vmem:[%s9610_s12 + $0xde8] sm:$0xff]  ;;  %v8285_v20 = vpack.c.bf16 %v714_v15, %v713_v13  ;;  %v717_v46 = vld [vmem:[%s9610_s12 + $0xc70] sm:$0xff]  ;;  %v815_v49 = vld [vmem:[%s9610_s12 + $0xf80] sm:$0xff] }
  0xde   : > { %8300 = vmatprep.subr.bf16.mxu1 %v8299_v29  ;;  %3183 = vmatprep.mubr.f32.mxu0 %v1915_v33  ;;  %v716_v29 = vld [vmem:[%s9610_s12 + $0xc68] sm:$0xff]  ;;  %v8319_v31 = vpack.c.bf16 %v764_v25, %v763_v24  ;;  %v733_v33 = vld [vmem:[%s9610_s12 + $0xcf0] sm:$0xff]  ;;  %v819_v13 = vld [vmem:[%s9610_s12 + $0xfa0] sm:$0xff] }
  0xdf   : > { %3253 = vmatprep.mubr.f32.mxu1 %v1916_v37  ;;  %v766_v37 = vld [vmem:[%s9610_s12 + $0xdf8] sm:$0xff]  ;;  %v8291_v41 = vpack.c.bf16 %v734_v35, %v733_v33  ;;  %v784_v42 = vld [vmem:[%s9610_s12 + $0xe88] sm:$0xff]  ;;  %v803_v24 = vld [vmem:[%s9610_s12 + $0xf20] sm:$0xff] }
  0xe0   : > { %8270 = vmatpush3.bf16.msra.mxu0 %v8269_v38  ;;  %v8289_v38 = vpack.c.bf16 %v716_v29, %v715_v28  ;;  %v8323_v55 = vpack.c.bf16 %v766_v37, %v765_v36  ;;  %v8327_v54 = vpack.c.bf16 %v784_v42, %v783_v48  ;;  %v820_v15 = vld [vmem:[%s9610_s12 + $0xfa8] sm:$0xff]  ;;  %v822_v28 = vld [vmem:[%s9610_s12 + $0xfb8] sm:$0xff]  ;;  %v805_v35 = vld [vmem:[%s9610_s12 + $0xf30] sm:$0xff] }
  0xe1   : > { %8302 = vmatpush3.bf16.msra.mxu1 %v8301_v39  ;;  %8272 = vmatprep.subr.bf16.mxu0 %v8271_v40  ;;  %v303_v39 = vld [vmem:[%s9605_s8 + $0x38] sm:$0xff]  ;;  %v8321_v40 = vpack.c.bf16 %v748_v32, %v747_v30  ;;  %v8367_v25 = vpack.c.bf16 %v820_v15, %v819_v13  ;;  %v773_v32 = vld [vmem:[%s9610_s12 + $0xe30] sm:$0xff]  ;;  %v807_v48 = vld [vmem:[%s9610_s12 + $0xf40] sm:$0xff] }
  0xe2   : > { %8304 = vmatprep.subr.bf16.mxu1 %v8303_v45  ;;  %v749_v45 = vld [vmem:[%s9610_s12 + $0xd70] sm:$0xff]  ;;  %v774_v33 = vld [vmem:[%s9610_s12 + $0xe38] sm:$0xff]  ;;  %v779_v7 = vld [vmem:[%s9610_s12 + $0xe60] sm:$0xff] }
  0xe3   : > { %v8325_v53 = vpack.c.bf16 %v750_v47, %v749_v45  ;;  %v806_v37 = vld [vmem:[%s9610_s12 + $0xf38] sm:$0xff]  ;;  %v776_v47 = vld [vmem:[%s9610_s12 + $0xe48] sm:$0xff]  ;;  %v811_v9 = vld [vmem:[%s9610_s12 + $0xf60] sm:$0xff] }
  0xe4   : > { %8274 = vmatpush3.bf16.msra.mxu0 %v8273_v50  ;;  %v816_v50 = vld [vmem:[%s9610_s12 + $0xf88] sm:$0xff]  ;;  %v797_v13 = vld [vmem:[%s9610_s12 + $0xef0] sm:$0xff]  ;;  %v798_v15 = vld [vmem:[%s9610_s12 + $0xef8] sm:$0xff] }
  0xe5   : > { %8306 = vmatpush3.bf16.msra.mxu1 %v8305_v51  ;;  %8276 = vmatprep.subr.bf16.mxu0 %v8275_v52  ;;  %v1917_v51 = vcombine.high %v303_v39, %v303_v39  ;;  %v8293_v52 = vpack.c.bf16 %v718_v44, %v717_v46  ;;  %v8359_v58 = vpack.c.bf16 %v816_v50, %v815_v49  ;;  %v808_v49 = vld [vmem:[%s9610_s12 + $0xf48] sm:$0xff]  ;;  %v793_v50 = vld [vmem:[%s9610_s12 + $0xed0] sm:$0xff] }
  0xe6   : > { %8308 = vmatprep.subr.bf16.mxu1 %v8307_v34  ;;  %v768_v34 = vld [vmem:[%s9610_s12 + $0xe08] sm:$0xff]  ;;  %v8341_v46 = vpack.c.bf16 %v774_v33, %v773_v32  ;;  %v8373_v44 = vpack.c.bf16 %v806_v37, %v805_v35  ;;  %v847_v32 = vld [vmem:[%s9610_s12 + $0x1080] sm:$0xff] }
  0xe7   : > { %v10162_v2 = vrot.slane %v1917_v51, %v9666_v14  ;;  %v8329_v3 = vpack.c.bf16 %v768_v34, %v767_v56  ;;  %v794_v51 = vld [vmem:[%s9610_s12 + $0xed8] sm:$0xff]  ;;  %v8377_v56 = vpack.c.bf16 %v808_v49, %v807_v48  ;;  %v848_v33 = vld [vmem:[%s9610_s12 + $0x1088] sm:$0xff]  ;;  %v849_v48 = vld [vmem:[%s9610_s12 + $0x1090] sm:$0xff] }
  0xe8   : > { %8278 = vmatpush3.bf16.msra.mxu0 %v8277_v60  ;;  %v10157_v60 = vrot.slane %v303_v39, %v9666_v14  ;;  %v792_v39 = vld [vmem:[%s9610_s12 + $0xec8] sm:$0xff]  ;;  %v8347_v34 = vpack.c.bf16 %v794_v51, %v793_v50  ;;  %v881_v50 = vld [vmem:[%s9610_s12 + $0x1190] sm:$0xff]  ;;  %v882_v51 = vld [vmem:[%s9610_s12 + $0x1198] sm:$0xff] }
  0xe9   : > { %8310 = vmatpush3.bf16.msra.mxu1 %v8309_v43  ;;  %8280 = vmatprep.subr.bf16.mxu0 %v8279_v0  ;;  %v817_v43 = vld [vmem:[%s9610_s12 + $0xf90] sm:$0xff]  ;;  %v818_v0 = vld [vmem:[%s9610_s12 + $0xf98] sm:$0xff]  ;;  %v1933_v16 = vcombine.high %v10162_v2, %v10162_v2  ;;  %v880_v37 = vld [vmem:[%s9610_s12 + $0x1188] sm:$0xff] }
  0xea   : > { %8312 = vmatprep.subr.bf16.mxu1 %v8311_v63  ;;  %v8331_v63 = vpack.c.bf16 %v786_v62, %v785_v61  ;;  %v8363_v8 = vpack.c.bf16 %v818_v0, %v817_v43  ;;  %v810_v62 = vld [vmem:[%s9610_s12 + $0xf58] sm:$0xff]  ;;  %v795_v43 = vld [vmem:[%s9610_s12 + $0xee0] sm:$0xff]  ;;  %v796_v0 = vld [vmem:[%s9610_s12 + $0xee8] sm:$0xff] }
  0xec   : > { %8282 = vmatpush3.bf16.msra.mxu0 %v8281_v10  ;;  %v787_v10 = vld [vmem:[%s9610_s12 + $0xea0] sm:$0xff] }
  0xed   : > { %8314 = vmatpush3.bf16.msra.mxu1 %v8313_v11  ;;  %8284 = vmatprep.subr.bf16.mxu0 %v8283_v12  ;;  %v788_v11 = vld [vmem:[%s9610_s12 + $0xea8] sm:$0xff]  ;;  %v1932_v12 = vcombine.high %v10157_v60, %v10157_v60 }
  0xee   : > { %8316 = vmatprep.subr.bf16.mxu1 %v8315_v18  ;;  %v8333_v18 = vpack.c.bf16 %v770_v6, %v769_v5  ;;  %v8335_v21 = vpack.c.bf16 %v788_v11, %v787_v10  ;;  %v8381_v5 = vpack.c.bf16 %v810_v62, %v809_v59  ;;  %v8351_v6 = vpack.c.bf16 %v796_v0, %v795_v43  ;;  %v851_v62 = vld [vmem:[%s9610_s12 + $0x10a0] sm:$0xff]  ;;  %v852_v43 = vld [vmem:[%s9610_s12 + $0x10a8] sm:$0xff] }
  0xef   : > { %v8427_v59 = vpack.c.bf16 %v882_v51, %v881_v50  ;;  %v874_v50 = vld [vmem:[%s9610_s12 + $0x1158] sm:$0xff]  ;;  %v859_v51 = vld [vmem:[%s9610_s12 + $0x10e0] sm:$0xff] }
  0xf0   : > { %8286 = vmatpush3.bf16.msra.mxu0 %v8285_v20  ;;  %v804_v20 = vld [vmem:[%s9610_s12 + $0xf28] sm:$0xff] }
  0xf1   : > { %8318 = vmatpush3.bf16.msra.mxu1 %v8317_v26  ;;  %8288 = vmatprep.subr.bf16.mxu0 %v8287_v27  ;;  %v789_v26 = vld [vmem:[%s9610_s12 + $0xeb0] sm:$0xff]  ;;  %v790_v27 = vld [vmem:[%s9610_s12 + $0xeb8] sm:$0xff]  ;;  %v8369_v30 = vpack.c.bf16 %v804_v20, %v803_v24 }
  0xf2   : > { %8320 = vmatprep.subr.bf16.mxu1 %v8319_v31  ;;  %v8339_v31 = vpack.c.bf16 %v790_v27, %v789_v26  ;;  %v8355_v27 = vpack.c.bf16 %v798_v15, %v797_v13  ;;  %v854_v13 = vld [vmem:[%s9610_s12 + $0x10b8] sm:$0xff] }
  0xf3   : > { %v886_v15 = vld [vmem:[%s9610_s12 + $0x11b8] sm:$0xff] }
  0xf4   : > { %8290 = vmatpush3.bf16.msra.mxu0 %v8289_v38  ;;  %v791_v38 = vld [vmem:[%s9610_s12 + $0xec0] sm:$0xff] }
  0xf5   : > { %8322 = vmatpush3.bf16.msra.mxu1 %v8321_v40  ;;  %8292 = vmatprep.subr.bf16.mxu0 %v8291_v41  ;;  %v823_v40 = vld [vmem:[%s9610_s12 + $0xfc0] sm:$0xff]  ;;  %v824_v41 = vld [vmem:[%s9610_s12 + $0xfc8] sm:$0xff]  ;;  %v8343_v45 = vpack.c.bf16 %v792_v39, %v791_v38 }
  0xf6   : > { %8324 = vmatprep.subr.bf16.mxu1 %v8323_v55  ;;  %v775_v55 = vld [vmem:[%s9610_s12 + $0xe40] sm:$0xff]  ;;  %v8375_v42 = vpack.c.bf16 %v824_v41, %v823_v40  ;;  %v8391_v41 = vpack.c.bf16 %v848_v33, %v847_v32  ;;  %v840_v32 = vld [vmem:[%s9610_s12 + $0x1048] sm:$0xff] }
  0xf7   : > { %v871_v33 = vld [vmem:[%s9610_s12 + $0x1140] sm:$0xff] }
  0xf8   : > { %8294 = vmatpush3.bf16.msra.mxu0 %v8293_v52  ;;  %v825_v52 = vld [vmem:[%s9610_s12 + $0xfd0] sm:$0xff] }
  0xf9   : > { %8326 = vmatpush3.bf16.msra.mxu1 %v8325_v53  ;;  %8328 = vmatprep.subr.bf16.mxu0 %v8327_v54  ;;  %v826_v53 = vld [vmem:[%s9610_s12 + $0xfd8] sm:$0xff]  ;;  %v8345_v54 = vpack.c.bf16 %v776_v47, %v775_v55  ;;  %v864_v47 = vld [vmem:[%s9610_s12 + $0x1108] sm:$0xff] }
  0xfa   : > { %8360 = vmatprep.subr.bf16.mxu1 %v8359_v58  ;;  %v778_v58 = vld [vmem:[%s9610_s12 + $0xe58] sm:$0xff]  ;;  %v8379_v61 = vpack.c.bf16 %v826_v53, %v825_v52 }
  0xfb   : > { %3184 = vmatmul.mubr.f32.vlgmr.msra.gmra.mrb[12].mxu0 %v10080_v17  ;;  %v772_v17 = vld [vmem:[%s9610_s12 + $0xe28] sm:$0xff] }
  0xfc   : > { %8330 = vmatpush3.bf16.msra.mxu0 %v8329_v3  ;;  %3254 = vmatmul.mubr.f32.vlgmr.msra.gmra.mrb[12].mxu1 %v10085_v23  ;;  %v821_v23 = vld [vmem:[%s9610_s12 + $0xfb0] sm:$0xff]  ;;  %v8337_v29 = vpack.c.bf16 %v772_v17, %v771_v22  ;;  %v827_v3 = vld [vmem:[%s9610_s12 + $0xfe0] sm:$0xff] }
  0xfd   : > { %8362 = vmatpush3.bf16.msra.mxu1 %v8361_v4  ;;  %8332 = vmatprep.subr.bf16.mxu0 %v8331_v63  ;;  %v8371_v36 = vpack.c.bf16 %v822_v28, %v821_v23  ;;  %v828_v4 = vld [vmem:[%s9610_s12 + $0xfe8] sm:$0xff]  ;;  %v8349_v63 = vpack.c.bf16 %v778_v58, %v777_v57  ;;  %v781_v23 = vld [vmem:[%s9610_s12 + $0xe70] sm:$0xff]  ;;  %v782_v28 = vld [vmem:[%s9610_s12 + $0xe78] sm:$0xff] }
  0xfe   : > { %8364 = vmatprep.subr.bf16.mxu1 %v8363_v8  ;;  %3323 = vmatprep.mubr.f32.mxu0 %v1932_v12  ;;  %v780_v8 = vld [vmem:[%s9610_s12 + $0xe68] sm:$0xff]  ;;  %v8383_v11 = vpack.c.bf16 %v828_v4, %v827_v3  ;;  %v8357_v39 = vpack.c.bf16 %v782_v28, %v781_v23  ;;  %v834_v57 = vld [vmem:[%s9610_s12 + $0x1018] sm:$0xff]  ;;  %v865_v58 = vld [vmem:[%s9610_s12 + $0x1110] sm:$0xff] }
  0xff   : > { %3393 = vmatprep.mubr.f32.mxu1 %v1933_v16  ;;  %v812_v12 = vld [vmem:[%s9610_s12 + $0xf68] sm:$0xff]  ;;  %v8353_v24 = vpack.c.bf16 %v780_v8, %v779_v7  ;;  %v883_v3 = vld [vmem:[%s9610_s12 + $0x11a0] sm:$0xff]  ;;  %v8399_v7 = vpack.c.bf16 %v852_v43, %v851_v62 }
 0x100   : > { %8334 = vmatpush3.bf16.msra.mxu0 %v8333_v18  ;;  %v8385_v26 = vpack.c.bf16 %v812_v12, %v811_v9  ;;  %v884_v4 = vld [vmem:[%s9610_s12 + $0x11a8] sm:$0xff]  ;;  %v835_v8 = vld [vmem:[%s9610_s12 + $0x1020] sm:$0xff]  ;;  %v853_v12 = vld [vmem:[%s9610_s12 + $0x10b0] sm:$0xff] }
 0x101   : > { %8366 = vmatpush3.bf16.msra.mxu1 %v8365_v19  ;;  %8336 = vmatprep.subr.bf16.mxu0 %v8335_v21  ;;  %v829_v19 = vld [vmem:[%s9610_s12 + $0xff0] sm:$0xff]  ;;  %v830_v21 = vld [vmem:[%s9610_s12 + $0xff8] sm:$0xff]  ;;  %v867_v9 = vld [vmem:[%s9610_s12 + $0x1120] sm:$0xff] }
 0x102   : > { %8368 = vmatprep.subr.bf16.mxu1 %v8367_v25  ;;  %v304_v25 = vld [vmem:[%s9605_s8 + $0x40] sm:$0xff]  ;;  %v888_v23 = vld [vmem:[%s9610_s12 + $0x11c8] sm:$0xff] }
 0x103   : > { %v1934_v38 = vcombine.high %v304_v25, %v304_v25  ;;  %v10236_v49 = vrot.slane %v304_v25, %v9666_v14  ;;  %v870_v25 = vld [vmem:[%s9610_s12 + $0x1138] sm:$0xff]  ;;  %v875_v62 = vld [vmem:[%s9610_s12 + $0x1160] sm:$0xff] }
 0x104   : > { %8338 = vmatpush3.bf16.msra.mxu0 %v8337_v29  ;;  %v813_v29 = vld [vmem:[%s9610_s12 + $0xf70] sm:$0xff] }
 0x105   : > { %8370 = vmatpush3.bf16.msra.mxu1 %v8369_v30  ;;  %8340 = vmatprep.subr.bf16.mxu0 %v8339_v31  ;;  %v8387_v30 = vpack.c.bf16 %v830_v21, %v829_v19  ;;  %v814_v31 = vld [vmem:[%s9610_s12 + $0xf78] sm:$0xff]  ;;  %v10241_v52 = vrot.slane %v1934_v38, %v9666_v14  ;;  %v1949_v0 = vcombine.high %v10236_v49, %v10236_v49  ;;  %v837_v21 = vld [vmem:[%s9610_s12 + $0x1030] sm:$0xff] }
 0x106   : > { %8372 = vmatprep.subr.bf16.mxu1 %v8371_v36  ;;  %v879_v36 = vld [vmem:[%s9610_s12 + $0x1180] sm:$0xff]  ;;  %v8389_v40 = vpack.c.bf16 %v814_v31, %v813_v29  ;;  %v8403_v19 = vpack.c.bf16 %v854_v13, %v853_v12  ;;  %v857_v38 = vld [vmem:[%s9610_s12 + $0x10d0] sm:$0xff] }
 0x107   : > { %v8423_v55 = vpack.c.bf16 %v880_v37, %v879_v36  ;;  %v839_v31 = vld [vmem:[%s9610_s12 + $0x1040] sm:$0xff]  ;;  %v872_v37 = vld [vmem:[%s9610_s12 + $0x1148] sm:$0xff] }
 0x108   : > { %8342 = vmatpush3.bf16.msra.mxu0 %v8341_v46  ;;  %v831_v46 = vld [vmem:[%s9610_s12 + $0x1000] sm:$0xff] }
 0x109   : > { %8374 = vmatpush3.bf16.msra.mxu1 %v8373_v44  ;;  %8344 = vmatprep.subr.bf16.mxu0 %v8343_v45  ;;  %v832_v44 = vld [vmem:[%s9610_s12 + $0x1008] sm:$0xff]  ;;  %v863_v45 = vld [vmem:[%s9610_s12 + $0x1100] sm:$0xff] }
 0x10a   : > { %8376 = vmatprep.subr.bf16.mxu1 %v8375_v42  ;;  %v850_v42 = vld [vmem:[%s9610_s12 + $0x1098] sm:$0xff]  ;;  %v8393_v53 = vpack.c.bf16 %v832_v44, %v831_v46  ;;  %v8409_v46 = vpack.c.bf16 %v840_v32, %v839_v31  ;;  %v8441_v44 = vpack.c.bf16 %v872_v37, %v871_v33  ;;  %v927_v31 = vld [vmem:[%s9610_s12 + $0x1300] sm:$0xff]  ;;  %v928_v33 = vld [vmem:[%s9610_s12 + $0x1308] sm:$0xff] }
 0x10b   : > { %v914_v37 = vld [vmem:[%s9610_s12 + $0x1298] sm:$0xff] }
 0x10c   : > { %8346 = vmatpush3.bf16.msra.mxu0 %v8345_v54  ;;  %v8425_v54 = vpack.c.bf16 %v864_v47, %v863_v45  ;;  %v842_v47 = vld [vmem:[%s9610_s12 + $0x1058] sm:$0xff] }
 0x10d   : > { %8378 = vmatpush3.bf16.msra.mxu1 %v8377_v56  ;;  %8348 = vmatprep.subr.bf16.mxu0 %v8347_v34  ;;  %v8395_v56 = vpack.c.bf16 %v850_v42, %v849_v48  ;;  %v833_v34 = vld [vmem:[%s9610_s12 + $0x1010] sm:$0xff] }
 0x10e   : > { %v6241_v10 = vpop.f32.mrb[0].mxu0  ;;  %8380 = vmatprep.subr.bf16.mxu1 %v8379_v61  ;;  %v866_v61 = vld [vmem:[%s9610_s12 + $0x1118] sm:$0xff]  ;;  %v873_v48 = vld [vmem:[%s9610_s12 + $0x1150] sm:$0xff] }
 0x10f   : > { %v6276_v16 = vpop.f32.mrb[0].mxu1  ;;  %v6242_v18 = vpop.f32.mrb[1].mxu0 }
 0x110   : > { %v6243_v22 = vadd.f32 %v6242_v18, %v6241_v10  ;;  %v6277_v17 = vpop.f32.mrb[1].mxu1  ;;  %8350 = vmatpush3.bf16.msra.mxu0 %v8349_v63  ;;  %v1950_v63 = vcombine.high %v10241_v52, %v10241_v52  ;;  %v8431_v10 = vpack.c.bf16 %v884_v4, %v883_v3  ;;  %v876_v3 = vld [vmem:[%s9610_s12 + $0x1168] sm:$0xff]  ;;  %v861_v4 = vld [vmem:[%s9610_s12 + $0x10f0] sm:$0xff] }
 0x111   : > { %v6278_v20 = vadd.f32 %v6277_v17, %v6276_v16  ;;  %8382 = vmatpush3.bf16.msra.mxu1 %v8381_v5  ;;  %8352 = vmatprep.subr.bf16.mxu0 %v8351_v6  ;;  %v8397_v5 = vpack.c.bf16 %v834_v57, %v833_v34  ;;  %v8429_v6 = vpack.c.bf16 %v866_v61, %v865_v58  ;;  %v869_v17 = vld [vmem:[%s9610_s12 + $0x1130] sm:$0xff]  ;;  %v844_v61 = vld [vmem:[%s9610_s12 + $0x1068] sm:$0xff] }
 0x112   : > { %8384 = vmatprep.subr.bf16.mxu1 %v8383_v11  ;;  %v868_v11 = vld [vmem:[%s9610_s12 + $0x1128] sm:$0xff]  ;;  %v8437_v29 = vpack.c.bf16 %v870_v25, %v869_v17  ;;  %v8445_v57 = vpack.c.bf16 %v874_v50, %v873_v48  ;;  %v8449_v13 = vpack.c.bf16 %v876_v3, %v875_v62  ;;  %v911_v17 = vld [vmem:[%s9610_s12 + $0x1280] sm:$0xff]  ;;  %v929_v48 = vld [vmem:[%s9610_s12 + $0x1310] sm:$0xff] }
 0x113   : > { %v10225_v35 = vadd.f32 %v6278_v20, %v6243_v22  ;;  %v8433_v18 = vpack.c.bf16 %v868_v11, %v867_v9  ;;  %v838_v22 = vld [vmem:[%s9610_s12 + $0x1038] sm:$0xff]  ;;  %v855_v20 = vld [vmem:[%s9610_s12 + $0x10c0] sm:$0xff]  ;;  %v305_v11 = vld [vmem:[%s9605_s8 + $0x48] sm:$0xff] }
 0x114   : > { %8354 = vmatpush3.bf16.msra.mxu0 %v8353_v24  ;;  %v8405_v28 = vpack.c.bf16 %v838_v22, %v837_v21  ;;  %v878_v22 = vld [vmem:[%s9610_s12 + $0x1178] sm:$0xff]  ;;  %v943_v25 = vld [vmem:[%s9610_s12 + $0x1380] sm:$0xff]  ;;  %v932_v3 = vld [vmem:[%s9610_s12 + $0x1328] sm:$0xff] }
 0x115   : > { %8386 = vmatpush3.bf16.msra.mxu1 %v8385_v26  ;;  %8356 = vmatprep.subr.bf16.mxu0 %v8355_v27  ;;  %v856_v26 = vld [vmem:[%s9610_s12 + $0x10c8] sm:$0xff]  ;;  %v887_v27 = vld [vmem:[%s9610_s12 + $0x11c0] sm:$0xff]  ;;  %v930_v50 = vld [vmem:[%s9610_s12 + $0x1318] sm:$0xff] }
 0x116   : > { %8388 = vmatprep.subr.bf16.mxu1 %v8387_v30  ;;  %v8407_v30 = vpack.c.bf16 %v856_v26, %v855_v20  ;;  %v8439_v36 = vpack.c.bf16 %v888_v23, %v887_v27  ;;  %v944_v20 = vld [vmem:[%s9610_s12 + $0x1388] sm:$0xff]  ;;  %v1951_v26 = vcombine.high %v305_v11, %v305_v11  ;;  %v899_v62 = vld [vmem:[%s9610_s12 + $0x1220] sm:$0xff] }
 0x117   : > { %v8487_v32 = vpack.c.bf16 %v944_v20, %v943_v25  ;;  %v936_v20 = vld [vmem:[%s9610_s12 + $0x1348] sm:$0xff] }
 0x118   : > { %8358 = vmatpush3.bf16.msra.mxu0 %v8357_v39  ;;  %v858_v39 = vld [vmem:[%s9610_s12 + $0x10d8] sm:$0xff] }
 0x119   : > { %8390 = vmatpush3.bf16.msra.mxu1 %v8389_v40  ;;  %8392 = vmatprep.subr.bf16.mxu0 %v8391_v41  ;;  %v889_v40 = vld [vmem:[%s9610_s12 + $0x11d0] sm:$0xff]  ;;  %v890_v41 = vld [vmem:[%s9610_s12 + $0x11d8] sm:$0xff]  ;;  %v8411_v45 = vpack.c.bf16 %v858_v39, %v857_v38  ;;  %v10316_v38 = vrot.slane %v305_v11, %v9666_v14 }
 0x11a   : > { %8424 = vmatprep.subr.bf16.mxu1 %v8423_v55  ;;  %v841_v55 = vld [vmem:[%s9610_s12 + $0x1050] sm:$0xff]  ;;  %v8443_v42 = vpack.c.bf16 %v890_v41, %v889_v40  ;;  %v946_v40 = vld [vmem:[%s9610_s12 + $0x1398] sm:$0xff]  ;;  %v10321_v41 = vrot.slane %v1951_v26, %v9666_v14 }
 0x11b   : > { %3324 = vmatmul.mubr.f32.vlgmr.msra.gmra.mrb[14].mxu0 %v10157_v60  ;;  %v836_v60 = vld [vmem:[%s9610_s12 + $0x1028] sm:$0xff]  ;;  %v8413_v34 = vpack.c.bf16 %v842_v47, %v841_v55  ;;  %v945_v39 = vld [vmem:[%s9610_s12 + $0x1390] sm:$0xff]  ;;  %v898_v47 = vld [vmem:[%s9610_s12 + $0x1218] sm:$0xff] }
 0x11c   : > { %8394 = vmatpush3.bf16.msra.mxu0 %v8393_v53  ;;  %3394 = vmatmul.mubr.f32.vlgmr.msra.gmra.mrb[14].mxu1 %v10162_v2  ;;  %v885_v2 = vld [vmem:[%s9610_s12 + $0x11b0] sm:$0xff]  ;;  %v8401_v16 = vpack.c.bf16 %v836_v60, %v835_v8  ;;  %v860_v53 = vld [vmem:[%s9610_s12 + $0x10e8] sm:$0xff]  ;;  %v894_v8 = vld [vmem:[%s9610_s12 + $0x11f8] sm:$0xff] }
 0x11d   : > { %8426 = vmatpush3.bf16.msra.mxu1 %v8425_v54  ;;  %8396 = vmatprep.subr.bf16.mxu0 %v8395_v56  ;;  %v8435_v24 = vpack.c.bf16 %v886_v15, %v885_v2  ;;  %v891_v54 = vld [vmem:[%s9610_s12 + $0x11e0] sm:$0xff]  ;;  %v892_v56 = vld [vmem:[%s9610_s12 + $0x11e8] sm:$0xff]  ;;  %v8415_v58 = vpack.c.bf16 %v860_v53, %v859_v51  ;;  %v845_v15 = vld [vmem:[%s9610_s12 + $0x1070] sm:$0xff] }
 0x11e   : > { %8428 = vmatprep.subr.bf16.mxu1 %v8427_v59  ;;  %3463 = vmatprep.mubr.f32.mxu0 %v1949_v0  ;;  %v843_v59 = vld [vmem:[%s9610_s12 + $0x1060] sm:$0xff]  ;;  %v8447_v0 = vpack.c.bf16 %v892_v56, %v891_v54  ;;  %v897_v55 = vld [vmem:[%s9610_s12 + $0x1210] sm:$0xff]  ;;  %v916_v53 = vld [vmem:[%s9610_s12 + $0x12a8] sm:$0xff]  ;;  %v1966_v54 = vcombine.high %v10316_v38, %v10316_v38 }
 0x11f   : > { %3533 = vmatprep.mubr.f32.mxu1 %v1950_v63  ;;  %v862_v63 = vld [vmem:[%s9610_s12 + $0x10f8] sm:$0xff]  ;;  %v915_v51 = vld [vmem:[%s9610_s12 + $0x12a0] sm:$0xff]  ;;  %v921_v26 = vld [vmem:[%s9610_s12 + $0x12d0] sm:$0xff] }
 0x120   : > { %8398 = vmatpush3.bf16.msra.mxu0 %v8397_v5  ;;  %v8419_v2 = vpack.c.bf16 %v862_v63, %v861_v4  ;;  %v947_v56 = vld [vmem:[%s9610_s12 + $0x13a0] sm:$0xff]  ;;  %v917_v4 = vld [vmem:[%s9610_s12 + $0x12b0] sm:$0xff]  ;;  %v918_v63 = vld [vmem:[%s9610_s12 + $0x12b8] sm:$0xff] }
 0x121   : > { %8430 = vmatpush3.bf16.msra.mxu1 %v8429_v6  ;;  %8400 = vmatprep.subr.bf16.mxu0 %v8399_v7  ;;  %v893_v7 = vld [vmem:[%s9610_s12 + $0x11f0] sm:$0xff] }
 0x122   : > { %8432 = vmatprep.subr.bf16.mxu1 %v8431_v10  ;;  %v8417_v10 = vpack.c.bf16 %v844_v61, %v843_v59  ;;  %v8451_v21 = vpack.c.bf16 %v894_v8, %v893_v7  ;;  %v8493_v59 = vpack.c.bf16 %v930_v50, %v929_v48  ;;  %v8463_v61 = vpack.c.bf16 %v916_v53, %v915_v51  ;;  %v908_v50 = vld [vmem:[%s9610_s12 + $0x1268] sm:$0xff]  ;;  %v939_v51 = vld [vmem:[%s9610_s12 + $0x1360] sm:$0xff] }
 0x123   : > { %v8467_v8 = vpack.c.bf16 %v918_v63, %v917_v4 }
 0x124   : > { %8402 = vmatpush3.bf16.msra.mxu0 %v8401_v16  ;;  %v846_v16 = vld [vmem:[%s9610_s12 + $0x1078] sm:$0xff] }
 0x125   : > { %8434 = vmatpush3.bf16.msra.mxu1 %v8433_v18  ;;  %8404 = vmatprep.subr.bf16.mxu0 %v8403_v19  ;;  %v877_v18 = vld [vmem:[%s9610_s12 + $0x1170] sm:$0xff] }
 0x126   : > { %8436 = vmatprep.subr.bf16.mxu1 %v8435_v24  ;;  %v912_v24 = vld [vmem:[%s9610_s12 + $0x1288] sm:$0xff]  ;;  %v8453_v23 = vpack.c.bf16 %v878_v22, %v877_v18  ;;  %v903_v22 = vld [vmem:[%s9610_s12 + $0x1240] sm:$0xff] }
 0x128   : > { %8406 = vmatpush3.bf16.msra.mxu0 %v8405_v28  ;;  %v8455_v28 = vpack.c.bf16 %v912_v24, %v911_v17  ;;  %v904_v17 = vld [vmem:[%s9610_s12 + $0x1248] sm:$0xff]  ;;  %v935_v24 = vld [vmem:[%s9610_s12 + $0x1340] sm:$0xff] }
 0x129   : > { %8438 = vmatpush3.bf16.msra.mxu1 %v8437_v29  ;;  %8408 = vmatprep.subr.bf16.mxu0 %v8407_v30  ;;  %v895_v29 = vld [vmem:[%s9610_s12 + $0x1200] sm:$0xff]  ;;  %v896_v30 = vld [vmem:[%s9610_s12 + $0x1208] sm:$0xff] }
 0x12a   : > { %8440 = vmatprep.subr.bf16.mxu1 %v8439_v36  ;;  %v913_v36 = vld [vmem:[%s9610_s12 + $0x1290] sm:$0xff] }
 0x12c   : > { %8410 = vmatpush3.bf16.msra.mxu0 %v8409_v46  ;;  %v8457_v46 = vpack.c.bf16 %v896_v30, %v895_v29  ;;  %v8473_v29 = vpack.c.bf16 %v904_v17, %v903_v22  ;;  %v8505_v30 = vpack.c.bf16 %v936_v20, %v935_v24  ;;  %v991_v22 = vld [vmem:[%s9610_s12 + $0x1500] sm:$0xff]  ;;  %v992_v24 = vld [vmem:[%s9610_s12 + $0x1508] sm:$0xff]  ;;  %v978_v20 = vld [vmem:[%s9610_s12 + $0x1498] sm:$0xff] }
 0x12d   : > { %8442 = vmatpush3.bf16.msra.mxu1 %v8441_v44  ;;  %8412 = vmatprep.subr.bf16.mxu0 %v8411_v45  ;;  %v8489_v44 = vpack.c.bf16 %v928_v33, %v927_v31  ;;  %v8459_v45 = vpack.c.bf16 %v914_v37, %v913_v36  ;;  %v906_v33 = vld [vmem:[%s9610_s12 + $0x1258] sm:$0xff]  ;;  %v937_v36 = vld [vmem:[%s9610_s12 + $0x1350] sm:$0xff] }
 0x12e   : > { %v6311_v43 = vpop.f32.mrb[2].mxu0  ;;  %8444 = vmatprep.subr.bf16.mxu1 %v8443_v42  ;;  %v8491_v42 = vpack.c.bf16 %v946_v40, %v945_v39  ;;  %v938_v39 = vld [vmem:[%s9610_s12 + $0x1358] sm:$0xff]  ;;  %v923_v40 = vld [vmem:[%s9610_s12 + $0x12e0] sm:$0xff] }
 0x12f   : > { %v6312_v5 = vpop.f32.mrb[3].mxu0  ;;  %v6346_v6 = vpop.f32.mrb[2].mxu1 }
 0x130   : > { %v6313_v60 = vadd.f32 %v6312_v5, %v6311_v43  ;;  %8414 = vmatpush3.bf16.msra.mxu0 %v8413_v34  ;;  %v6347_v9 = vpop.f32.mrb[3].mxu1  ;;  %v948_v34 = vld [vmem:[%s9610_s12 + $0x13a8] sm:$0xff]  ;;  %v931_v43 = vld [vmem:[%s9610_s12 + $0x1320] sm:$0xff]  ;;  %v950_v5 = vld [vmem:[%s9610_s12 + $0x13b8] sm:$0xff] }
 0x131   : > { %v6348_v12 = vadd.f32 %v6347_v9, %v6346_v6  ;;  %8446 = vmatpush3.bf16.msra.mxu1 %v8445_v57  ;;  %8416 = vmatprep.subr.bf16.mxu0 %v8415_v58  ;;  %v1967_v57 = vcombine.high %v10321_v41, %v10321_v41  ;;  %v8461_v58 = vpack.c.bf16 %v898_v47, %v897_v55  ;;  %v902_v9 = vld [vmem:[%s9610_s12 + $0x1238] sm:$0xff] }
 0x132   : > { %v2486_v19 = vadd.f32 %v6313_v60, %v10225_v35  ;;  %8448 = vmatprep.subr.bf16.mxu1 %v8447_v0  ;;  %v8421_v35 = vpack.c.bf16 %v846_v16, %v845_v15  ;;  %v8495_v0 = vpack.c.bf16 %v948_v34, %v947_v56  ;;  %v8497_v7 = vpack.c.bf16 %v932_v3, %v931_v43  ;;  %v901_v60 = vld [vmem:[%s9610_s12 + $0x1230] sm:$0xff]  ;;  %v951_v15 = vld [vmem:[%s9610_s12 + $0x13c0] sm:$0xff]  ;;  %v952_v16 = vld [vmem:[%s9610_s12 + $0x13c8] sm:$0xff] }
 0x133   : > { %v8469_v18 = vpack.c.bf16 %v902_v9, %v901_v60  ;;  %v8503_v25 = vpack.c.bf16 %v952_v16, %v951_v15  ;;  %v8509_v47 = vpack.c.bf16 %v938_v39, %v937_v36  ;;  %v940_v56 = vld [vmem:[%s9610_s12 + $0x1368] sm:$0xff]  ;;  %v925_v34 = vld [vmem:[%s9610_s12 + $0x12f0] sm:$0xff]  ;;  %v942_v9 = vld [vmem:[%s9610_s12 + $0x1378] sm:$0xff] }
 0x134   : > { %v10307_v27 = vadd.f32 %v6348_v12, %v2486_v19  ;;  %8418 = vmatpush3.bf16.msra.mxu0 %v8417_v10  ;;  %v933_v10 = vld [vmem:[%s9610_s12 + $0x1330] sm:$0xff]  ;;  %v934_v12 = vld [vmem:[%s9610_s12 + $0x1338] sm:$0xff]  ;;  %v8513_v63 = vpack.c.bf16 %v940_v56, %v939_v51  ;;  %v963_v51 = vld [vmem:[%s9610_s12 + $0x1420] sm:$0xff] }
 0x135   : > { %8450 = vmatpush3.bf16.msra.mxu1 %v8449_v13  ;;  %8420 = vmatprep.subr.bf16.mxu0 %v8419_v2  ;;  %v919_v13 = vld [vmem:[%s9610_s12 + $0x12c0] sm:$0xff]  ;;  %v920_v2 = vld [vmem:[%s9610_s12 + $0x12c8] sm:$0xff]  ;;  %v8501_v19 = vpack.c.bf16 %v934_v12, %v933_v10  ;;  %v306_v3 = vld [vmem:[%s9605_s8 + $0x50] sm:$0xff] }
 0x136   : > { %8452 = vmatprep.subr.bf16.mxu1 %v8451_v21  ;;  %v8471_v21 = vpack.c.bf16 %v920_v2, %v919_v13  ;;  %v975_v10 = vld [vmem:[%s9610_s12 + $0x1480] sm:$0xff]  ;;  %v1008_v13 = vld [vmem:[%s9610_s12 + $0x1588] sm:$0xff]  ;;  %v1968_v2 = vcombine.high %v306_v3, %v306_v3  ;;  %v993_v36 = vld [vmem:[%s9610_s12 + $0x1510] sm:$0xff] }
 0x137   : > { %v1007_v12 = vld [vmem:[%s9610_s12 + $0x1580] sm:$0xff]  ;;  %v994_v39 = vld [vmem:[%s9610_s12 + $0x1518] sm:$0xff]  ;;  %v996_v56 = vld [vmem:[%s9610_s12 + $0x1528] sm:$0xff] }
 0x138   : > { %8422 = vmatpush3.bf16.msra.mxu0 %v8421_v35  ;;  %v922_v35 = vld [vmem:[%s9610_s12 + $0x12d8] sm:$0xff]  ;;  %v8551_v17 = vpack.c.bf16 %v1008_v13, %v1007_v12  ;;  %v1000_v13 = vld [vmem:[%s9610_s12 + $0x1548] sm:$0xff] }
 0x139   : > { %8454 = vmatpush3.bf16.msra.mxu1 %v8453_v23  ;;  %8456 = vmatprep.subr.bf16.mxu0 %v8455_v28  ;;  %v953_v23 = vld [vmem:[%s9610_s12 + $0x13d0] sm:$0xff]  ;;  %v954_v28 = vld [vmem:[%s9610_s12 + $0x13d8] sm:$0xff]  ;;  %v8475_v31 = vpack.c.bf16 %v922_v35, %v921_v26  ;;  %v10396_v26 = vrot.slane %v306_v3, %v9666_v14 }
 0x13a   : > { %8488 = vmatprep.subr.bf16.mxu1 %v8487_v32  ;;  %v905_v32 = vld [vmem:[%s9610_s12 + $0x1250] sm:$0xff]  ;;  %v8507_v37 = vpack.c.bf16 %v954_v28, %v953_v23  ;;  %v1010_v23 = vld [vmem:[%s9610_s12 + $0x1598] sm:$0xff]  ;;  %v10401_v28 = vrot.slane %v1968_v2, %v9666_v14 }
 0x13b   : > { %3464 = vmatmul.mubr.f32.vlgmr.msra.gmra.mrb[16].mxu0 %v10236_v49  ;;  %v900_v49 = vld [vmem:[%s9610_s12 + $0x1228] sm:$0xff]  ;;  %v8477_v55 = vpack.c.bf16 %v906_v33, %v905_v32  ;;  %v1009_v35 = vld [vmem:[%s9610_s12 + $0x1590] sm:$0xff]  ;;  %v962_v33 = vld [vmem:[%s9610_s12 + $0x1418] sm:$0xff] }
 0x13c   : > { %8458 = vmatpush3.bf16.msra.mxu0 %v8457_v46  ;;  %3534 = vmatmul.mubr.f32.vlgmr.msra.gmra.mrb[16].mxu1 %v10241_v52  ;;  %v949_v52 = vld [vmem:[%s9610_s12 + $0x13b0] sm:$0xff]  ;;  %v8465_v6 = vpack.c.bf16 %v900_v49, %v899_v62  ;;  %v924_v46 = vld [vmem:[%s9610_s12 + $0x12e8] sm:$0xff]  ;;  %v958_v62 = vld [vmem:[%s9610_s12 + $0x13f8] sm:$0xff] }
 0x13d   : > { %8490 = vmatpush3.bf16.msra.mxu1 %v8489_v44  ;;  %8460 = vmatprep.subr.bf16.mxu0 %v8459_v45  ;;  %v8499_v11 = vpack.c.bf16 %v950_v5, %v949_v52  ;;  %v955_v44 = vld [vmem:[%s9610_s12 + $0x13e0] sm:$0xff]  ;;  %v956_v45 = vld [vmem:[%s9610_s12 + $0x13e8] sm:$0xff]  ;;  %v8479_v48 = vpack.c.bf16 %v924_v46, %v923_v40  ;;  %v909_v5 = vld [vmem:[%s9610_s12 + $0x1270] sm:$0xff] }
 0x13e   : > { %8492 = vmatprep.subr.bf16.mxu1 %v8491_v42  ;;  %3603 = vmatprep.mubr.f32.mxu0 %v1966_v54  ;;  %v907_v42 = vld [vmem:[%s9610_s12 + $0x1260] sm:$0xff]  ;;  %v8511_v54 = vpack.c.bf16 %v956_v45, %v955_v44  ;;  %v961_v32 = vld [vmem:[%s9610_s12 + $0x1410] sm:$0xff]  ;;  %v980_v46 = vld [vmem:[%s9610_s12 + $0x14a8] sm:$0xff]  ;;  %v1983_v44 = vcombine.high %v10396_v26, %v10396_v26 }
 0x13f   : > { %3673 = vmatprep.mubr.f32.mxu1 %v1967_v57  ;;  %v926_v57 = vld [vmem:[%s9610_s12 + $0x12f8] sm:$0xff]  ;;  %v979_v40 = vld [vmem:[%s9610_s12 + $0x14a0] sm:$0xff]  ;;  %v985_v2 = vld [vmem:[%s9610_s12 + $0x14d0] sm:$0xff] }
 0x140   : > { %8462 = vmatpush3.bf16.msra.mxu0 %v8461_v58  ;;  %v8483_v52 = vpack.c.bf16 %v926_v57, %v925_v34  ;;  %v1011_v45 = vld [vmem:[%s9610_s12 + $0x15a0] sm:$0xff]  ;;  %v981_v34 = vld [vmem:[%s9610_s12 + $0x14b0] sm:$0xff]  ;;  %v982_v57 = vld [vmem:[%s9610_s12 + $0x14b8] sm:$0xff] }
 0x141   : > { %8494 = vmatpush3.bf16.msra.mxu1 %v8493_v59  ;;  %8464 = vmatprep.subr.bf16.mxu0 %v8463_v61  ;;  %v957_v61 = vld [vmem:[%s9610_s12 + $0x13f0] sm:$0xff] }
 0x142   : > { %8496 = vmatprep.subr.bf16.mxu1 %v8495_v0  ;;  %v8481_v0 = vpack.c.bf16 %v908_v50, %v907_v42  ;;  %v8515_v60 = vpack.c.bf16 %v958_v62, %v957_v61  ;;  %v8557_v42 = vpack.c.bf16 %v994_v39, %v993_v36  ;;  %v8527_v50 = vpack.c.bf16 %v980_v46, %v979_v40  ;;  %v972_v39 = vld [vmem:[%s9610_s12 + $0x1468] sm:$0xff]  ;;  %v1003_v40 = vld [vmem:[%s9610_s12 + $0x1560] sm:$0xff] }
 0x143   : > { %v8531_v62 = vpack.c.bf16 %v982_v57, %v981_v34 }
 0x144   : > { %8466 = vmatpush3.bf16.msra.mxu0 %v8465_v6  ;;  %v910_v6 = vld [vmem:[%s9610_s12 + $0x1278] sm:$0xff] }
 0x145   : > { %8498 = vmatpush3.bf16.msra.mxu1 %v8497_v7  ;;  %8468 = vmatprep.subr.bf16.mxu0 %v8467_v8  ;;  %v941_v7 = vld [vmem:[%s9610_s12 + $0x1370] sm:$0xff] }
 0x146   : > { %8500 = vmatprep.subr.bf16.mxu1 %v8499_v11  ;;  %v976_v11 = vld [vmem:[%s9610_s12 + $0x1488] sm:$0xff]  ;;  %v8517_v16 = vpack.c.bf16 %v942_v9, %v941_v7  ;;  %v967_v9 = vld [vmem:[%s9610_s12 + $0x1440] sm:$0xff] }
 0x148   : > { %8470 = vmatpush3.bf16.msra.mxu0 %v8469_v18  ;;  %v8519_v18 = vpack.c.bf16 %v976_v11, %v975_v10  ;;  %v968_v10 = vld [vmem:[%s9610_s12 + $0x1448] sm:$0xff]  ;;  %v999_v11 = vld [vmem:[%s9610_s12 + $0x1540] sm:$0xff] }
 0x149   : > { %8502 = vmatpush3.bf16.msra.mxu1 %v8501_v19  ;;  %8472 = vmatprep.subr.bf16.mxu0 %v8471_v21  ;;  %v959_v19 = vld [vmem:[%s9610_s12 + $0x1400] sm:$0xff]  ;;  %v960_v21 = vld [vmem:[%s9610_s12 + $0x1408] sm:$0xff] }
 0x14a   : > { %8504 = vmatprep.subr.bf16.mxu1 %v8503_v25  ;;  %v977_v25 = vld [vmem:[%s9610_s12 + $0x1490] sm:$0xff] }
 0x14c   : > { %8474 = vmatpush3.bf16.msra.mxu0 %v8473_v29  ;;  %v8521_v29 = vpack.c.bf16 %v960_v21, %v959_v19  ;;  %v8537_v19 = vpack.c.bf16 %v968_v10, %v967_v9  ;;  %v8569_v21 = vpack.c.bf16 %v1000_v13, %v999_v11  ;;  %v1055_v9 = vld [vmem:[%s9610_s12 + $0x1700] sm:$0xff]  ;;  %v1056_v11 = vld [vmem:[%s9610_s12 + $0x1708] sm:$0xff]  ;;  %v1042_v13 = vld [vmem:[%s9610_s12 + $0x1698] sm:$0xff] }
 0x14d   : > { %8506 = vmatpush3.bf16.msra.mxu1 %v8505_v30  ;;  %8476 = vmatprep.subr.bf16.mxu0 %v8475_v31  ;;  %v8553_v30 = vpack.c.bf16 %v992_v24, %v991_v22  ;;  %v8523_v31 = vpack.c.bf16 %v978_v20, %v977_v25  ;;  %v970_v24 = vld [vmem:[%s9610_s12 + $0x1458] sm:$0xff]  ;;  %v1001_v25 = vld [vmem:[%s9610_s12 + $0x1550] sm:$0xff] }
 0x14e   : > { %v6381_v53 = vpop.f32.mrb[4].mxu0  ;;  %8508 = vmatprep.subr.bf16.mxu1 %v8507_v37  ;;  %v8555_v37 = vpack.c.bf16 %v1010_v23, %v1009_v35  ;;  %v1002_v35 = vld [vmem:[%s9610_s12 + $0x1558] sm:$0xff]  ;;  %v987_v23 = vld [vmem:[%s9610_s12 + $0x14e0] sm:$0xff] }
 0x14f   : > { %v6382_v58 = vpop.f32.mrb[5].mxu0  ;;  %v6416_v59 = vpop.f32.mrb[4].mxu1 }
 0x150   : > { %v6383_v49 = vadd.f32 %v6382_v58, %v6381_v53  ;;  %8478 = vmatpush3.bf16.msra.mxu0 %v8477_v55  ;;  %v6417_v43 = vpop.f32.mrb[5].mxu1  ;;  %v1012_v55 = vld [vmem:[%s9610_s12 + $0x15a8] sm:$0xff]  ;;  %v995_v53 = vld [vmem:[%s9610_s12 + $0x1520] sm:$0xff]  ;;  %v1014_v58 = vld [vmem:[%s9610_s12 + $0x15b8] sm:$0xff] }
 0x151   : > { %v6418_v4 = vadd.f32 %v6417_v43, %v6416_v59  ;;  %8510 = vmatpush3.bf16.msra.mxu1 %v8509_v47  ;;  %8480 = vmatprep.subr.bf16.mxu0 %v8479_v48  ;;  %v1984_v47 = vcombine.high %v10401_v28, %v10401_v28  ;;  %v8525_v48 = vpack.c.bf16 %v962_v33, %v961_v32  ;;  %v966_v43 = vld [vmem:[%s9610_s12 + $0x1438] sm:$0xff] }
 0x152   : > { %v2626_v8 = vadd.f32 %v6383_v49, %v10307_v27  ;;  %8512 = vmatprep.subr.bf16.mxu1 %v8511_v54  ;;  %v8485_v27 = vpack.c.bf16 %v910_v6, %v909_v5  ;;  %v8559_v54 = vpack.c.bf16 %v1012_v55, %v1011_v45  ;;  %v8561_v61 = vpack.c.bf16 %v996_v56, %v995_v53  ;;  %v965_v49 = vld [vmem:[%s9610_s12 + $0x1430] sm:$0xff]  ;;  %v1015_v5 = vld [vmem:[%s9610_s12 + $0x15c0] sm:$0xff]  ;;  %v1016_v6 = vld [vmem:[%s9610_s12 + $0x15c8] sm:$0xff] }
 0x153   : > { %v8533_v7 = vpack.c.bf16 %v966_v43, %v965_v49  ;;  %v8567_v12 = vpack.c.bf16 %v1016_v6, %v1015_v5  ;;  %v8573_v33 = vpack.c.bf16 %v1002_v35, %v1001_v25  ;;  %v1004_v45 = vld [vmem:[%s9610_s12 + $0x1568] sm:$0xff]  ;;  %v989_v55 = vld [vmem:[%s9610_s12 + $0x14f0] sm:$0xff]  ;;  %v307_v56 = vld [vmem:[%s9605_s8 + $0x58] sm:$0xff] }
 0x154   : > { %v10387_v15 = vadd.f32 %v6418_v4, %v2626_v8  ;;  %8482 = vmatpush3.bf16.msra.mxu0 %v8481_v0  ;;  %v997_v0 = vld [vmem:[%s9610_s12 + $0x1530] sm:$0xff]  ;;  %v998_v4 = vld [vmem:[%s9610_s12 + $0x1538] sm:$0xff]  ;;  %v8577_v57 = vpack.c.bf16 %v1004_v45, %v1003_v40  ;;  %v1027_v40 = vld [vmem:[%s9610_s12 + $0x1620] sm:$0xff] }
 0x155   : > { %8514 = vmatpush3.bf16.msra.mxu1 %v8513_v63  ;;  %8484 = vmatprep.subr.bf16.mxu0 %v8483_v52  ;;  %v983_v63 = vld [vmem:[%s9610_s12 + $0x14c0] sm:$0xff]  ;;  %v984_v52 = vld [vmem:[%s9610_s12 + $0x14c8] sm:$0xff]  ;;  %v8565_v8 = vpack.c.bf16 %v998_v4, %v997_v0  ;;  %v1006_v43 = vld [vmem:[%s9610_s12 + $0x1578] sm:$0xff] }
 0x156   : > { %8516 = vmatprep.subr.bf16.mxu1 %v8515_v60  ;;  %v8535_v60 = vpack.c.bf16 %v984_v52, %v983_v63  ;;  %v1039_v0 = vld [vmem:[%s9610_s12 + $0x1680] sm:$0xff]  ;;  %v1072_v63 = vld [vmem:[%s9610_s12 + $0x1788] sm:$0xff]  ;;  %v1985_v52 = vcombine.high %v307_v56, %v307_v56  ;;  %v1057_v25 = vld [vmem:[%s9610_s12 + $0x1710] sm:$0xff] }
 0x157   : > { %v1071_v4 = vld [vmem:[%s9610_s12 + $0x1780] sm:$0xff]  ;;  %v1058_v35 = vld [vmem:[%s9610_s12 + $0x1718] sm:$0xff]  ;;  %v1060_v45 = vld [vmem:[%s9610_s12 + $0x1728] sm:$0xff] }
 0x158   : > { %8486 = vmatpush3.bf16.msra.mxu0 %v8485_v27  ;;  %v986_v27 = vld [vmem:[%s9610_s12 + $0x14d8] sm:$0xff]  ;;  %v8615_v10 = vpack.c.bf16 %v1072_v63, %v1071_v4  ;;  %v1064_v63 = vld [vmem:[%s9610_s12 + $0x1748] sm:$0xff] }
 0x159   : > { %8518 = vmatpush3.bf16.msra.mxu1 %v8517_v16  ;;  %8520 = vmatprep.subr.bf16.mxu0 %v8519_v18  ;;  %v1017_v16 = vld [vmem:[%s9610_s12 + $0x15d0] sm:$0xff]  ;;  %v1018_v18 = vld [vmem:[%s9610_s12 + $0x15d8] sm:$0xff]  ;;  %v8539_v22 = vpack.c.bf16 %v986_v27, %v985_v2  ;;  %v10476_v2 = vrot.slane %v307_v56, %v9666_v14 }
 0x15a   : > { %8552 = vmatprep.subr.bf16.mxu1 %v8551_v17  ;;  %v969_v17 = vld [vmem:[%s9610_s12 + $0x1450] sm:$0xff]  ;;  %v8571_v20 = vpack.c.bf16 %v1018_v18, %v1017_v16  ;;  %v1074_v16 = vld [vmem:[%s9610_s12 + $0x1798] sm:$0xff]  ;;  %v10481_v18 = vrot.slane %v1985_v52, %v9666_v14 }
 0x15b   : > { %3604 = vmatmul.mubr.f32.vlgmr.msra.gmra.mrb[18].mxu0 %v10316_v38  ;;  %v964_v38 = vld [vmem:[%s9610_s12 + $0x1428] sm:$0xff]  ;;  %v8541_v32 = vpack.c.bf16 %v970_v24, %v969_v17  ;;  %v1073_v27 = vld [vmem:[%s9610_s12 + $0x1790] sm:$0xff]  ;;  %v1026_v24 = vld [vmem:[%s9610_s12 + $0x1618] sm:$0xff] }
 0x15c   : > { %8522 = vmatpush3.bf16.msra.mxu0 %v8521_v29  ;;  %3674 = vmatmul.mubr.f32.vlgmr.msra.gmra.mrb[18].mxu1 %v10321_v41  ;;  %v1013_v41 = vld [vmem:[%s9610_s12 + $0x15b0] sm:$0xff]  ;;  %v8529_v59 = vpack.c.bf16 %v964_v38, %v963_v51  ;;  %v988_v29 = vld [vmem:[%s9610_s12 + $0x14e8] sm:$0xff]  ;;  %v1022_v51 = vld [vmem:[%s9610_s12 + $0x15f8] sm:$0xff] }
 0x15d   : > { %8554 = vmatpush3.bf16.msra.mxu1 %v8553_v30  ;;  %8524 = vmatprep.subr.bf16.mxu0 %v8523_v31  ;;  %v8563_v3 = vpack.c.bf16 %v1014_v58, %v1013_v41  ;;  %v1019_v30 = vld [vmem:[%s9610_s12 + $0x15e0] sm:$0xff]  ;;  %v1020_v31 = vld [vmem:[%s9610_s12 + $0x15e8] sm:$0xff]  ;;  %v8543_v36 = vpack.c.bf16 %v988_v29, %v987_v23  ;;  %v973_v58 = vld [vmem:[%s9610_s12 + $0x1470] sm:$0xff] }
 0x15e   : > { %8556 = vmatprep.subr.bf16.mxu1 %v8555_v37  ;;  %3743 = vmatprep.mubr.f32.mxu0 %v1983_v44  ;;  %v971_v37 = vld [vmem:[%s9610_s12 + $0x1460] sm:$0xff]  ;;  %v8575_v44 = vpack.c.bf16 %v1020_v31, %v1019_v30  ;;  %v1025_v17 = vld [vmem:[%s9610_s12 + $0x1610] sm:$0xff]  ;;  %v1044_v29 = vld [vmem:[%s9610_s12 + $0x16a8] sm:$0xff]  ;;  %v2000_v30 = vcombine.high %v10476_v2, %v10476_v2 }
 0x15f   : > { %3813 = vmatprep.mubr.f32.mxu1 %v1984_v47  ;;  %v990_v47 = vld [vmem:[%s9610_s12 + $0x14f8] sm:$0xff]  ;;  %v1043_v23 = vld [vmem:[%s9610_s12 + $0x16a0] sm:$0xff]  ;;  %v1049_v52 = vld [vmem:[%s9610_s12 + $0x16d0] sm:$0xff] }
 0x160   : > { %8526 = vmatpush3.bf16.msra.mxu0 %v8525_v48  ;;  %v8547_v41 = vpack.c.bf16 %v990_v47, %v989_v55  ;;  %v1075_v31 = vld [vmem:[%s9610_s12 + $0x17a0] sm:$0xff]  ;;  %v1045_v55 = vld [vmem:[%s9610_s12 + $0x16b0] sm:$0xff]  ;;  %v1046_v47 = vld [vmem:[%s9610_s12 + $0x16b8] sm:$0xff] }
 0x161   : > { %8558 = vmatpush3.bf16.msra.mxu1 %v8557_v42  ;;  %8528 = vmatprep.subr.bf16.mxu0 %v8527_v50  ;;  %v1021_v50 = vld [vmem:[%s9610_s12 + $0x15f0] sm:$0xff] }
 0x162   : > { %8560 = vmatprep.subr.bf16.mxu1 %v8559_v54  ;;  %v8545_v54 = vpack.c.bf16 %v972_v39, %v971_v37  ;;  %v8579_v49 = vpack.c.bf16 %v1022_v51, %v1021_v50  ;;  %v8621_v37 = vpack.c.bf16 %v1058_v35, %v1057_v25  ;;  %v8591_v39 = vpack.c.bf16 %v1044_v29, %v1043_v23  ;;  %v1036_v35 = vld [vmem:[%s9610_s12 + $0x1668] sm:$0xff]  ;;  %v1067_v23 = vld [vmem:[%s9610_s12 + $0x1760] sm:$0xff] }
 0x163   : > { %v8595_v51 = vpack.c.bf16 %v1046_v47, %v1045_v55 }
 0x164   : > { %8530 = vmatpush3.bf16.msra.mxu0 %v8529_v59  ;;  %v974_v59 = vld [vmem:[%s9610_s12 + $0x1478] sm:$0xff] }
 0x165   : > { %8562 = vmatpush3.bf16.msra.mxu1 %v8561_v61  ;;  %8532 = vmatprep.subr.bf16.mxu0 %v8531_v62  ;;  %v1005_v61 = vld [vmem:[%s9610_s12 + $0x1570] sm:$0xff] }
 0x166   : > { %8564 = vmatprep.subr.bf16.mxu1 %v8563_v3  ;;  %v1040_v3 = vld [vmem:[%s9610_s12 + $0x1688] sm:$0xff]  ;;  %v8581_v6 = vpack.c.bf16 %v1006_v43, %v1005_v61  ;;  %v1031_v43 = vld [vmem:[%s9610_s12 + $0x1640] sm:$0xff] }
 0x168   : > { %8534 = vmatpush3.bf16.msra.mxu0 %v8533_v7  ;;  %v8583_v7 = vpack.c.bf16 %v1040_v3, %v1039_v0  ;;  %v1032_v0 = vld [vmem:[%s9610_s12 + $0x1648] sm:$0xff]  ;;  %v1063_v3 = vld [vmem:[%s9610_s12 + $0x1740] sm:$0xff] }
 0x169   : > { %8566 = vmatpush3.bf16.msra.mxu1 %v8565_v8  ;;  %8536 = vmatprep.subr.bf16.mxu0 %v8535_v60  ;;  %v1023_v8 = vld [vmem:[%s9610_s12 + $0x1600] sm:$0xff]  ;;  %v1024_v60 = vld [vmem:[%s9610_s12 + $0x1608] sm:$0xff] }
 0x16a   : > { %8568 = vmatprep.subr.bf16.mxu1 %v8567_v12  ;;  %v1041_v12 = vld [vmem:[%s9610_s12 + $0x1690] sm:$0xff] }
 0x16c   : > { %8538 = vmatpush3.bf16.msra.mxu0 %v8537_v19  ;;  %v8585_v19 = vpack.c.bf16 %v1024_v60, %v1023_v8  ;;  %v8601_v8 = vpack.c.bf16 %v1032_v0, %v1031_v43  ;;  %v8633_v60 = vpack.c.bf16 %v1064_v63, %v1063_v3  ;;  %v1119_v43 = vld [vmem:[%s9610_s12 + $0x1900] sm:$0xff]  ;;  %v1120_v3 = vld [vmem:[%s9610_s12 + $0x1908] sm:$0xff]  ;;  %v1106_v63 = vld [vmem:[%s9610_s12 + $0x1898] sm:$0xff] }
 0x16d   : > { %8570 = vmatpush3.bf16.msra.mxu1 %v8569_v21  ;;  %8540 = vmatprep.subr.bf16.mxu0 %v8539_v22  ;;  %v8617_v21 = vpack.c.bf16 %v1056_v11, %v1055_v9  ;;  %v8587_v22 = vpack.c.bf16 %v1042_v13, %v1041_v12  ;;  %v1034_v11 = vld [vmem:[%s9610_s12 + $0x1658] sm:$0xff]  ;;  %v1065_v12 = vld [vmem:[%s9610_s12 + $0x1750] sm:$0xff] }
 0x16e   : > { %v6451_v46 = vpop.f32.mrb[6].mxu0  ;;  %8572 = vmatprep.subr.bf16.mxu1 %v8571_v20  ;;  %v8619_v20 = vpack.c.bf16 %v1074_v16, %v1073_v27  ;;  %v1066_v27 = vld [vmem:[%s9610_s12 + $0x1758] sm:$0xff]  ;;  %v1051_v16 = vld [vmem:[%s9610_s12 + $0x16e0] sm:$0xff] }
 0x16f   : > { %v6452_v48 = vpop.f32.mrb[7].mxu0  ;;  %v6486_v42 = vpop.f32.mrb[6].mxu1 }
 0x170   : > { %v6453_v38 = vadd.f32 %v6452_v48, %v6451_v46  ;;  %8542 = vmatpush3.bf16.msra.mxu0 %v8541_v32  ;;  %v6487_v53 = vpop.f32.mrb[7].mxu1  ;;  %v1076_v32 = vld [vmem:[%s9610_s12 + $0x17a8] sm:$0xff]  ;;  %v1059_v46 = vld [vmem:[%s9610_s12 + $0x1720] sm:$0xff]  ;;  %v1078_v48 = vld [vmem:[%s9610_s12 + $0x17b8] sm:$0xff] }
 0x171   : > { %v6488_v34 = vadd.f32 %v6487_v53, %v6486_v42  ;;  %8574 = vmatpush3.bf16.msra.mxu1 %v8573_v33  ;;  %8544 = vmatprep.subr.bf16.mxu0 %v8543_v36  ;;  %v2001_v33 = vcombine.high %v10481_v18, %v10481_v18  ;;  %v8589_v36 = vpack.c.bf16 %v1026_v24, %v1025_v17  ;;  %v1030_v53 = vld [vmem:[%s9610_s12 + $0x1638] sm:$0xff] }
 0x172   : > { %v2766_v62 = vadd.f32 %v6453_v38, %v10387_v15  ;;  %8576 = vmatprep.subr.bf16.mxu1 %v8575_v44  ;;  %v8549_v15 = vpack.c.bf16 %v974_v59, %v973_v58  ;;  %v8623_v44 = vpack.c.bf16 %v1076_v32, %v1075_v31  ;;  %v8625_v50 = vpack.c.bf16 %v1060_v45, %v1059_v46  ;;  %v1029_v38 = vld [vmem:[%s9610_s12 + $0x1630] sm:$0xff]  ;;  %v1079_v58 = vld [vmem:[%s9610_s12 + $0x17c0] sm:$0xff]  ;;  %v1080_v59 = vld [vmem:[%s9610_s12 + $0x17c8] sm:$0xff] }
 0x173   : > { %v8597_v61 = vpack.c.bf16 %v1030_v53, %v1029_v38  ;;  %v8631_v4 = vpack.c.bf16 %v1080_v59, %v1079_v58  ;;  %v8637_v24 = vpack.c.bf16 %v1066_v27, %v1065_v12  ;;  %v1068_v31 = vld [vmem:[%s9610_s12 + $0x1768] sm:$0xff]  ;;  %v1053_v32 = vld [vmem:[%s9610_s12 + $0x16f0] sm:$0xff]  ;;  %v308_v45 = vld [vmem:[%s9605_s8 + $0x60] sm:$0xff] }
 0x174   : > { %v10467_v5 = vadd.f32 %v6488_v34, %v2766_v62  ;;  %8546 = vmatpush3.bf16.msra.mxu0 %v8545_v54  ;;  %v1061_v54 = vld [vmem:[%s9610_s12 + $0x1730] sm:$0xff]  ;;  %v1062_v34 = vld [vmem:[%s9610_s12 + $0x1738] sm:$0xff]  ;;  %v8641_v47 = vpack.c.bf16 %v1068_v31, %v1067_v23  ;;  %v1091_v23 = vld [vmem:[%s9610_s12 + $0x1820] sm:$0xff] }
 0x175   : > { %8578 = vmatpush3.bf16.msra.mxu1 %v8577_v57  ;;  %8548 = vmatprep.subr.bf16.mxu0 %v8547_v41  ;;  %v1047_v57 = vld [vmem:[%s9610_s12 + $0x16c0] sm:$0xff]  ;;  %v1048_v41 = vld [vmem:[%s9610_s12 + $0x16c8] sm:$0xff]  ;;  %v8629_v62 = vpack.c.bf16 %v1062_v34, %v1061_v54  ;;  %v1070_v53 = vld [vmem:[%s9610_s12 + $0x1778] sm:$0xff] }
 0x176   : > { %8580 = vmatprep.subr.bf16.mxu1 %v8579_v49  ;;  %v8599_v49 = vpack.c.bf16 %v1048_v41, %v1047_v57  ;;  %v1103_v54 = vld [vmem:[%s9610_s12 + $0x1880] sm:$0xff]  ;;  %v1136_v57 = vld [vmem:[%s9610_s12 + $0x1988] sm:$0xff]  ;;  %v2002_v41 = vcombine.high %v308_v45, %v308_v45  ;;  %v1121_v12 = vld [vmem:[%s9610_s12 + $0x1910] sm:$0xff] }
 0x177   : > { %v1135_v34 = vld [vmem:[%s9610_s12 + $0x1980] sm:$0xff]  ;;  %v1122_v27 = vld [vmem:[%s9610_s12 + $0x1918] sm:$0xff]  ;;  %v1124_v31 = vld [vmem:[%s9610_s12 + $0x1928] sm:$0xff] }
 0x178   : > { %8550 = vmatpush3.bf16.msra.mxu0 %v8549_v15  ;;  %v1050_v15 = vld [vmem:[%s9610_s12 + $0x16d8] sm:$0xff]  ;;  %v8679_v0 = vpack.c.bf16 %v1136_v57, %v1135_v34  ;;  %v1128_v57 = vld [vmem:[%s9610_s12 + $0x1948] sm:$0xff] }
 0x179   : > { %8582 = vmatpush3.bf16.msra.mxu1 %v8581_v6  ;;  %8584 = vmatprep.subr.bf16.mxu0 %v8583_v7  ;;  %v1081_v6 = vld [vmem:[%s9610_s12 + $0x17d0] sm:$0xff]  ;;  %v1082_v7 = vld [vmem:[%s9610_s12 + $0x17d8] sm:$0xff]  ;;  %v8603_v9 = vpack.c.bf16 %v1050_v15, %v1049_v52  ;;  %v10556_v52 = vrot.slane %v308_v45, %v9666_v14 }
 0x17a   : > { %8616 = vmatprep.subr.bf16.mxu1 %v8615_v10  ;;  %v1033_v10 = vld [vmem:[%s9610_s12 + $0x1650] sm:$0xff]  ;;  %v8635_v13 = vpack.c.bf16 %v1082_v7, %v1081_v6  ;;  %v1138_v6 = vld [vmem:[%s9610_s12 + $0x1998] sm:$0xff]  ;;  %v10561_v7 = vrot.slane %v2002_v41, %v9666_v14 }
 0x17b   : > { %3744 = vmatmul.mubr.f32.vlgmr.msra.gmra.mrb[20].mxu0 %v10396_v26  ;;  %v1028_v26 = vld [vmem:[%s9610_s12 + $0x1628] sm:$0xff]  ;;  %v8605_v17 = vpack.c.bf16 %v1034_v11, %v1033_v10  ;;  %v1137_v15 = vld [vmem:[%s9610_s12 + $0x1990] sm:$0xff]  ;;  %v1090_v11 = vld [vmem:[%s9610_s12 + $0x1818] sm:$0xff] }
 0x17c   : > { %8586 = vmatpush3.bf16.msra.mxu0 %v8585_v19  ;;  %3814 = vmatmul.mubr.f32.vlgmr.msra.gmra.mrb[20].mxu1 %v10401_v28  ;;  %v1077_v28 = vld [vmem:[%s9610_s12 + $0x17b0] sm:$0xff]  ;;  %v8593_v42 = vpack.c.bf16 %v1028_v26, %v1027_v40  ;;  %v1052_v19 = vld [vmem:[%s9610_s12 + $0x16e8] sm:$0xff]  ;;  %v1086_v40 = vld [vmem:[%s9610_s12 + $0x17f8] sm:$0xff] }
 0x17d   : > { %8618 = vmatpush3.bf16.msra.mxu1 %v8617_v21  ;;  %8588 = vmatprep.subr.bf16.mxu0 %v8587_v22  ;;  %v8627_v56 = vpack.c.bf16 %v1078_v48, %v1077_v28  ;;  %v1083_v21 = vld [vmem:[%s9610_s12 + $0x17e0] sm:$0xff]  ;;  %v1084_v22 = vld [vmem:[%s9610_s12 + $0x17e8] sm:$0xff]  ;;  %v8607_v25 = vpack.c.bf16 %v1052_v19, %v1051_v16  ;;  %v1037_v48 = vld [vmem:[%s9610_s12 + $0x1670] sm:$0xff] }
 0x17e   : > { %8620 = vmatprep.subr.bf16.mxu1 %v8619_v20  ;;  %3883 = vmatprep.mubr.f32.mxu0 %v2000_v30  ;;  %v1035_v20 = vld [vmem:[%s9610_s12 + $0x1660] sm:$0xff]  ;;  %v8639_v30 = vpack.c.bf16 %v1084_v22, %v1083_v21  ;;  %v1089_v10 = vld [vmem:[%s9610_s12 + $0x1810] sm:$0xff]  ;;  %v1108_v19 = vld [vmem:[%s9610_s12 + $0x18a8] sm:$0xff]  ;;  %v2017_v21 = vcombine.high %v10556_v52, %v10556_v52 }
 0x17f   : > { %3953 = vmatprep.mubr.f32.mxu1 %v2001_v33  ;;  %v1054_v33 = vld [vmem:[%s9610_s12 + $0x16f8] sm:$0xff]  ;;  %v1107_v16 = vld [vmem:[%s9610_s12 + $0x18a0] sm:$0xff]  ;;  %v1113_v41 = vld [vmem:[%s9610_s12 + $0x18d0] sm:$0xff] }
 0x180   : > { %8590 = vmatpush3.bf16.msra.mxu0 %v8589_v36  ;;  %v8611_v28 = vpack.c.bf16 %v1054_v33, %v1053_v32  ;;  %v1139_v22 = vld [vmem:[%s9610_s12 + $0x19a0] sm:$0xff]  ;;  %v1109_v32 = vld [vmem:[%s9610_s12 + $0x18b0] sm:$0xff]  ;;  %v1110_v33 = vld [vmem:[%s9610_s12 + $0x18b8] sm:$0xff] }
 0x181   : > { %8622 = vmatpush3.bf16.msra.mxu1 %v8621_v37  ;;  %8592 = vmatprep.subr.bf16.mxu0 %v8591_v39  ;;  %v1085_v39 = vld [vmem:[%s9610_s12 + $0x17f0] sm:$0xff] }
 0x182   : > { %8624 = vmatprep.subr.bf16.mxu1 %v8623_v44  ;;  %v8609_v44 = vpack.c.bf16 %v1036_v35, %v1035_v20  ;;  %v8643_v38 = vpack.c.bf16 %v1086_v40, %v1085_v39  ;;  %v8685_v20 = vpack.c.bf16 %v1122_v27, %v1121_v12  ;;  %v8655_v35 = vpack.c.bf16 %v1108_v19, %v1107_v16  ;;  %v1100_v27 = vld [vmem:[%s9610_s12 + $0x1868] sm:$0xff]  ;;  %v1131_v16 = vld [vmem:[%s9610_s12 + $0x1960] sm:$0xff] }
 0x183   : > { %v8659_v40 = vpack.c.bf16 %v1110_v33, %v1109_v32 }
 0x184   : > { %8594 = vmatpush3.bf16.msra.mxu0 %v8593_v42  ;;  %v1038_v42 = vld [vmem:[%s9610_s12 + $0x1678] sm:$0xff] }
 0x185   : > { %8626 = vmatpush3.bf16.msra.mxu1 %v8625_v50  ;;  %8596 = vmatprep.subr.bf16.mxu0 %v8595_v51  ;;  %v1069_v50 = vld [vmem:[%s9610_s12 + $0x1770] sm:$0xff] }
 0x186   : > { %8628 = vmatprep.subr.bf16.mxu1 %v8627_v56  ;;  %v1104_v56 = vld [vmem:[%s9610_s12 + $0x1888] sm:$0xff]  ;;  %v8645_v59 = vpack.c.bf16 %v1070_v53, %v1069_v50  ;;  %v1095_v53 = vld [vmem:[%s9610_s12 + $0x1840] sm:$0xff] }
 0x188   : > { %8598 = vmatpush3.bf16.msra.mxu0 %v8597_v61  ;;  %v8647_v61 = vpack.c.bf16 %v1104_v56, %v1103_v54  ;;  %v1096_v54 = vld [vmem:[%s9610_s12 + $0x1848] sm:$0xff]  ;;  %v1127_v56 = vld [vmem:[%s9610_s12 + $0x1940] sm:$0xff] }
 0x189   : > { %8630 = vmatpush3.bf16.msra.mxu1 %v8629_v62  ;;  %8600 = vmatprep.subr.bf16.mxu0 %v8599_v49  ;;  %v1087_v62 = vld [vmem:[%s9610_s12 + $0x1800] sm:$0xff]  ;;  %v1088_v49 = vld [vmem:[%s9610_s12 + $0x1808] sm:$0xff] }
 0x18a   : > { %8632 = vmatprep.subr.bf16.mxu1 %v8631_v4  ;;  %v1105_v4 = vld [vmem:[%s9610_s12 + $0x1890] sm:$0xff] }
 0x18c   : > { %8602 = vmatpush3.bf16.msra.mxu0 %v8601_v8  ;;  %v8649_v8 = vpack.c.bf16 %v1088_v49, %v1087_v62  ;;  %v8665_v62 = vpack.c.bf16 %v1096_v54, %v1095_v53  ;;  %v8697_v49 = vpack.c.bf16 %v1128_v57, %v1127_v56  ;;  %v1183_v53 = vld [vmem:[%s9610_s12 + $0x1b00] sm:$0xff]  ;;  %v1184_v56 = vld [vmem:[%s9610_s12 + $0x1b08] sm:$0xff]  ;;  %v1170_v57 = vld [vmem:[%s9610_s12 + $0x1a98] sm:$0xff] }
 0x18d   : > { %8634 = vmatpush3.bf16.msra.mxu1 %v8633_v60  ;;  %8604 = vmatprep.subr.bf16.mxu0 %v8603_v9  ;;  %v8681_v60 = vpack.c.bf16 %v1120_v3, %v1119_v43  ;;  %v8651_v9 = vpack.c.bf16 %v1106_v63, %v1105_v4  ;;  %v1098_v3 = vld [vmem:[%s9610_s12 + $0x1858] sm:$0xff]  ;;  %v1129_v4 = vld [vmem:[%s9610_s12 + $0x1950] sm:$0xff] }
 0x18e   : > { %v6521_v29 = vpop.f32.mrb[8].mxu0  ;;  %8636 = vmatprep.subr.bf16.mxu1 %v8635_v13  ;;  %v8683_v13 = vpack.c.bf16 %v1138_v6, %v1137_v15  ;;  %v1130_v15 = vld [vmem:[%s9610_s12 + $0x1958] sm:$0xff]  ;;  %v1115_v6 = vld [vmem:[%s9610_s12 + $0x18e0] sm:$0xff] }
 0x18f   : > { %v6522_v36 = vpop.f32.mrb[9].mxu0  ;;  %v6556_v37 = vpop.f32.mrb[8].mxu1 }
 0x190   : > { %v6523_v26 = vadd.f32 %v6522_v36, %v6521_v29  ;;  %8606 = vmatpush3.bf16.msra.mxu0 %v8605_v17  ;;  %v6557_v46 = vpop.f32.mrb[9].mxu1  ;;  %v1140_v17 = vld [vmem:[%s9610_s12 + $0x19a8] sm:$0xff]  ;;  %v1123_v29 = vld [vmem:[%s9610_s12 + $0x1920] sm:$0xff]  ;;  %v1142_v36 = vld [vmem:[%s9610_s12 + $0x19b8] sm:$0xff] }
 0x191   : > { %v6558_v55 = vadd.f32 %v6557_v46, %v6556_v37  ;;  %8638 = vmatpush3.bf16.msra.mxu1 %v8637_v24  ;;  %8608 = vmatprep.subr.bf16.mxu0 %v8607_v25  ;;  %v2018_v24 = vcombine.high %v10561_v7, %v10561_v7  ;;  %v8653_v25 = vpack.c.bf16 %v1090_v11, %v1089_v10  ;;  %v1094_v46 = vld [vmem:[%s9610_s12 + $0x1838] sm:$0xff] }
 0x192   : > { %v2906_v51 = vadd.f32 %v6523_v26, %v10467_v5  ;;  %8640 = vmatprep.subr.bf16.mxu1 %v8639_v30  ;;  %v8613_v5 = vpack.c.bf16 %v1038_v42, %v1037_v48  ;;  %v8687_v30 = vpack.c.bf16 %v1140_v17, %v1139_v22  ;;  %v8689_v39 = vpack.c.bf16 %v1124_v31, %v1123_v29  ;;  %v1093_v26 = vld [vmem:[%s9610_s12 + $0x1830] sm:$0xff]  ;;  %v1143_v48 = vld [vmem:[%s9610_s12 + $0x19c0] sm:$0xff]  ;;  %v1144_v42 = vld [vmem:[%s9610_s12 + $0x19c8] sm:$0xff] }
 0x193   : > { %v8661_v50 = vpack.c.bf16 %v1094_v46, %v1093_v26  ;;  %v8695_v34 = vpack.c.bf16 %v1144_v42, %v1143_v48  ;;  %v8701_v11 = vpack.c.bf16 %v1130_v15, %v1129_v4  ;;  %v1132_v22 = vld [vmem:[%s9610_s12 + $0x1968] sm:$0xff]  ;;  %v1117_v17 = vld [vmem:[%s9610_s12 + $0x18f0] sm:$0xff]  ;;  %v1134_v46 = vld [vmem:[%s9610_s12 + $0x1978] sm:$0xff] }
 0x194   : > { %v10547_v58 = vadd.f32 %v6558_v55, %v2906_v51  ;;  %8610 = vmatpush3.bf16.msra.mxu0 %v8609_v44  ;;  %v1125_v44 = vld [vmem:[%s9610_s12 + $0x1930] sm:$0xff]  ;;  %v1126_v55 = vld [vmem:[%s9610_s12 + $0x1938] sm:$0xff]  ;;  %v309_v31 = vld [vmem:[%s9605_s8 + $0x68] sm:$0xff]  ;;  %v8705_v33 = vpack.c.bf16 %v1132_v22, %v1131_v16 }
 0x195   : > { %8642 = vmatpush3.bf16.msra.mxu1 %v8641_v47  ;;  %8612 = vmatprep.subr.bf16.mxu0 %v8611_v28  ;;  %v1111_v47 = vld [vmem:[%s9610_s12 + $0x18c0] sm:$0xff]  ;;  %v1112_v28 = vld [vmem:[%s9610_s12 + $0x18c8] sm:$0xff]  ;;  %v8693_v51 = vpack.c.bf16 %v1126_v55, %v1125_v44  ;;  %v1185_v4 = vld [vmem:[%s9610_s12 + $0x1b10] sm:$0xff] }
 0x196   : > { %8644 = vmatprep.subr.bf16.mxu1 %v8643_v38  ;;  %v8663_v38 = vpack.c.bf16 %v1112_v28, %v1111_v47  ;;  %v1167_v44 = vld [vmem:[%s9610_s12 + $0x1a80] sm:$0xff]  ;;  %v1200_v47 = vld [vmem:[%s9610_s12 + $0x1b88] sm:$0xff]  ;;  %v2019_v28 = vcombine.high %v309_v31, %v309_v31  ;;  %v1186_v15 = vld [vmem:[%s9610_s12 + $0x1b18] sm:$0xff] }
 0x197   : > { %v1199_v55 = vld [vmem:[%s9610_s12 + $0x1b80] sm:$0xff]  ;;  %v1188_v22 = vld [vmem:[%s9610_s12 + $0x1b28] sm:$0xff] }
 0x198   : > { %8614 = vmatpush3.bf16.msra.mxu0 %v8613_v5  ;;  %v1114_v5 = vld [vmem:[%s9610_s12 + $0x18d8] sm:$0xff]  ;;  %v8743_v54 = vpack.c.bf16 %v1200_v47, %v1199_v55  ;;  %v1155_v16 = vld [vmem:[%s9610_s12 + $0x1a20] sm:$0xff]  ;;  %v1192_v47 = vld [vmem:[%s9610_s12 + $0x1b48] sm:$0xff] }
 0x199   : > { %8646 = vmatpush3.bf16.msra.mxu1 %v8645_v59  ;;  %8648 = vmatprep.subr.bf16.mxu0 %v8647_v61  ;;  %v1145_v59 = vld [vmem:[%s9610_s12 + $0x19d0] sm:$0xff]  ;;  %v1146_v61 = vld [vmem:[%s9610_s12 + $0x19d8] sm:$0xff]  ;;  %v8667_v43 = vpack.c.bf16 %v1114_v5, %v1113_v41  ;;  %v10636_v41 = vrot.slane %v309_v31, %v9666_v14 }
 0x19a   : > { %8680 = vmatprep.subr.bf16.mxu1 %v8679_v0  ;;  %v1097_v0 = vld [vmem:[%s9610_s12 + $0x1850] sm:$0xff]  ;;  %v8699_v63 = vpack.c.bf16 %v1146_v61, %v1145_v59  ;;  %v1202_v59 = vld [vmem:[%s9610_s12 + $0x1b98] sm:$0xff]  ;;  %v10641_v61 = vrot.slane %v2019_v28, %v9666_v14 }
 0x19b   : > { %3884 = vmatmul.mubr.f32.vlgmr.msra.gmra.mrb[22].mxu0 %v10476_v2  ;;  %v1092_v2 = vld [vmem:[%s9610_s12 + $0x1828] sm:$0xff]  ;;  %v8669_v10 = vpack.c.bf16 %v1098_v3, %v1097_v0  ;;  %v1201_v5 = vld [vmem:[%s9610_s12 + $0x1b90] sm:$0xff]  ;;  %v1154_v3 = vld [vmem:[%s9610_s12 + $0x1a18] sm:$0xff] }
 0x19c   : > { %8650 = vmatpush3.bf16.msra.mxu0 %v8649_v8  ;;  %3954 = vmatmul.mubr.f32.vlgmr.msra.gmra.mrb[22].mxu1 %v10481_v18  ;;  %v1141_v18 = vld [vmem:[%s9610_s12 + $0x19b0] sm:$0xff]  ;;  %v8657_v37 = vpack.c.bf16 %v1092_v2, %v1091_v23  ;;  %v1116_v8 = vld [vmem:[%s9610_s12 + $0x18e8] sm:$0xff]  ;;  %v1150_v23 = vld [vmem:[%s9610_s12 + $0x19f8] sm:$0xff] }
 0x19d   : > { %8682 = vmatpush3.bf16.msra.mxu1 %v8681_v60  ;;  %8652 = vmatprep.subr.bf16.mxu0 %v8651_v9  ;;  %v8691_v45 = vpack.c.bf16 %v1142_v36, %v1141_v18  ;;  %v1147_v60 = vld [vmem:[%s9610_s12 + $0x19e0] sm:$0xff]  ;;  %v1148_v9 = vld [vmem:[%s9610_s12 + $0x19e8] sm:$0xff]  ;;  %v8671_v12 = vpack.c.bf16 %v1116_v8, %v1115_v6  ;;  %v1101_v36 = vld [vmem:[%s9610_s12 + $0x1870] sm:$0xff] }
 0x19e   : > { %8684 = vmatprep.subr.bf16.mxu1 %v8683_v13  ;;  %4023 = vmatprep.mubr.f32.mxu0 %v2017_v21  ;;  %v1099_v13 = vld [vmem:[%s9610_s12 + $0x1860] sm:$0xff]  ;;  %v8703_v21 = vpack.c.bf16 %v1148_v9, %v1147_v60  ;;  %v1153_v0 = vld [vmem:[%s9610_s12 + $0x1a10] sm:$0xff]  ;;  %v1172_v8 = vld [vmem:[%s9610_s12 + $0x1aa8] sm:$0xff]  ;;  %v2034_v60 = vcombine.high %v10636_v41, %v10636_v41 }
 0x19f   : > { %4093 = vmatprep.mubr.f32.mxu1 %v2018_v24  ;;  %v1118_v24 = vld [vmem:[%s9610_s12 + $0x18f8] sm:$0xff]  ;;  %v1171_v6 = vld [vmem:[%s9610_s12 + $0x1aa0] sm:$0xff]  ;;  %v1177_v28 = vld [vmem:[%s9610_s12 + $0x1ad0] sm:$0xff] }
 0x1a0   : > { %8654 = vmatpush3.bf16.msra.mxu0 %v8653_v25  ;;  %v8675_v18 = vpack.c.bf16 %v1118_v24, %v1117_v17  ;;  %v1203_v9 = vld [vmem:[%s9610_s12 + $0x1ba0] sm:$0xff]  ;;  %v1173_v17 = vld [vmem:[%s9610_s12 + $0x1ab0] sm:$0xff]  ;;  %v1174_v24 = vld [vmem:[%s9610_s12 + $0x1ab8] sm:$0xff] }
 0x1a1   : > { %8686 = vmatpush3.bf16.msra.mxu1 %v8685_v20  ;;  %8656 = vmatprep.subr.bf16.mxu0 %v8655_v35  ;;  %v1149_v35 = vld [vmem:[%s9610_s12 + $0x19f0] sm:$0xff] }
 0x1a2   : > { %8688 = vmatprep.subr.bf16.mxu1 %v8687_v30  ;;  %v8673_v30 = vpack.c.bf16 %v1100_v27, %v1099_v13  ;;  %v8707_v26 = vpack.c.bf16 %v1150_v23, %v1149_v35  ;;  %v8749_v13 = vpack.c.bf16 %v1186_v15, %v1185_v4  ;;  %v8719_v27 = vpack.c.bf16 %v1172_v8, %v1171_v6  ;;  %v1164_v15 = vld [vmem:[%s9610_s12 + $0x1a68] sm:$0xff]  ;;  %v1195_v6 = vld [vmem:[%s9610_s12 + $0x1b60] sm:$0xff] }
 0x1a3   : > { %v8723_v23 = vpack.c.bf16 %v1174_v24, %v1173_v17 }
 0x1a4   : > { %8658 = vmatpush3.bf16.msra.mxu0 %v8657_v37  ;;  %v1102_v37 = vld [vmem:[%s9610_s12 + $0x1878] sm:$0xff] }
 0x1a5   : > { %8690 = vmatpush3.bf16.msra.mxu1 %v8689_v39  ;;  %8660 = vmatprep.subr.bf16.mxu0 %v8659_v40  ;;  %v1133_v39 = vld [vmem:[%s9610_s12 + $0x1970] sm:$0xff] }
 0x1a6   : > { %8692 = vmatprep.subr.bf16.mxu1 %v8691_v45  ;;  %v1168_v45 = vld [vmem:[%s9610_s12 + $0x1a88] sm:$0xff]  ;;  %v8709_v42 = vpack.c.bf16 %v1134_v46, %v1133_v39  ;;  %v1159_v46 = vld [vmem:[%s9610_s12 + $0x1a40] sm:$0xff] }
 0x1a8   : > { %8662 = vmatpush3.bf16.msra.mxu0 %v8661_v50  ;;  %v8711_v50 = vpack.c.bf16 %v1168_v45, %v1167_v44  ;;  %v1160_v44 = vld [vmem:[%s9610_s12 + $0x1a48] sm:$0xff]  ;;  %v1191_v45 = vld [vmem:[%s9610_s12 + $0x1b40] sm:$0xff] }
 0x1a9   : > { %8694 = vmatpush3.bf16.msra.mxu1 %v8693_v51  ;;  %8664 = vmatprep.subr.bf16.mxu0 %v8663_v38  ;;  %v1151_v51 = vld [vmem:[%s9610_s12 + $0x1a00] sm:$0xff]  ;;  %v1152_v38 = vld [vmem:[%s9610_s12 + $0x1a08] sm:$0xff] }
 0x1aa   : > { %8696 = vmatprep.subr.bf16.mxu1 %v8695_v34  ;;  %v1169_v34 = vld [vmem:[%s9610_s12 + $0x1a90] sm:$0xff] }
 0x1ac   : > { %8666 = vmatpush3.bf16.msra.mxu0 %v8665_v62  ;;  %v8713_v62 = vpack.c.bf16 %v1152_v38, %v1151_v51  ;;  %v8729_v51 = vpack.c.bf16 %v1160_v44, %v1159_v46  ;;  %v8761_v38 = vpack.c.bf16 %v1192_v47, %v1191_v45  ;;  %v1247_v46 = vld [vmem:[%s9610_s12 + $0x1d00] sm:$0xff]  ;;  %v1248_v45 = vld [vmem:[%s9610_s12 + $0x1d08] sm:$0xff]  ;;  %v1234_v47 = vld [vmem:[%s9610_s12 + $0x1c98] sm:$0xff] }
 0x1ad   : > { %8698 = vmatpush3.bf16.msra.mxu1 %v8697_v49  ;;  %8668 = vmatprep.subr.bf16.mxu0 %v8667_v43  ;;  %v8745_v49 = vpack.c.bf16 %v1184_v56, %v1183_v53  ;;  %v8715_v43 = vpack.c.bf16 %v1170_v57, %v1169_v34  ;;  %v1162_v56 = vld [vmem:[%s9610_s12 + $0x1a58] sm:$0xff]  ;;  %v1193_v34 = vld [vmem:[%s9610_s12 + $0x1b50] sm:$0xff] }
 0x1ae   : > { %v6591_v19 = vpop.f32.mrb[10].mxu0  ;;  %8700 = vmatprep.subr.bf16.mxu1 %v8699_v63  ;;  %v8747_v63 = vpack.c.bf16 %v1202_v59, %v1201_v5  ;;  %v1194_v5 = vld [vmem:[%s9610_s12 + $0x1b58] sm:$0xff]  ;;  %v1179_v59 = vld [vmem:[%s9610_s12 + $0x1ae0] sm:$0xff] }
 0x1af   : > { %v6592_v25 = vpop.f32.mrb[11].mxu0  ;;  %v6626_v20 = vpop.f32.mrb[10].mxu1 }
 0x1b0   : > { %v6593_v2 = vadd.f32 %v6592_v25, %v6591_v19  ;;  %8670 = vmatpush3.bf16.msra.mxu0 %v8669_v10  ;;  %v6627_v29 = vpop.f32.mrb[11].mxu1  ;;  %v1204_v10 = vld [vmem:[%s9610_s12 + $0x1ba8] sm:$0xff]  ;;  %v1187_v19 = vld [vmem:[%s9610_s12 + $0x1b20] sm:$0xff]  ;;  %v1206_v25 = vld [vmem:[%s9610_s12 + $0x1bb8] sm:$0xff] }
 0x1b1   : > { %v6628_v32 = vadd.f32 %v6627_v29, %v6626_v20  ;;  %8702 = vmatpush3.bf16.msra.mxu1 %v8701_v11  ;;  %8672 = vmatprep.subr.bf16.mxu0 %v8671_v12  ;;  %v2035_v11 = vcombine.high %v10641_v61, %v10641_v61  ;;  %v8717_v12 = vpack.c.bf16 %v1154_v3, %v1153_v0  ;;  %v1158_v29 = vld [vmem:[%s9610_s12 + $0x1a38] sm:$0xff] }
 0x1b2   : > { %v3046_v40 = vadd.f32 %v6593_v2, %v10547_v58  ;;  %8704 = vmatprep.subr.bf16.mxu1 %v8703_v21  ;;  %v8677_v58 = vpack.c.bf16 %v1102_v37, %v1101_v36  ;;  %v8751_v21 = vpack.c.bf16 %v1204_v10, %v1203_v9  ;;  %v8753_v35 = vpack.c.bf16 %v1188_v22, %v1187_v19  ;;  %v1157_v2 = vld [vmem:[%s9610_s12 + $0x1a30] sm:$0xff]  ;;  %v1207_v36 = vld [vmem:[%s9610_s12 + $0x1bc0] sm:$0xff]  ;;  %v1208_v37 = vld [vmem:[%s9610_s12 + $0x1bc8] sm:$0xff] }
 0x1b3   : > { %v8725_v39 = vpack.c.bf16 %v1158_v29, %v1157_v2  ;;  %v8759_v55 = vpack.c.bf16 %v1208_v37, %v1207_v36  ;;  %v8765_v3 = vpack.c.bf16 %v1194_v5, %v1193_v34  ;;  %v1196_v9 = vld [vmem:[%s9610_s12 + $0x1b68] sm:$0xff]  ;;  %v1181_v10 = vld [vmem:[%s9610_s12 + $0x1af0] sm:$0xff]  ;;  %v1198_v29 = vld [vmem:[%s9610_s12 + $0x1b78] sm:$0xff] }
 0x1b4   : > { %v10627_v48 = vadd.f32 %v6628_v32, %v3046_v40  ;;  %8674 = vmatpush3.bf16.msra.mxu0 %v8673_v30  ;;  %v1189_v30 = vld [vmem:[%s9610_s12 + $0x1b30] sm:$0xff]  ;;  %v1190_v32 = vld [vmem:[%s9610_s12 + $0x1b38] sm:$0xff]  ;;  %v8769_v24 = vpack.c.bf16 %v1196_v9, %v1195_v6  ;;  %v1219_v6 = vld [vmem:[%s9610_s12 + $0x1c20] sm:$0xff] }
 0x1b5   : > { %8706 = vmatpush3.bf16.msra.mxu1 %v8705_v33  ;;  %8676 = vmatprep.subr.bf16.mxu0 %v8675_v18  ;;  %v1175_v33 = vld [vmem:[%s9610_s12 + $0x1ac0] sm:$0xff]  ;;  %v1176_v18 = vld [vmem:[%s9610_s12 + $0x1ac8] sm:$0xff]  ;;  %v8757_v40 = vpack.c.bf16 %v1190_v32, %v1189_v30  ;;  %v310_v22 = vld [vmem:[%s9605_s8 + $0x70] sm:$0xff] }
 0x1b6   : > { %8708 = vmatprep.subr.bf16.mxu1 %v8707_v26  ;;  %v8727_v26 = vpack.c.bf16 %v1176_v18, %v1175_v33  ;;  %v1231_v30 = vld [vmem:[%s9610_s12 + $0x1c80] sm:$0xff]  ;;  %v1264_v33 = vld [vmem:[%s9610_s12 + $0x1d88] sm:$0xff]  ;;  %v2036_v18 = vcombine.high %v310_v22, %v310_v22  ;;  %v1249_v34 = vld [vmem:[%s9610_s12 + $0x1d10] sm:$0xff] }
 0x1b7   : > { %v1263_v32 = vld [vmem:[%s9610_s12 + $0x1d80] sm:$0xff]  ;;  %v1250_v5 = vld [vmem:[%s9610_s12 + $0x1d18] sm:$0xff]  ;;  %v1252_v9 = vld [vmem:[%s9610_s12 + $0x1d28] sm:$0xff] }
 0x1b8   : > { %8678 = vmatpush3.bf16.msra.mxu0 %v8677_v58  ;;  %v1178_v58 = vld [vmem:[%s9610_s12 + $0x1ad8] sm:$0xff]  ;;  %v8807_v44 = vpack.c.bf16 %v1264_v33, %v1263_v32  ;;  %v1256_v33 = vld [vmem:[%s9610_s12 + $0x1d48] sm:$0xff] }
 0x1b9   : > { %8710 = vmatpush3.bf16.msra.mxu1 %v8709_v42  ;;  %8712 = vmatprep.subr.bf16.mxu0 %v8711_v50  ;;  %v1209_v42 = vld [vmem:[%s9610_s12 + $0x1bd0] sm:$0xff]  ;;  %v1210_v50 = vld [vmem:[%s9610_s12 + $0x1bd8] sm:$0xff]  ;;  %v8731_v53 = vpack.c.bf16 %v1178_v58, %v1177_v28  ;;  %v10716_v28 = vrot.slane %v310_v22, %v9666_v14 }
 0x1ba   : > { %8744 = vmatprep.subr.bf16.mxu1 %v8743_v54  ;;  %v1161_v54 = vld [vmem:[%s9610_s12 + $0x1a50] sm:$0xff]  ;;  %v8763_v57 = vpack.c.bf16 %v1210_v50, %v1209_v42  ;;  %v1266_v42 = vld [vmem:[%s9610_s12 + $0x1d98] sm:$0xff]  ;;  %v10721_v50 = vrot.slane %v2036_v18, %v9666_v14 }
 0x1bb   : > { %4024 = vmatmul.mubr.f32.vlgmr.msra.gmra.mrb[24].mxu0 %v10556_v52  ;;  %v1156_v52 = vld [vmem:[%s9610_s12 + $0x1a28] sm:$0xff]  ;;  %v8733_v0 = vpack.c.bf16 %v1162_v56, %v1161_v54  ;;  %v1265_v58 = vld [vmem:[%s9610_s12 + $0x1d90] sm:$0xff]  ;;  %v1218_v56 = vld [vmem:[%s9610_s12 + $0x1c18] sm:$0xff] }
 0x1bc   : > { %8714 = vmatpush3.bf16.msra.mxu0 %v8713_v62  ;;  %4094 = vmatmul.mubr.f32.vlgmr.msra.gmra.mrb[24].mxu1 %v10561_v7  ;;  %v1205_v7 = vld [vmem:[%s9610_s12 + $0x1bb0] sm:$0xff]  ;;  %v8721_v20 = vpack.c.bf16 %v1156_v52, %v1155_v16  ;;  %v1180_v62 = vld [vmem:[%s9610_s12 + $0x1ae8] sm:$0xff]  ;;  %v1214_v16 = vld [vmem:[%s9610_s12 + $0x1bf8] sm:$0xff] }
 0x1bd   : > { %8746 = vmatpush3.bf16.msra.mxu1 %v8745_v49  ;;  %8716 = vmatprep.subr.bf16.mxu0 %v8715_v43  ;;  %v8755_v31 = vpack.c.bf16 %v1206_v25, %v1205_v7  ;;  %v1211_v49 = vld [vmem:[%s9610_s12 + $0x1be0] sm:$0xff]  ;;  %v1212_v43 = vld [vmem:[%s9610_s12 + $0x1be8] sm:$0xff]  ;;  %v8735_v4 = vpack.c.bf16 %v1180_v62, %v1179_v59  ;;  %v1165_v25 = vld [vmem:[%s9610_s12 + $0x1a70] sm:$0xff] }
 0x1be   : > { %8748 = vmatprep.subr.bf16.mxu1 %v8747_v63  ;;  %4163 = vmatprep.mubr.f32.mxu0 %v2034_v60  ;;  %v1163_v63 = vld [vmem:[%s9610_s12 + $0x1a60] sm:$0xff]  ;;  %v8767_v60 = vpack.c.bf16 %v1212_v43, %v1211_v49  ;;  %v1217_v54 = vld [vmem:[%s9610_s12 + $0x1c10] sm:$0xff]  ;;  %v1236_v62 = vld [vmem:[%s9610_s12 + $0x1ca8] sm:$0xff]  ;;  %v2051_v49 = vcombine.high %v10716_v28, %v10716_v28 }
 0x1bf   : > { %4233 = vmatprep.mubr.f32.mxu1 %v2035_v11  ;;  %v1182_v11 = vld [vmem:[%s9610_s12 + $0x1af8] sm:$0xff]  ;;  %v1235_v59 = vld [vmem:[%s9610_s12 + $0x1ca0] sm:$0xff]  ;;  %v1241_v18 = vld [vmem:[%s9610_s12 + $0x1cd0] sm:$0xff] }
 0x1c0   : > { %8718 = vmatpush3.bf16.msra.mxu0 %v8717_v12  ;;  %v8739_v7 = vpack.c.bf16 %v1182_v11, %v1181_v10  ;;  %v1267_v43 = vld [vmem:[%s9610_s12 + $0x1da0] sm:$0xff]  ;;  %v1237_v10 = vld [vmem:[%s9610_s12 + $0x1cb0] sm:$0xff]  ;;  %v1238_v11 = vld [vmem:[%s9610_s12 + $0x1cb8] sm:$0xff] }
 0x1c1   : > { %8750 = vmatpush3.bf16.msra.mxu1 %v8749_v13  ;;  %8720 = vmatprep.subr.bf16.mxu0 %v8719_v27  ;;  %v1213_v27 = vld [vmem:[%s9610_s12 + $0x1bf0] sm:$0xff] }
 0x1c2   : > { %8752 = vmatprep.subr.bf16.mxu1 %v8751_v21  ;;  %v8737_v21 = vpack.c.bf16 %v1164_v15, %v1163_v63  ;;  %v8771_v2 = vpack.c.bf16 %v1214_v16, %v1213_v27  ;;  %v8813_v63 = vpack.c.bf16 %v1250_v5, %v1249_v34  ;;  %v8783_v15 = vpack.c.bf16 %v1236_v62, %v1235_v59  ;;  %v1228_v5 = vld [vmem:[%s9610_s12 + $0x1c68] sm:$0xff]  ;;  %v1259_v59 = vld [vmem:[%s9610_s12 + $0x1d60] sm:$0xff] }
 0x1c3   : > { %v8787_v16 = vpack.c.bf16 %v1238_v11, %v1237_v10 }
 0x1c4   : > { %8722 = vmatpush3.bf16.msra.mxu0 %v8721_v20  ;;  %v1166_v20 = vld [vmem:[%s9610_s12 + $0x1a78] sm:$0xff] }
 0x1c5   : > { %8754 = vmatpush3.bf16.msra.mxu1 %v8753_v35  ;;  %8724 = vmatprep.subr.bf16.mxu0 %v8723_v23  ;;  %v1197_v35 = vld [vmem:[%s9610_s12 + $0x1b70] sm:$0xff] }
 0x1c6   : > { %8756 = vmatprep.subr.bf16.mxu1 %v8755_v31  ;;  %v1232_v31 = vld [vmem:[%s9610_s12 + $0x1c88] sm:$0xff]  ;;  %v8773_v37 = vpack.c.bf16 %v1198_v29, %v1197_v35  ;;  %v1223_v29 = vld [vmem:[%s9610_s12 + $0x1c40] sm:$0xff] }
 0x1c8   : > { %8726 = vmatpush3.bf16.msra.mxu0 %v8725_v39  ;;  %v8775_v39 = vpack.c.bf16 %v1232_v31, %v1231_v30  ;;  %v1224_v30 = vld [vmem:[%s9610_s12 + $0x1c48] sm:$0xff]  ;;  %v1255_v31 = vld [vmem:[%s9610_s12 + $0x1d40] sm:$0xff] }
 0x1c9   : > { %8758 = vmatpush3.bf16.msra.mxu1 %v8757_v40  ;;  %8728 = vmatprep.subr.bf16.mxu0 %v8727_v26  ;;  %v1215_v40 = vld [vmem:[%s9610_s12 + $0x1c00] sm:$0xff]  ;;  %v1216_v26 = vld [vmem:[%s9610_s12 + $0x1c08] sm:$0xff] }
 0x1ca   : > { %8760 = vmatprep.subr.bf16.mxu1 %v8759_v55  ;;  %v1233_v55 = vld [vmem:[%s9610_s12 + $0x1c90] sm:$0xff] }
 0x1cc   : > { %8730 = vmatpush3.bf16.msra.mxu0 %v8729_v51  ;;  %v8777_v51 = vpack.c.bf16 %v1216_v26, %v1215_v40  ;;  %v8793_v40 = vpack.c.bf16 %v1224_v30, %v1223_v29  ;;  %v8825_v26 = vpack.c.bf16 %v1256_v33, %v1255_v31  ;;  %v1311_v29 = vld [vmem:[%s9610_s12 + $0x1f00] sm:$0xff]  ;;  %v1312_v31 = vld [vmem:[%s9610_s12 + $0x1f08] sm:$0xff]  ;;  %v1298_v33 = vld [vmem:[%s9610_s12 + $0x1e98] sm:$0xff] }
 0x1cd   : > { %8762 = vmatpush3.bf16.msra.mxu1 %v8761_v38  ;;  %8732 = vmatprep.subr.bf16.mxu0 %v8731_v53  ;;  %v8809_v38 = vpack.c.bf16 %v1248_v45, %v1247_v46  ;;  %v8779_v53 = vpack.c.bf16 %v1234_v47, %v1233_v55  ;;  %v1226_v45 = vld [vmem:[%s9610_s12 + $0x1c58] sm:$0xff]  ;;  %v1257_v55 = vld [vmem:[%s9610_s12 + $0x1d50] sm:$0xff] }
 0x1ce   : > { %v6661_v8 = vpop.f32.mrb[12].mxu0  ;;  %8764 = vmatprep.subr.bf16.mxu1 %v8763_v57  ;;  %v8811_v57 = vpack.c.bf16 %v1266_v42, %v1265_v58  ;;  %v1258_v58 = vld [vmem:[%s9610_s12 + $0x1d58] sm:$0xff]  ;;  %v1243_v42 = vld [vmem:[%s9610_s12 + $0x1ce0] sm:$0xff] }
 0x1cf   : > { %v6662_v12 = vpop.f32.mrb[13].mxu0  ;;  %v6696_v13 = vpop.f32.mrb[12].mxu1 }
 0x1d0   : > { %v6663_v52 = vadd.f32 %v6662_v12, %v6661_v8  ;;  %8734 = vmatpush3.bf16.msra.mxu0 %v8733_v0  ;;  %v6697_v19 = vpop.f32.mrb[13].mxu1  ;;  %v1268_v0 = vld [vmem:[%s9610_s12 + $0x1da8] sm:$0xff]  ;;  %v1251_v8 = vld [vmem:[%s9610_s12 + $0x1d20] sm:$0xff]  ;;  %v1270_v12 = vld [vmem:[%s9610_s12 + $0x1db8] sm:$0xff] }
 0x1d1   : > { %v6698_v17 = vadd.f32 %v6697_v19, %v6696_v13  ;;  %8766 = vmatpush3.bf16.msra.mxu1 %v8765_v3  ;;  %8736 = vmatprep.subr.bf16.mxu0 %v8735_v4  ;;  %v2052_v3 = vcombine.high %v10721_v50, %v10721_v50  ;;  %v8781_v4 = vpack.c.bf16 %v1218_v56, %v1217_v54  ;;  %v1222_v19 = vld [vmem:[%s9610_s12 + $0x1c38] sm:$0xff] }
 0x1d2   : > { %v3186_v23 = vadd.f32 %v6663_v52, %v10627_v48  ;;  %8768 = vmatprep.subr.bf16.mxu1 %v8767_v60  ;;  %v8741_v48 = vpack.c.bf16 %v1166_v20, %v1165_v25  ;;  %v8815_v60 = vpack.c.bf16 %v1268_v0, %v1267_v43  ;;  %v8817_v27 = vpack.c.bf16 %v1252_v9, %v1251_v8  ;;  %v1221_v52 = vld [vmem:[%s9610_s12 + $0x1c30] sm:$0xff]  ;;  %v1271_v25 = vld [vmem:[%s9610_s12 + $0x1dc0] sm:$0xff]  ;;  %v1272_v20 = vld [vmem:[%s9610_s12 + $0x1dc8] sm:$0xff] }
 0x1d3   : > { %v8789_v35 = vpack.c.bf16 %v1222_v19, %v1221_v52  ;;  %v8823_v32 = vpack.c.bf16 %v1272_v20, %v1271_v25  ;;  %v8829_v56 = vpack.c.bf16 %v1258_v58, %v1257_v55  ;;  %v1260_v43 = vld [vmem:[%s9610_s12 + $0x1d68] sm:$0xff]  ;;  %v1245_v0 = vld [vmem:[%s9610_s12 + $0x1cf0] sm:$0xff]  ;;  %v311_v9 = vld [vmem:[%s9605_s8 + $0x78] sm:$0xff] }
 0x1d4   : > { %v10707_v36 = vadd.f32 %v6698_v17, %v3186_v23  ;;  %8738 = vmatpush3.bf16.msra.mxu0 %v8737_v21  ;;  %v1253_v21 = vld [vmem:[%s9610_s12 + $0x1d30] sm:$0xff]  ;;  %v1254_v17 = vld [vmem:[%s9610_s12 + $0x1d38] sm:$0xff]  ;;  %v8833_v11 = vpack.c.bf16 %v1260_v43, %v1259_v59  ;;  %v1283_v59 = vld [vmem:[%s9610_s12 + $0x1e20] sm:$0xff] }
 0x1d5   : > { %8770 = vmatpush3.bf16.msra.mxu1 %v8769_v24  ;;  %8740 = vmatprep.subr.bf16.mxu0 %v8739_v7  ;;  %v1239_v24 = vld [vmem:[%s9610_s12 + $0x1cc0] sm:$0xff]  ;;  %v1240_v7 = vld [vmem:[%s9610_s12 + $0x1cc8] sm:$0xff]  ;;  %v8821_v23 = vpack.c.bf16 %v1254_v17, %v1253_v21  ;;  %v1262_v19 = vld [vmem:[%s9610_s12 + $0x1d78] sm:$0xff] }
 0x1d6   : > { %8772 = vmatprep.subr.bf16.mxu1 %v8771_v2  ;;  %v8791_v2 = vpack.c.bf16 %v1240_v7, %v1239_v24  ;;  %v1295_v21 = vld [vmem:[%s9610_s12 + $0x1e80] sm:$0xff]  ;;  %v1328_v24 = vld [vmem:[%s9610_s12 + $0x1f88] sm:$0xff]  ;;  %v2053_v7 = vcombine.high %v311_v9, %v311_v9  ;;  %v1313_v55 = vld [vmem:[%s9610_s12 + $0x1f10] sm:$0xff] }
 0x1d7   : > { %v1327_v17 = vld [vmem:[%s9610_s12 + $0x1f80] sm:$0xff]  ;;  %v1314_v58 = vld [vmem:[%s9610_s12 + $0x1f18] sm:$0xff]  ;;  %v1316_v43 = vld [vmem:[%s9610_s12 + $0x1f28] sm:$0xff] }
 0x1d8   : > { %8742 = vmatpush3.bf16.msra.mxu0 %v8741_v48  ;;  %v1242_v48 = vld [vmem:[%s9610_s12 + $0x1cd8] sm:$0xff]  ;;  %v8871_v30 = vpack.c.bf16 %v1328_v24, %v1327_v17  ;;  %v1320_v24 = vld [vmem:[%s9610_s12 + $0x1f48] sm:$0xff] }
 0x1d9   : > { %8774 = vmatpush3.bf16.msra.mxu1 %v8773_v37  ;;  %8776 = vmatprep.subr.bf16.mxu0 %v8775_v39  ;;  %v1273_v37 = vld [vmem:[%s9610_s12 + $0x1dd0] sm:$0xff]  ;;  %v1274_v39 = vld [vmem:[%s9610_s12 + $0x1dd8] sm:$0xff]  ;;  %v8795_v46 = vpack.c.bf16 %v1242_v48, %v1241_v18  ;;  %v10796_v18 = vrot.slane %v311_v9, %v9666_v14 }
 0x1da   : > { %8808 = vmatprep.subr.bf16.mxu1 %v8807_v44  ;;  %v1225_v44 = vld [vmem:[%s9610_s12 + $0x1c50] sm:$0xff]  ;;  %v8827_v47 = vpack.c.bf16 %v1274_v39, %v1273_v37  ;;  %v1330_v37 = vld [vmem:[%s9610_s12 + $0x1f98] sm:$0xff]  ;;  %v10801_v39 = vrot.slane %v2053_v7, %v9666_v14 }
 0x1db   : > { %4164 = vmatmul.mubr.f32.vlgmr.msra.gmra.mrb[26].mxu0 %v10636_v41  ;;  %v1220_v41 = vld [vmem:[%s9610_s12 + $0x1c28] sm:$0xff]  ;;  %v8797_v54 = vpack.c.bf16 %v1226_v45, %v1225_v44  ;;  %v1329_v48 = vld [vmem:[%s9610_s12 + $0x1f90] sm:$0xff]  ;;  %v1282_v45 = vld [vmem:[%s9610_s12 + $0x1e18] sm:$0xff] }
 0x1dc   : > { %8778 = vmatpush3.bf16.msra.mxu0 %v8777_v51  ;;  %4234 = vmatmul.mubr.f32.vlgmr.msra.gmra.mrb[26].mxu1 %v10641_v61  ;;  %v1269_v61 = vld [vmem:[%s9610_s12 + $0x1db0] sm:$0xff]  ;;  %v8785_v13 = vpack.c.bf16 %v1220_v41, %v1219_v6  ;;  %v1244_v51 = vld [vmem:[%s9610_s12 + $0x1ce8] sm:$0xff]  ;;  %v1278_v6 = vld [vmem:[%s9610_s12 + $0x1df8] sm:$0xff] }
 0x1dd   : > { %8810 = vmatpush3.bf16.msra.mxu1 %v8809_v38  ;;  %8780 = vmatprep.subr.bf16.mxu0 %v8779_v53  ;;  %v8819_v22 = vpack.c.bf16 %v1270_v12, %v1269_v61  ;;  %v1275_v38 = vld [vmem:[%s9610_s12 + $0x1de0] sm:$0xff]  ;;  %v1276_v53 = vld [vmem:[%s9610_s12 + $0x1de8] sm:$0xff]  ;;  %v8799_v34 = vpack.c.bf16 %v1244_v51, %v1243_v42  ;;  %v1229_v12 = vld [vmem:[%s9610_s12 + $0x1c70] sm:$0xff] }
 0x1de   : > { %8812 = vmatprep.subr.bf16.mxu1 %v8811_v57  ;;  %4303 = vmatprep.mubr.f32.mxu0 %v2051_v49  ;;  %v1227_v57 = vld [vmem:[%s9610_s12 + $0x1c60] sm:$0xff]  ;;  %v8831_v49 = vpack.c.bf16 %v1276_v53, %v1275_v38  ;;  %v1281_v44 = vld [vmem:[%s9610_s12 + $0x1e10] sm:$0xff]  ;;  %v1300_v51 = vld [vmem:[%s9610_s12 + $0x1ea8] sm:$0xff]  ;;  %v2068_v38 = vcombine.high %v10796_v18, %v10796_v18 }
 0x1df   : > { %4373 = vmatprep.mubr.f32.mxu1 %v2052_v3  ;;  %v1246_v3 = vld [vmem:[%s9610_s12 + $0x1cf8] sm:$0xff]  ;;  %v1299_v42 = vld [vmem:[%s9610_s12 + $0x1ea0] sm:$0xff]  ;;  %v1305_v7 = vld [vmem:[%s9610_s12 + $0x1ed0] sm:$0xff] }
 0x1e0   : > { %8782 = vmatpush3.bf16.msra.mxu0 %v8781_v4  ;;  %v8803_v61 = vpack.c.bf16 %v1246_v3, %v1245_v0  ;;  %v1331_v53 = vld [vmem:[%s9610_s12 + $0x1fa0] sm:$0xff]  ;;  %v1301_v0 = vld [vmem:[%s9610_s12 + $0x1eb0] sm:$0xff]  ;;  %v1302_v3 = vld [vmem:[%s9610_s12 + $0x1eb8] sm:$0xff] }
 0x1e1   : > { %8814 = vmatpush3.bf16.msra.mxu1 %v8813_v63  ;;  %8784 = vmatprep.subr.bf16.mxu0 %v8783_v15  ;;  %v1277_v15 = vld [vmem:[%s9610_s12 + $0x1df0] sm:$0xff] }
 0x1e2   : > { %8816 = vmatprep.subr.bf16.mxu1 %v8815_v60  ;;  %v8801_v60 = vpack.c.bf16 %v1228_v5, %v1227_v57  ;;  %v8835_v52 = vpack.c.bf16 %v1278_v6, %v1277_v15  ;;  %v8877_v57 = vpack.c.bf16 %v1314_v58, %v1313_v55  ;;  %v8847_v5 = vpack.c.bf16 %v1300_v51, %v1299_v42  ;;  %v1292_v58 = vld [vmem:[%s9610_s12 + $0x1e68] sm:$0xff]  ;;  %v1323_v42 = vld [vmem:[%s9610_s12 + $0x1f60] sm:$0xff] }
 0x1e3   : > { %v8851_v6 = vpack.c.bf16 %v1302_v3, %v1301_v0 }
 0x1e4   : > { %8786 = vmatpush3.bf16.msra.mxu0 %v8785_v13  ;;  %v1230_v13 = vld [vmem:[%s9610_s12 + $0x1c78] sm:$0xff] }
 0x1e5   : > { %8818 = vmatpush3.bf16.msra.mxu1 %v8817_v27  ;;  %8788 = vmatprep.subr.bf16.mxu0 %v8787_v16  ;;  %v1261_v27 = vld [vmem:[%s9610_s12 + $0x1d70] sm:$0xff] }
 0x1e6   : > { %8820 = vmatprep.subr.bf16.mxu1 %v8819_v22  ;;  %v1296_v22 = vld [vmem:[%s9610_s12 + $0x1e88] sm:$0xff]  ;;  %v8837_v20 = vpack.c.bf16 %v1262_v19, %v1261_v27  ;;  %v1287_v19 = vld [vmem:[%s9610_s12 + $0x1e40] sm:$0xff] }
 0x1e8   : > { %8790 = vmatpush3.bf16.msra.mxu0 %v8789_v35  ;;  %v8839_v35 = vpack.c.bf16 %v1296_v22, %v1295_v21  ;;  %v1288_v21 = vld [vmem:[%s9610_s12 + $0x1e48] sm:$0xff]  ;;  %v1319_v22 = vld [vmem:[%s9610_s12 + $0x1f40] sm:$0xff] }
 0x1e9   : > { %8822 = vmatpush3.bf16.msra.mxu1 %v8821_v23  ;;  %8792 = vmatprep.subr.bf16.mxu0 %v8791_v2  ;;  %v1279_v23 = vld [vmem:[%s9610_s12 + $0x1e00] sm:$0xff]  ;;  %v1280_v2 = vld [vmem:[%s9610_s12 + $0x1e08] sm:$0xff] }
 0x1ea   : > { %8824 = vmatprep.subr.bf16.mxu1 %v8823_v32  ;;  %v1297_v32 = vld [vmem:[%s9610_s12 + $0x1e90] sm:$0xff] }
 0x1ec   : > { %8794 = vmatpush3.bf16.msra.mxu0 %v8793_v40  ;;  %v8841_v40 = vpack.c.bf16 %v1280_v2, %v1279_v23  ;;  %v8857_v23 = vpack.c.bf16 %v1288_v21, %v1287_v19  ;;  %v8889_v2 = vpack.c.bf16 %v1320_v24, %v1319_v22  ;;  %v1375_v19 = vld [vmem:[%s9610_s12 + $0x2100] sm:$0xff]  ;;  %v1376_v22 = vld [vmem:[%s9610_s12 + $0x2108] sm:$0xff]  ;;  %v1362_v24 = vld [vmem:[%s9610_s12 + $0x2098] sm:$0xff] }
 0x1ed   : > { %8826 = vmatpush3.bf16.msra.mxu1 %v8825_v26  ;;  %8796 = vmatprep.subr.bf16.mxu0 %v8795_v46  ;;  %v8873_v26 = vpack.c.bf16 %v1312_v31, %v1311_v29  ;;  %v8843_v46 = vpack.c.bf16 %v1298_v33, %v1297_v32  ;;  %v1290_v31 = vld [vmem:[%s9610_s12 + $0x1e58] sm:$0xff]  ;;  %v1321_v32 = vld [vmem:[%s9610_s12 + $0x1f50] sm:$0xff] }
 0x1ee   : > { %v6731_v62 = vpop.f32.mrb[14].mxu0  ;;  %8828 = vmatprep.subr.bf16.mxu1 %v8827_v47  ;;  %v8875_v47 = vpack.c.bf16 %v1330_v37, %v1329_v48  ;;  %v1322_v48 = vld [vmem:[%s9610_s12 + $0x1f58] sm:$0xff]  ;;  %v1307_v37 = vld [vmem:[%s9610_s12 + $0x1ee0] sm:$0xff] }
 0x1ef   : > { %v6732_v4 = vpop.f32.mrb[15].mxu0  ;;  %v6766_v63 = vpop.f32.mrb[14].mxu1 }
 0x1f0   : > { %v6733_v41 = vadd.f32 %v6732_v4, %v6731_v62  ;;  %8798 = vmatpush3.bf16.msra.mxu0 %v8797_v54  ;;  %v6767_v8 = vpop.f32.mrb[15].mxu1  ;;  %v1332_v54 = vld [vmem:[%s9610_s12 + $0x1fa8] sm:$0xff]  ;;  %v1315_v62 = vld [vmem:[%s9610_s12 + $0x1f20] sm:$0xff]  ;;  %v1334_v4 = vld [vmem:[%s9610_s12 + $0x1fb8] sm:$0xff] }
 0x1f1   : > { %v6768_v10 = vadd.f32 %v6767_v8, %v6766_v63  ;;  %8830 = vmatpush3.bf16.msra.mxu1 %v8829_v56  ;;  %8800 = vmatprep.subr.bf16.mxu0 %v8799_v34  ;;  %v2069_v56 = vcombine.high %v10801_v39, %v10801_v39  ;;  %v8845_v34 = vpack.c.bf16 %v1282_v45, %v1281_v44  ;;  %v1286_v8 = vld [vmem:[%s9610_s12 + $0x1e38] sm:$0xff] }
 0x1f2   : > { %v3326_v16 = vadd.f32 %v6733_v41, %v10707_v36  ;;  %8832 = vmatprep.subr.bf16.mxu1 %v8831_v49  ;;  %v8805_v36 = vpack.c.bf16 %v1230_v13, %v1229_v12  ;;  %v8879_v49 = vpack.c.bf16 %v1332_v54, %v1331_v53  ;;  %v8881_v15 = vpack.c.bf16 %v1316_v43, %v1315_v62  ;;  %v1285_v41 = vld [vmem:[%s9610_s12 + $0x1e30] sm:$0xff]  ;;  %v1335_v12 = vld [vmem:[%s9610_s12 + $0x1fc0] sm:$0xff]  ;;  %v1336_v13 = vld [vmem:[%s9610_s12 + $0x1fc8] sm:$0xff] }
 0x1f3   : > { %v8853_v27 = vpack.c.bf16 %v1286_v8, %v1285_v41  ;;  %v8887_v17 = vpack.c.bf16 %v1336_v13, %v1335_v12  ;;  %v8893_v45 = vpack.c.bf16 %v1322_v48, %v1321_v32  ;;  %v1324_v53 = vld [vmem:[%s9610_s12 + $0x1f68] sm:$0xff]  ;;  %v1309_v54 = vld [vmem:[%s9610_s12 + $0x1ef0] sm:$0xff]  ;;  %v312_v43 = vld [vmem:[%s9605_s8 + $0x80] sm:$0xff] }
 0x1f4   : > { %v10787_v25 = vadd.f32 %v6768_v10, %v3326_v16  ;;  %8802 = vmatpush3.bf16.msra.mxu0 %v8801_v60  ;;  %v1317_v60 = vld [vmem:[%s9610_s12 + $0x1f30] sm:$0xff]  ;;  %v1318_v10 = vld [vmem:[%s9610_s12 + $0x1f38] sm:$0xff]  ;;  %v8897_v3 = vpack.c.bf16 %v1324_v53, %v1323_v42  ;;  %v1347_v42 = vld [vmem:[%s9610_s12 + $0x2020] sm:$0xff] }
 0x1f5   : > { %8834 = vmatpush3.bf16.msra.mxu1 %v8833_v11  ;;  %8804 = vmatprep.subr.bf16.mxu0 %v8803_v61  ;;  %v1303_v11 = vld [vmem:[%s9610_s12 + $0x1ec0] sm:$0xff]  ;;  %v1304_v61 = vld [vmem:[%s9610_s12 + $0x1ec8] sm:$0xff]  ;;  %v8885_v16 = vpack.c.bf16 %v1318_v10, %v1317_v60  ;;  %v1326_v8 = vld [vmem:[%s9610_s12 + $0x1f78] sm:$0xff] }
 0x1f6   : > { %8836 = vmatprep.subr.bf16.mxu1 %v8835_v52  ;;  %v8855_v52 = vpack.c.bf16 %v1304_v61, %v1303_v11  ;;  %v1359_v60 = vld [vmem:[%s9610_s12 + $0x2080] sm:$0xff]  ;;  %v1392_v11 = vld [vmem:[%s9610_s12 + $0x2188] sm:$0xff]  ;;  %v2070_v61 = vcombine.high %v312_v43, %v312_v43  ;;  %v1377_v32 = vld [vmem:[%s9610_s12 + $0x2110] sm:$0xff] }
 0x1f7   : > { %v1391_v10 = vld [vmem:[%s9610_s12 + $0x2180] sm:$0xff]  ;;  %v1378_v48 = vld [vmem:[%s9610_s12 + $0x2118] sm:$0xff]  ;;  %v1380_v53 = vld [vmem:[%s9610_s12 + $0x2128] sm:$0xff] }
 0x1f8   : > { %8806 = vmatpush3.bf16.msra.mxu0 %v8805_v36  ;;  %v1306_v36 = vld [vmem:[%s9610_s12 + $0x1ed8] sm:$0xff]  ;;  %v8935_v21 = vpack.c.bf16 %v1392_v11, %v1391_v10  ;;  %v1384_v11 = vld [vmem:[%s9610_s12 + $0x2148] sm:$0xff] }
 0x1f9   : > { %8838 = vmatpush3.bf16.msra.mxu1 %v8837_v20  ;;  %8840 = vmatprep.subr.bf16.mxu0 %v8839_v35  ;;  %v1337_v20 = vld [vmem:[%s9610_s12 + $0x1fd0] sm:$0xff]  ;;  %v1338_v35 = vld [vmem:[%s9610_s12 + $0x1fd8] sm:$0xff]  ;;  %v8859_v29 = vpack.c.bf16 %v1306_v36, %v1305_v7  ;;  %v10876_v7 = vrot.slane %v312_v43, %v9666_v14 }
 0x1fa   : > { %8872 = vmatprep.subr.bf16.mxu1 %v8871_v30  ;;  %v1289_v30 = vld [vmem:[%s9610_s12 + $0x1e50] sm:$0xff]  ;;  %v8891_v33 = vpack.c.bf16 %v1338_v35, %v1337_v20  ;;  %v1394_v20 = vld [vmem:[%s9610_s12 + $0x2198] sm:$0xff]  ;;  %v10881_v35 = vrot.slane %v2070_v61, %v9666_v14 }
 0x1fb   : > { %4304 = vmatmul.mubr.f32.vlgmr.msra.gmra.mrb[28].mxu0 %v10716_v28  ;;  %v1284_v28 = vld [vmem:[%s9610_s12 + $0x1e28] sm:$0xff]  ;;  %v8861_v44 = vpack.c.bf16 %v1290_v31, %v1289_v30  ;;  %v1393_v36 = vld [vmem:[%s9610_s12 + $0x2190] sm:$0xff]  ;;  %v1346_v31 = vld [vmem:[%s9610_s12 + $0x2018] sm:$0xff] }
 0x1fc   : > { %8842 = vmatpush3.bf16.msra.mxu0 %v8841_v40  ;;  %4374 = vmatmul.mubr.f32.vlgmr.msra.gmra.mrb[28].mxu1 %v10721_v50  ;;  %v1333_v50 = vld [vmem:[%s9610_s12 + $0x1fb0] sm:$0xff]  ;;  %v8849_v63 = vpack.c.bf16 %v1284_v28, %v1283_v59  ;;  %v1308_v40 = vld [vmem:[%s9610_s12 + $0x1ee8] sm:$0xff]  ;;  %v1342_v59 = vld [vmem:[%s9610_s12 + $0x1ff8] sm:$0xff] }
 0x1fd   : > { %8874 = vmatpush3.bf16.msra.mxu1 %v8873_v26  ;;  %8844 = vmatprep.subr.bf16.mxu0 %v8843_v46  ;;  %v8883_v9 = vpack.c.bf16 %v1334_v4, %v1333_v50  ;;  %v1339_v26 = vld [vmem:[%s9610_s12 + $0x1fe0] sm:$0xff]  ;;  %v1340_v46 = vld [vmem:[%s9610_s12 + $0x1fe8] sm:$0xff]  ;;  %v8863_v55 = vpack.c.bf16 %v1308_v40, %v1307_v37  ;;  %v1293_v4 = vld [vmem:[%s9610_s12 + $0x1e70] sm:$0xff] }
 0x1fe   : > { %8876 = vmatprep.subr.bf16.mxu1 %v8875_v47  ;;  %4443 = vmatprep.mubr.f32.mxu0 %v2068_v38  ;;  %v1291_v47 = vld [vmem:[%s9610_s12 + $0x1e60] sm:$0xff]  ;;  %v8895_v38 = vpack.c.bf16 %v1340_v46, %v1339_v26  ;;  %v1345_v30 = vld [vmem:[%s9610_s12 + $0x2010] sm:$0xff]  ;;  %v1364_v40 = vld [vmem:[%s9610_s12 + $0x20a8] sm:$0xff]  ;;  %v2085_v26 = vcombine.high %v10876_v7, %v10876_v7 }
 0x1ff   : > { %4513 = vmatprep.mubr.f32.mxu1 %v2069_v56  ;;  %v1310_v56 = vld [vmem:[%s9610_s12 + $0x1ef8] sm:$0xff]  ;;  %v1363_v37 = vld [vmem:[%s9610_s12 + $0x20a0] sm:$0xff]  ;;  %v1369_v61 = vld [vmem:[%s9610_s12 + $0x20d0] sm:$0xff] }
 0x200   : > { %8846 = vmatpush3.bf16.msra.mxu0 %v8845_v34  ;;  %v8867_v50 = vpack.c.bf16 %v1310_v56, %v1309_v54  ;;  %v1395_v46 = vld [vmem:[%s9610_s12 + $0x21a0] sm:$0xff]  ;;  %v1365_v54 = vld [vmem:[%s9610_s12 + $0x20b0] sm:$0xff]  ;;  %v1366_v56 = vld [vmem:[%s9610_s12 + $0x20b8] sm:$0xff] }
 0x201   : > { %8878 = vmatpush3.bf16.msra.mxu1 %v8877_v57  ;;  %8848 = vmatprep.subr.bf16.mxu0 %v8847_v5  ;;  %v1341_v5 = vld [vmem:[%s9610_s12 + $0x1ff0] sm:$0xff] }
 0x202   : > { %8880 = vmatprep.subr.bf16.mxu1 %v8879_v49  ;;  %v8865_v49 = vpack.c.bf16 %v1292_v58, %v1291_v47  ;;  %v8899_v41 = vpack.c.bf16 %v1342_v59, %v1341_v5  ;;  %v8941_v47 = vpack.c.bf16 %v1378_v48, %v1377_v32  ;;  %v8911_v58 = vpack.c.bf16 %v1364_v40, %v1363_v37  ;;  %v1356_v48 = vld [vmem:[%s9610_s12 + $0x2068] sm:$0xff]  ;;  %v1387_v37 = vld [vmem:[%s9610_s12 + $0x2160] sm:$0xff] }
 0x203   : > { %v8915_v59 = vpack.c.bf16 %v1366_v56, %v1365_v54 }
 0x204   : > { %8850 = vmatpush3.bf16.msra.mxu0 %v8849_v63  ;;  %v1294_v63 = vld [vmem:[%s9610_s12 + $0x1e78] sm:$0xff] }
 0x205   : > { %8882 = vmatpush3.bf16.msra.mxu1 %v8881_v15  ;;  %8852 = vmatprep.subr.bf16.mxu0 %v8851_v6  ;;  %v1325_v15 = vld [vmem:[%s9610_s12 + $0x1f70] sm:$0xff] }
 0x206   : > { %8884 = vmatprep.subr.bf16.mxu1 %v8883_v9  ;;  %v1360_v9 = vld [vmem:[%s9610_s12 + $0x2088] sm:$0xff]  ;;  %v8901_v13 = vpack.c.bf16 %v1326_v8, %v1325_v15  ;;  %v1351_v8 = vld [vmem:[%s9610_s12 + $0x2040] sm:$0xff] }
 0x208   : > { %8854 = vmatpush3.bf16.msra.mxu0 %v8853_v27  ;;  %v8903_v27 = vpack.c.bf16 %v1360_v9, %v1359_v60  ;;  %v1352_v60 = vld [vmem:[%s9610_s12 + $0x2048] sm:$0xff]  ;;  %v1383_v9 = vld [vmem:[%s9610_s12 + $0x2140] sm:$0xff] }
 0x209   : > { %8886 = vmatpush3.bf16.msra.mxu1 %v8885_v16  ;;  %8856 = vmatprep.subr.bf16.mxu0 %v8855_v52  ;;  %v1343_v16 = vld [vmem:[%s9610_s12 + $0x2000] sm:$0xff]  ;;  %v1344_v52 = vld [vmem:[%s9610_s12 + $0x2008] sm:$0xff] }
 0x20a   : > { %8888 = vmatprep.subr.bf16.mxu1 %v8887_v17  ;;  %v1361_v17 = vld [vmem:[%s9610_s12 + $0x2090] sm:$0xff] }
 0x20c   : > { %8858 = vmatpush3.bf16.msra.mxu0 %v8857_v23  ;;  %v8905_v23 = vpack.c.bf16 %v1344_v52, %v1343_v16  ;;  %v8921_v16 = vpack.c.bf16 %v1352_v60, %v1351_v8  ;;  %v8953_v52 = vpack.c.bf16 %v1384_v11, %v1383_v9  ;;  %v1439_v8 = vld [vmem:[%s9610_s12 + $0x2300] sm:$0xff]  ;;  %v1440_v9 = vld [vmem:[%s9610_s12 + $0x2308] sm:$0xff]  ;;  %v1426_v11 = vld [vmem:[%s9610_s12 + $0x2298] sm:$0xff] }
 0x20d   : > { %8890 = vmatpush3.bf16.msra.mxu1 %v8889_v2  ;;  %8860 = vmatprep.subr.bf16.mxu0 %v8859_v29  ;;  %v8937_v2 = vpack.c.bf16 %v1376_v22, %v1375_v19  ;;  %v8907_v29 = vpack.c.bf16 %v1362_v24, %v1361_v17  ;;  %v1354_v22 = vld [vmem:[%s9610_s12 + $0x2058] sm:$0xff]  ;;  %v1385_v17 = vld [vmem:[%s9610_s12 + $0x2150] sm:$0xff] }
 0x20e   : > { %v6801_v51 = vpop.f32.mrb[16].mxu0  ;;  %8892 = vmatprep.subr.bf16.mxu1 %v8891_v33  ;;  %v8939_v33 = vpack.c.bf16 %v1394_v20, %v1393_v36  ;;  %v1386_v36 = vld [vmem:[%s9610_s12 + $0x2158] sm:$0xff]  ;;  %v1371_v20 = vld [vmem:[%s9610_s12 + $0x20e0] sm:$0xff] }
 0x20f   : > { %v6802_v34 = vpop.f32.mrb[17].mxu0  ;;  %v6836_v57 = vpop.f32.mrb[16].mxu1 }
 0x210   : > { %v6803_v28 = vadd.f32 %v6802_v34, %v6801_v51  ;;  %8862 = vmatpush3.bf16.msra.mxu0 %v8861_v44  ;;  %v6837_v62 = vpop.f32.mrb[17].mxu1  ;;  %v1396_v44 = vld [vmem:[%s9610_s12 + $0x21a8] sm:$0xff]  ;;  %v1379_v51 = vld [vmem:[%s9610_s12 + $0x2120] sm:$0xff]  ;;  %v1398_v34 = vld [vmem:[%s9610_s12 + $0x21b8] sm:$0xff] }
 0x211   : > { %v6838_v0 = vadd.f32 %v6837_v62, %v6836_v57  ;;  %8894 = vmatpush3.bf16.msra.mxu1 %v8893_v45  ;;  %8864 = vmatprep.subr.bf16.mxu0 %v8863_v55  ;;  %v2086_v45 = vcombine.high %v10881_v35, %v10881_v35  ;;  %v8909_v55 = vpack.c.bf16 %v1346_v31, %v1345_v30  ;;  %v1350_v62 = vld [vmem:[%s9610_s12 + $0x2038] sm:$0xff] }
 0x212   : > { %v3466_v6 = vadd.f32 %v6803_v28, %v10787_v25  ;;  %8896 = vmatprep.subr.bf16.mxu1 %v8895_v38  ;;  %v8869_v25 = vpack.c.bf16 %v1294_v63, %v1293_v4  ;;  %v8943_v38 = vpack.c.bf16 %v1396_v44, %v1395_v46  ;;  %v8945_v5 = vpack.c.bf16 %v1380_v53, %v1379_v51  ;;  %v1349_v28 = vld [vmem:[%s9610_s12 + $0x2030] sm:$0xff]  ;;  %v1399_v4 = vld [vmem:[%s9610_s12 + $0x21c0] sm:$0xff]  ;;  %v1400_v63 = vld [vmem:[%s9610_s12 + $0x21c8] sm:$0xff] }
 0x213   : > { %v8917_v15 = vpack.c.bf16 %v1350_v62, %v1349_v28  ;;  %v8951_v10 = vpack.c.bf16 %v1400_v63, %v1399_v4  ;;  %v8957_v31 = vpack.c.bf16 %v1386_v36, %v1385_v17  ;;  %v1388_v46 = vld [vmem:[%s9610_s12 + $0x2168] sm:$0xff]  ;;  %v1373_v44 = vld [vmem:[%s9610_s12 + $0x20f0] sm:$0xff]  ;;  %v1390_v62 = vld [vmem:[%s9610_s12 + $0x2178] sm:$0xff] }
 0x214   : > { %v10867_v12 = vadd.f32 %v6838_v0, %v3466_v6  ;;  %8866 = vmatpush3.bf16.msra.mxu0 %v8865_v49  ;;  %v1381_v49 = vld [vmem:[%s9610_s12 + $0x2130] sm:$0xff]  ;;  %v1382_v0 = vld [vmem:[%s9610_s12 + $0x2138] sm:$0xff]  ;;  %v313_v53 = vld [vmem:[%s9605_s8 + $0x88] sm:$0xff]  ;;  %v8961_v56 = vpack.c.bf16 %v1388_v46, %v1387_v37 }
 0x215   : > { %8898 = vmatpush3.bf16.msra.mxu1 %v8897_v3  ;;  %8868 = vmatprep.subr.bf16.mxu0 %v8867_v50  ;;  %v1367_v3 = vld [vmem:[%s9610_s12 + $0x20c0] sm:$0xff]  ;;  %v1368_v50 = vld [vmem:[%s9610_s12 + $0x20c8] sm:$0xff]  ;;  %v8949_v6 = vpack.c.bf16 %v1382_v0, %v1381_v49  ;;  %v1441_v17 = vld [vmem:[%s9610_s12 + $0x2310] sm:$0xff] }
 0x216   : > { %8900 = vmatprep.subr.bf16.mxu1 %v8899_v41  ;;  %v8919_v41 = vpack.c.bf16 %v1368_v50, %v1367_v3  ;;  %v1423_v49 = vld [vmem:[%s9610_s12 + $0x2280] sm:$0xff]  ;;  %v1456_v3 = vld [vmem:[%s9610_s12 + $0x2388] sm:$0xff]  ;;  %v2087_v50 = vcombine.high %v313_v53, %v313_v53  ;;  %v1442_v36 = vld [vmem:[%s9610_s12 + $0x2318] sm:$0xff] }
 0x217   : > { %v1455_v0 = vld [vmem:[%s9610_s12 + $0x2380] sm:$0xff]  ;;  %v1444_v46 = vld [vmem:[%s9610_s12 + $0x2328] sm:$0xff] }
 0x218   : > { %8870 = vmatpush3.bf16.msra.mxu0 %v8869_v25  ;;  %v1370_v25 = vld [vmem:[%s9610_s12 + $0x20d8] sm:$0xff]  ;;  %v8999_v60 = vpack.c.bf16 %v1456_v3, %v1455_v0  ;;  %v1411_v37 = vld [vmem:[%s9610_s12 + $0x2220] sm:$0xff]  ;;  %v1448_v3 = vld [vmem:[%s9610_s12 + $0x2348] sm:$0xff] }
 0x219   : > { %8902 = vmatpush3.bf16.msra.mxu1 %v8901_v13  ;;  %8904 = vmatprep.subr.bf16.mxu0 %v8903_v27  ;;  %v1401_v13 = vld [vmem:[%s9610_s12 + $0x21d0] sm:$0xff]  ;;  %v1402_v27 = vld [vmem:[%s9610_s12 + $0x21d8] sm:$0xff]  ;;  %v8923_v19 = vpack.c.bf16 %v1370_v25, %v1369_v61  ;;  %v10956_v61 = vrot.slane %v313_v53, %v9666_v14 }
 0x21a   : > { %8936 = vmatprep.subr.bf16.mxu1 %v8935_v21  ;;  %v1353_v21 = vld [vmem:[%s9610_s12 + $0x2050] sm:$0xff]  ;;  %v8955_v24 = vpack.c.bf16 %v1402_v27, %v1401_v13  ;;  %v1458_v13 = vld [vmem:[%s9610_s12 + $0x2398] sm:$0xff]  ;;  %v10961_v27 = vrot.slane %v2087_v50, %v9666_v14 }
 0x21b   : > { %4444 = vmatmul.mubr.f32.vlgmr.msra.gmra.mrb[30].mxu0 %v10796_v18  ;;  %v1348_v18 = vld [vmem:[%s9610_s12 + $0x2028] sm:$0xff]  ;;  %v8925_v30 = vpack.c.bf16 %v1354_v22, %v1353_v21  ;;  %v1457_v25 = vld [vmem:[%s9610_s12 + $0x2390] sm:$0xff]  ;;  %v1410_v22 = vld [vmem:[%s9610_s12 + $0x2218] sm:$0xff] }
 0x21c   : > { %8906 = vmatpush3.bf16.msra.mxu0 %v8905_v23  ;;  %4514 = vmatmul.mubr.f32.vlgmr.msra.gmra.mrb[30].mxu1 %v10801_v39  ;;  %v1397_v39 = vld [vmem:[%s9610_s12 + $0x21b0] sm:$0xff]  ;;  %v8913_v57 = vpack.c.bf16 %v1348_v18, %v1347_v42  ;;  %v1372_v23 = vld [vmem:[%s9610_s12 + $0x20e8] sm:$0xff]  ;;  %v1406_v42 = vld [vmem:[%s9610_s12 + $0x21f8] sm:$0xff] }
 0x21d   : > { %8938 = vmatpush3.bf16.msra.mxu1 %v8937_v2  ;;  %8908 = vmatprep.subr.bf16.mxu0 %v8907_v29  ;;  %v8947_v43 = vpack.c.bf16 %v1398_v34, %v1397_v39  ;;  %v1403_v2 = vld [vmem:[%s9610_s12 + $0x21e0] sm:$0xff]  ;;  %v1404_v29 = vld [vmem:[%s9610_s12 + $0x21e8] sm:$0xff]  ;;  %v8927_v32 = vpack.c.bf16 %v1372_v23, %v1371_v20  ;;  %v1357_v34 = vld [vmem:[%s9610_s12 + $0x2070] sm:$0xff] }
 0x21e   : > { %8940 = vmatprep.subr.bf16.mxu1 %v8939_v33  ;;  %4583 = vmatprep.mubr.f32.mxu0 %v2085_v26  ;;  %v1355_v33 = vld [vmem:[%s9610_s12 + $0x2060] sm:$0xff]  ;;  %v8959_v26 = vpack.c.bf16 %v1404_v29, %v1403_v2  ;;  %v1409_v21 = vld [vmem:[%s9610_s12 + $0x2210] sm:$0xff]  ;;  %v1428_v23 = vld [vmem:[%s9610_s12 + $0x22a8] sm:$0xff]  ;;  %v2102_v2 = vcombine.high %v10956_v61, %v10956_v61 }
 0x21f   : > { %4653 = vmatprep.mubr.f32.mxu1 %v2086_v45  ;;  %v1374_v45 = vld [vmem:[%s9610_s12 + $0x20f8] sm:$0xff]  ;;  %v1427_v20 = vld [vmem:[%s9610_s12 + $0x22a0] sm:$0xff]  ;;  %v1433_v50 = vld [vmem:[%s9610_s12 + $0x22d0] sm:$0xff] }
 0x220   : > { %8910 = vmatpush3.bf16.msra.mxu0 %v8909_v55  ;;  %v8931_v39 = vpack.c.bf16 %v1374_v45, %v1373_v44  ;;  %v1459_v29 = vld [vmem:[%s9610_s12 + $0x23a0] sm:$0xff]  ;;  %v1429_v44 = vld [vmem:[%s9610_s12 + $0x22b0] sm:$0xff]  ;;  %v1430_v45 = vld [vmem:[%s9610_s12 + $0x22b8] sm:$0xff] }
 0x221   : > { %8942 = vmatpush3.bf16.msra.mxu1 %v8941_v47  ;;  %8912 = vmatprep.subr.bf16.mxu0 %v8911_v58  ;;  %v1405_v58 = vld [vmem:[%s9610_s12 + $0x21f0] sm:$0xff] }
 0x222   : > { %8944 = vmatprep.subr.bf16.mxu1 %v8943_v38  ;;  %v8929_v38 = vpack.c.bf16 %v1356_v48, %v1355_v33  ;;  %v8963_v28 = vpack.c.bf16 %v1406_v42, %v1405_v58  ;;  %v9005_v33 = vpack.c.bf16 %v1442_v36, %v1441_v17  ;;  %v8975_v48 = vpack.c.bf16 %v1428_v23, %v1427_v20  ;;  %v1420_v36 = vld [vmem:[%s9610_s12 + $0x2268] sm:$0xff]  ;;  %v1451_v20 = vld [vmem:[%s9610_s12 + $0x2360] sm:$0xff] }
 0x223   : > { %v8979_v42 = vpack.c.bf16 %v1430_v45, %v1429_v44 }
 0x224   : > { %8914 = vmatpush3.bf16.msra.mxu0 %v8913_v57  ;;  %v1358_v57 = vld [vmem:[%s9610_s12 + $0x2078] sm:$0xff] }
 0x225   : > { %8946 = vmatpush3.bf16.msra.mxu1 %v8945_v5  ;;  %8916 = vmatprep.subr.bf16.mxu0 %v8915_v59  ;;  %v1389_v5 = vld [vmem:[%s9610_s12 + $0x2170] sm:$0xff] }
 0x226   : > { %8948 = vmatprep.subr.bf16.mxu1 %v8947_v43  ;;  %v1424_v43 = vld [vmem:[%s9610_s12 + $0x2288] sm:$0xff]  ;;  %v8965_v63 = vpack.c.bf16 %v1390_v62, %v1389_v5  ;;  %v1415_v62 = vld [vmem:[%s9610_s12 + $0x2240] sm:$0xff] }
 0x228   : > { %8918 = vmatpush3.bf16.msra.mxu0 %v8917_v15  ;;  %v8967_v15 = vpack.c.bf16 %v1424_v43, %v1423_v49  ;;  %v1416_v49 = vld [vmem:[%s9610_s12 + $0x2248] sm:$0xff]  ;;  %v1447_v43 = vld [vmem:[%s9610_s12 + $0x2340] sm:$0xff] }
 0x229   : > { %8950 = vmatpush3.bf16.msra.mxu1 %v8949_v6  ;;  %8920 = vmatprep.subr.bf16.mxu0 %v8919_v41  ;;  %v1407_v6 = vld [vmem:[%s9610_s12 + $0x2200] sm:$0xff]  ;;  %v1408_v41 = vld [vmem:[%s9610_s12 + $0x2208] sm:$0xff] }
 0x22a   : > { %8952 = vmatprep.subr.bf16.mxu1 %v8951_v10  ;;  %v1425_v10 = vld [vmem:[%s9610_s12 + $0x2290] sm:$0xff] }
 0x22c   : > { %8922 = vmatpush3.bf16.msra.mxu0 %v8921_v16  ;;  %v8969_v16 = vpack.c.bf16 %v1408_v41, %v1407_v6  ;;  %v8985_v6 = vpack.c.bf16 %v1416_v49, %v1415_v62  ;;  %v9017_v41 = vpack.c.bf16 %v1448_v3, %v1447_v43  ;;  %v1503_v62 = vld [vmem:[%s9610_s12 + $0x2500] sm:$0xff]  ;;  %v1504_v43 = vld [vmem:[%s9610_s12 + $0x2508] sm:$0xff]  ;;  %v1490_v3 = vld [vmem:[%s9610_s12 + $0x2498] sm:$0xff] }
 0x22d   : > { %8954 = vmatpush3.bf16.msra.mxu1 %v8953_v52  ;;  %8924 = vmatprep.subr.bf16.mxu0 %v8923_v19  ;;  %v9001_v52 = vpack.c.bf16 %v1440_v9, %v1439_v8  ;;  %v8971_v19 = vpack.c.bf16 %v1426_v11, %v1425_v10  ;;  %v1418_v9 = vld [vmem:[%s9610_s12 + $0x2258] sm:$0xff]  ;;  %v1449_v10 = vld [vmem:[%s9610_s12 + $0x2350] sm:$0xff] }
 0x22e   : > { %v6871_v40 = vpop.f32.mrb[18].mxu0  ;;  %8956 = vmatprep.subr.bf16.mxu1 %v8955_v24  ;;  %v9003_v24 = vpack.c.bf16 %v1458_v13, %v1457_v25  ;;  %v1450_v25 = vld [vmem:[%s9610_s12 + $0x2358] sm:$0xff]  ;;  %v1435_v13 = vld [vmem:[%s9610_s12 + $0x22e0] sm:$0xff] }
 0x22f   : > { %v6872_v55 = vpop.f32.mrb[19].mxu0  ;;  %v6906_v47 = vpop.f32.mrb[18].mxu1 }
 0x230   : > { %v6873_v18 = vadd.f32 %v6872_v55, %v6871_v40  ;;  %8926 = vmatpush3.bf16.msra.mxu0 %v8925_v30  ;;  %v6907_v51 = vpop.f32.mrb[19].mxu1  ;;  %v1460_v30 = vld [vmem:[%s9610_s12 + $0x23a8] sm:$0xff]  ;;  %v1443_v40 = vld [vmem:[%s9610_s12 + $0x2320] sm:$0xff]  ;;  %v1462_v55 = vld [vmem:[%s9610_s12 + $0x23b8] sm:$0xff] }
 0x231   : > { %v6908_v54 = vadd.f32 %v6907_v51, %v6906_v47  ;;  %8958 = vmatpush3.bf16.msra.mxu1 %v8957_v31  ;;  %8928 = vmatprep.subr.bf16.mxu0 %v8927_v32  ;;  %v2103_v31 = vcombine.high %v10961_v27, %v10961_v27  ;;  %v8973_v32 = vpack.c.bf16 %v1410_v22, %v1409_v21  ;;  %v1414_v51 = vld [vmem:[%s9610_s12 + $0x2238] sm:$0xff] }
 0x232   : > { %v3606_v59 = vadd.f32 %v6873_v18, %v10867_v12  ;;  %8960 = vmatprep.subr.bf16.mxu1 %v8959_v26  ;;  %v8933_v12 = vpack.c.bf16 %v1358_v57, %v1357_v34  ;;  %v9007_v26 = vpack.c.bf16 %v1460_v30, %v1459_v29  ;;  %v9009_v58 = vpack.c.bf16 %v1444_v46, %v1443_v40  ;;  %v1413_v18 = vld [vmem:[%s9610_s12 + $0x2230] sm:$0xff]  ;;  %v1463_v34 = vld [vmem:[%s9610_s12 + $0x23c0] sm:$0xff]  ;;  %v1464_v57 = vld [vmem:[%s9610_s12 + $0x23c8] sm:$0xff] }
 0x233   : > { %v8981_v5 = vpack.c.bf16 %v1414_v51, %v1413_v18  ;;  %v9015_v0 = vpack.c.bf16 %v1464_v57, %v1463_v34  ;;  %v9021_v22 = vpack.c.bf16 %v1450_v25, %v1449_v10  ;;  %v1452_v29 = vld [vmem:[%s9610_s12 + $0x2368] sm:$0xff]  ;;  %v1437_v30 = vld [vmem:[%s9610_s12 + $0x22f0] sm:$0xff]  ;;  %v1454_v51 = vld [vmem:[%s9610_s12 + $0x2378] sm:$0xff] }
 0x234   : > { %v10947_v4 = vadd.f32 %v6908_v54, %v3606_v59  ;;  %8930 = vmatpush3.bf16.msra.mxu0 %v8929_v38  ;;  %v1445_v38 = vld [vmem:[%s9610_s12 + $0x2330] sm:$0xff]  ;;  %v1446_v54 = vld [vmem:[%s9610_s12 + $0x2338] sm:$0xff]  ;;  %v9025_v45 = vpack.c.bf16 %v1452_v29, %v1451_v20  ;;  %v1475_v20 = vld [vmem:[%s9610_s12 + $0x2420] sm:$0xff] }
 0x235   : > { %8962 = vmatpush3.bf16.msra.mxu1 %v8961_v56  ;;  %8932 = vmatprep.subr.bf16.mxu0 %v8931_v39  ;;  %v1431_v56 = vld [vmem:[%s9610_s12 + $0x22c0] sm:$0xff]  ;;  %v1432_v39 = vld [vmem:[%s9610_s12 + $0x22c8] sm:$0xff]  ;;  %v9013_v59 = vpack.c.bf16 %v1446_v54, %v1445_v38  ;;  %v314_v46 = vld [vmem:[%s9605_s8 + $0x90] sm:$0xff] }
 0x236   : > { %8964 = vmatprep.subr.bf16.mxu1 %v8963_v28  ;;  %v8983_v28 = vpack.c.bf16 %v1432_v39, %v1431_v56  ;;  %v1487_v38 = vld [vmem:[%s9610_s12 + $0x2480] sm:$0xff]  ;;  %v1520_v56 = vld [vmem:[%s9610_s12 + $0x2588] sm:$0xff]  ;;  %v2104_v39 = vcombine.high %v314_v46, %v314_v46  ;;  %v1505_v10 = vld [vmem:[%s9610_s12 + $0x2510] sm:$0xff] }
 0x237   : > { %v1519_v54 = vld [vmem:[%s9610_s12 + $0x2580] sm:$0xff]  ;;  %v1506_v25 = vld [vmem:[%s9610_s12 + $0x2518] sm:$0xff]  ;;  %v1508_v29 = vld [vmem:[%s9610_s12 + $0x2528] sm:$0xff] }
 0x238   : > { %8934 = vmatpush3.bf16.msra.mxu0 %v8933_v12  ;;  %v1434_v12 = vld [vmem:[%s9610_s12 + $0x22d8] sm:$0xff]  ;;  %v9063_v49 = vpack.c.bf16 %v1520_v56, %v1519_v54  ;;  %v1512_v56 = vld [vmem:[%s9610_s12 + $0x2548] sm:$0xff] }
 0x239   : > { %8966 = vmatpush3.bf16.msra.mxu1 %v8965_v63  ;;  %8968 = vmatprep.subr.bf16.mxu0 %v8967_v15  ;;  %v1465_v63 = vld [vmem:[%s9610_s12 + $0x23d0] sm:$0xff]  ;;  %v1466_v15 = vld [vmem:[%s9610_s12 + $0x23d8] sm:$0xff]  ;;  %v8987_v8 = vpack.c.bf16 %v1434_v12, %v1433_v50  ;;  %v11036_v50 = vrot.slane %v314_v46, %v9666_v14 }
 0x23a   : > { %9000 = vmatprep.subr.bf16.mxu1 %v8999_v60  ;;  %v1417_v60 = vld [vmem:[%s9610_s12 + $0x2250] sm:$0xff]  ;;  %v9019_v11 = vpack.c.bf16 %v1466_v15, %v1465_v63  ;;  %v1522_v63 = vld [vmem:[%s9610_s12 + $0x2598] sm:$0xff]  ;;  %v11041_v15 = vrot.slane %v2104_v39, %v9666_v14 }
 0x23b   : > { %4584 = vmatmul.mubr.f32.vlgmr.msra.gmra.mrb[32].mxu0 %v10876_v7  ;;  %v1412_v7 = vld [vmem:[%s9610_s12 + $0x2228] sm:$0xff]  ;;  %v8989_v21 = vpack.c.bf16 %v1418_v9, %v1417_v60  ;;  %v1521_v12 = vld [vmem:[%s9610_s12 + $0x2590] sm:$0xff]  ;;  %v1474_v9 = vld [vmem:[%s9610_s12 + $0x2418] sm:$0xff] }
 0x23c   : > { %8970 = vmatpush3.bf16.msra.mxu0 %v8969_v16  ;;  %4654 = vmatmul.mubr.f32.vlgmr.msra.gmra.mrb[32].mxu1 %v10881_v35  ;;  %v1461_v35 = vld [vmem:[%s9610_s12 + $0x23b0] sm:$0xff]  ;;  %v8977_v47 = vpack.c.bf16 %v1412_v7, %v1411_v37  ;;  %v1436_v16 = vld [vmem:[%s9610_s12 + $0x22e8] sm:$0xff]  ;;  %v1470_v37 = vld [vmem:[%s9610_s12 + $0x23f8] sm:$0xff] }
 0x23d   : > { %9002 = vmatpush3.bf16.msra.mxu1 %v9001_v52  ;;  %8972 = vmatprep.subr.bf16.mxu0 %v8971_v19  ;;  %v9011_v53 = vpack.c.bf16 %v1462_v55, %v1461_v35  ;;  %v1467_v52 = vld [vmem:[%s9610_s12 + $0x23e0] sm:$0xff]  ;;  %v1468_v19 = vld [vmem:[%s9610_s12 + $0x23e8] sm:$0xff]  ;;  %v8991_v17 = vpack.c.bf16 %v1436_v16, %v1435_v13  ;;  %v1421_v55 = vld [vmem:[%s9610_s12 + $0x2270] sm:$0xff] }
 0x23e   : > { %9004 = vmatprep.subr.bf16.mxu1 %v9003_v24  ;;  %4723 = vmatprep.mubr.f32.mxu0 %v2102_v2  ;;  %v1419_v24 = vld [vmem:[%s9610_s12 + $0x2260] sm:$0xff]  ;;  %v9023_v2 = vpack.c.bf16 %v1468_v19, %v1467_v52  ;;  %v1473_v60 = vld [vmem:[%s9610_s12 + $0x2410] sm:$0xff]  ;;  %v1492_v16 = vld [vmem:[%s9610_s12 + $0x24a8] sm:$0xff]  ;;  %v2119_v52 = vcombine.high %v11036_v50, %v11036_v50 }
 0x23f   : > { %4793 = vmatprep.mubr.f32.mxu1 %v2103_v31  ;;  %v1438_v31 = vld [vmem:[%s9610_s12 + $0x22f8] sm:$0xff]  ;;  %v1491_v13 = vld [vmem:[%s9610_s12 + $0x24a0] sm:$0xff]  ;;  %v1497_v39 = vld [vmem:[%s9610_s12 + $0x24d0] sm:$0xff] }
 0x240   : > { %8974 = vmatpush3.bf16.msra.mxu0 %v8973_v32  ;;  %v8995_v35 = vpack.c.bf16 %v1438_v31, %v1437_v30  ;;  %v1523_v19 = vld [vmem:[%s9610_s12 + $0x25a0] sm:$0xff]  ;;  %v1493_v30 = vld [vmem:[%s9610_s12 + $0x24b0] sm:$0xff]  ;;  %v1494_v31 = vld [vmem:[%s9610_s12 + $0x24b8] sm:$0xff] }
 0x241   : > { %9006 = vmatpush3.bf16.msra.mxu1 %v9005_v33  ;;  %8976 = vmatprep.subr.bf16.mxu0 %v8975_v48  ;;  %v1469_v48 = vld [vmem:[%s9610_s12 + $0x23f0] sm:$0xff] }
 0x242   : > { %9008 = vmatprep.subr.bf16.mxu1 %v9007_v26  ;;  %v8993_v26 = vpack.c.bf16 %v1420_v36, %v1419_v24  ;;  %v9027_v18 = vpack.c.bf16 %v1470_v37, %v1469_v48  ;;  %v9069_v24 = vpack.c.bf16 %v1506_v25, %v1505_v10  ;;  %v9039_v36 = vpack.c.bf16 %v1492_v16, %v1491_v13  ;;  %v1484_v25 = vld [vmem:[%s9610_s12 + $0x2468] sm:$0xff]  ;;  %v1515_v13 = vld [vmem:[%s9610_s12 + $0x2560] sm:$0xff] }
 0x243   : > { %v9043_v37 = vpack.c.bf16 %v1494_v31, %v1493_v30 }
 0x244   : > { %8978 = vmatpush3.bf16.msra.mxu0 %v8977_v47  ;;  %v1422_v47 = vld [vmem:[%s9610_s12 + $0x2278] sm:$0xff] }
 0x245   : > { %9010 = vmatpush3.bf16.msra.mxu1 %v9009_v58  ;;  %8980 = vmatprep.subr.bf16.mxu0 %v8979_v42  ;;  %v1453_v58 = vld [vmem:[%s9610_s12 + $0x2370] sm:$0xff] }
 0x246   : > { %9012 = vmatprep.subr.bf16.mxu1 %v9011_v53  ;;  %v1488_v53 = vld [vmem:[%s9610_s12 + $0x2488] sm:$0xff]  ;;  %v9029_v57 = vpack.c.bf16 %v1454_v51, %v1453_v58  ;;  %v1479_v51 = vld [vmem:[%s9610_s12 + $0x2440] sm:$0xff] }
 0x248   : > { %8982 = vmatpush3.bf16.msra.mxu0 %v8981_v5  ;;  %v9031_v5 = vpack.c.bf16 %v1488_v53, %v1487_v38  ;;  %v1480_v38 = vld [vmem:[%s9610_s12 + $0x2448] sm:$0xff]  ;;  %v1511_v53 = vld [vmem:[%s9610_s12 + $0x2540] sm:$0xff] }
 0x249   : > { %9014 = vmatpush3.bf16.msra.mxu1 %v9013_v59  ;;  %8984 = vmatprep.subr.bf16.mxu0 %v8983_v28  ;;  %v1471_v59 = vld [vmem:[%s9610_s12 + $0x2400] sm:$0xff]  ;;  %v1472_v28 = vld [vmem:[%s9610_s12 + $0x2408] sm:$0xff] }
 0x24a   : > { %9016 = vmatprep.subr.bf16.mxu1 %v9015_v0  ;;  %v1489_v0 = vld [vmem:[%s9610_s12 + $0x2490] sm:$0xff] }
 0x24c   : > { %8986 = vmatpush3.bf16.msra.mxu0 %v8985_v6  ;;  %v9033_v6 = vpack.c.bf16 %v1472_v28, %v1471_v59  ;;  %v9049_v59 = vpack.c.bf16 %v1480_v38, %v1479_v51  ;;  %v9081_v28 = vpack.c.bf16 %v1512_v56, %v1511_v53  ;;  %v1567_v51 = vld [vmem:[%s9610_s12 + $0x2700] sm:$0xff]  ;;  %v1568_v53 = vld [vmem:[%s9610_s12 + $0x2708] sm:$0xff]  ;;  %v1554_v56 = vld [vmem:[%s9610_s12 + $0x2698] sm:$0xff] }
 0x24d   : > { %9018 = vmatpush3.bf16.msra.mxu1 %v9017_v41  ;;  %8988 = vmatprep.subr.bf16.mxu0 %v8987_v8  ;;  %v9065_v41 = vpack.c.bf16 %v1504_v43, %v1503_v62  ;;  %v9035_v8 = vpack.c.bf16 %v1490_v3, %v1489_v0  ;;  %v1482_v43 = vld [vmem:[%s9610_s12 + $0x2458] sm:$0xff]  ;;  %v1513_v0 = vld [vmem:[%s9610_s12 + $0x2550] sm:$0xff] }
 0x24e   : > { %v6941_v23 = vpop.f32.mrb[20].mxu0  ;;  %9020 = vmatprep.subr.bf16.mxu1 %v9019_v11  ;;  %v9067_v11 = vpack.c.bf16 %v1522_v63, %v1521_v12  ;;  %v1514_v12 = vld [vmem:[%s9610_s12 + $0x2558] sm:$0xff]  ;;  %v1499_v63 = vld [vmem:[%s9610_s12 + $0x24e0] sm:$0xff] }
 0x24f   : > { %v6942_v32 = vpop.f32.mrb[21].mxu0  ;;  %v6976_v33 = vpop.f32.mrb[20].mxu1 }
 0x250   : > { %v6943_v7 = vadd.f32 %v6942_v32, %v6941_v23  ;;  %8990 = vmatpush3.bf16.msra.mxu0 %v8989_v21  ;;  %v6977_v40 = vpop.f32.mrb[21].mxu1  ;;  %v1524_v21 = vld [vmem:[%s9610_s12 + $0x25a8] sm:$0xff]  ;;  %v1507_v23 = vld [vmem:[%s9610_s12 + $0x2520] sm:$0xff]  ;;  %v1526_v32 = vld [vmem:[%s9610_s12 + $0x25b8] sm:$0xff] }
 0x251   : > { %v6978_v44 = vadd.f32 %v6977_v40, %v6976_v33  ;;  %9022 = vmatpush3.bf16.msra.mxu1 %v9021_v22  ;;  %8992 = vmatprep.subr.bf16.mxu0 %v8991_v17  ;;  %v2120_v22 = vcombine.high %v11041_v15, %v11041_v15  ;;  %v9037_v17 = vpack.c.bf16 %v1474_v9, %v1473_v60  ;;  %v1478_v40 = vld [vmem:[%s9610_s12 + $0x2438] sm:$0xff] }
 0x252   : > { %v3746_v42 = vadd.f32 %v6943_v7, %v10947_v4  ;;  %9024 = vmatprep.subr.bf16.mxu1 %v9023_v2  ;;  %v8997_v4 = vpack.c.bf16 %v1422_v47, %v1421_v55  ;;  %v9071_v2 = vpack.c.bf16 %v1524_v21, %v1523_v19  ;;  %v9073_v48 = vpack.c.bf16 %v1508_v29, %v1507_v23  ;;  %v1477_v7 = vld [vmem:[%s9610_s12 + $0x2430] sm:$0xff]  ;;  %v1527_v55 = vld [vmem:[%s9610_s12 + $0x25c0] sm:$0xff]  ;;  %v1528_v47 = vld [vmem:[%s9610_s12 + $0x25c8] sm:$0xff] }
 0x253   : > { %v9045_v58 = vpack.c.bf16 %v1478_v40, %v1477_v7  ;;  %v9079_v54 = vpack.c.bf16 %v1528_v47, %v1527_v55  ;;  %v9085_v9 = vpack.c.bf16 %v1514_v12, %v1513_v0  ;;  %v1516_v19 = vld [vmem:[%s9610_s12 + $0x2568] sm:$0xff]  ;;  %v1501_v21 = vld [vmem:[%s9610_s12 + $0x24f0] sm:$0xff]  ;;  %v315_v29 = vld [vmem:[%s9605_s8 + $0x98] sm:$0xff] }
 0x254   : > { %v11027_v34 = vadd.f32 %v6978_v44, %v3746_v42  ;;  %8994 = vmatpush3.bf16.msra.mxu0 %v8993_v26  ;;  %v1509_v26 = vld [vmem:[%s9610_s12 + $0x2530] sm:$0xff]  ;;  %v1510_v44 = vld [vmem:[%s9610_s12 + $0x2538] sm:$0xff]  ;;  %v9089_v31 = vpack.c.bf16 %v1516_v19, %v1515_v13  ;;  %v1539_v13 = vld [vmem:[%s9610_s12 + $0x2620] sm:$0xff] }
 0x255   : > { %9026 = vmatpush3.bf16.msra.mxu1 %v9025_v45  ;;  %8996 = vmatprep.subr.bf16.mxu0 %v8995_v35  ;;  %v1495_v45 = vld [vmem:[%s9610_s12 + $0x24c0] sm:$0xff]  ;;  %v1496_v35 = vld [vmem:[%s9610_s12 + $0x24c8] sm:$0xff]  ;;  %v9077_v42 = vpack.c.bf16 %v1510_v44, %v1509_v26  ;;  %v1518_v40 = vld [vmem:[%s9610_s12 + $0x2578] sm:$0xff] }
 0x256   : > { %9028 = vmatprep.subr.bf16.mxu1 %v9027_v18  ;;  %v9047_v18 = vpack.c.bf16 %v1496_v35, %v1495_v45  ;;  %v1551_v26 = vld [vmem:[%s9610_s12 + $0x2680] sm:$0xff]  ;;  %v1584_v45 = vld [vmem:[%s9610_s12 + $0x2788] sm:$0xff]  ;;  %v2121_v35 = vcombine.high %v315_v29, %v315_v29  ;;  %v1569_v0 = vld [vmem:[%s9610_s12 + $0x2710] sm:$0xff] }
 0x257   : > { %v1583_v44 = vld [vmem:[%s9610_s12 + $0x2780] sm:$0xff]  ;;  %v1570_v12 = vld [vmem:[%s9610_s12 + $0x2718] sm:$0xff]  ;;  %v1572_v19 = vld [vmem:[%s9610_s12 + $0x2728] sm:$0xff] }
 0x258   : > { %8998 = vmatpush3.bf16.msra.mxu0 %v8997_v4  ;;  %v1498_v4 = vld [vmem:[%s9610_s12 + $0x24d8] sm:$0xff]  ;;  %v9127_v38 = vpack.c.bf16 %v1584_v45, %v1583_v44  ;;  %v1576_v45 = vld [vmem:[%s9610_s12 + $0x2748] sm:$0xff] }
 0x259   : > { %9030 = vmatpush3.bf16.msra.mxu1 %v9029_v57  ;;  %9032 = vmatprep.subr.bf16.mxu0 %v9031_v5  ;;  %v1529_v57 = vld [vmem:[%s9610_s12 + $0x25d0] sm:$0xff]  ;;  %v1530_v5 = vld [vmem:[%s9610_s12 + $0x25d8] sm:$0xff]  ;;  %v9051_v62 = vpack.c.bf16 %v1498_v4, %v1497_v39  ;;  %v11116_v39 = vrot.slane %v315_v29, %v9666_v14 }
 0x25a   : > { %9064 = vmatprep.subr.bf16.mxu1 %v9063_v49  ;;  %v1481_v49 = vld [vmem:[%s9610_s12 + $0x2450] sm:$0xff]  ;;  %v9083_v3 = vpack.c.bf16 %v1530_v5, %v1529_v57  ;;  %v1586_v57 = vld [vmem:[%s9610_s12 + $0x2798] sm:$0xff]  ;;  %v11121_v5 = vrot.slane %v2121_v35, %v9666_v14 }
 0x25b   : > { %4724 = vmatmul.mubr.f32.vlgmr.msra.gmra.mrb[34].mxu0 %v10956_v61  ;;  %v1476_v61 = vld [vmem:[%s9610_s12 + $0x2428] sm:$0xff]  ;;  %v9053_v60 = vpack.c.bf16 %v1482_v43, %v1481_v49  ;;  %v1585_v4 = vld [vmem:[%s9610_s12 + $0x2790] sm:$0xff]  ;;  %v1538_v43 = vld [vmem:[%s9610_s12 + $0x2618] sm:$0xff] }
 0x25c   : > { %9034 = vmatpush3.bf16.msra.mxu0 %v9033_v6  ;;  %4794 = vmatmul.mubr.f32.vlgmr.msra.gmra.mrb[34].mxu1 %v10961_v27  ;;  %v1525_v27 = vld [vmem:[%s9610_s12 + $0x25b0] sm:$0xff]  ;;  %v9041_v33 = vpack.c.bf16 %v1476_v61, %v1475_v20  ;;  %v1500_v6 = vld [vmem:[%s9610_s12 + $0x24e8] sm:$0xff]  ;;  %v1534_v20 = vld [vmem:[%s9610_s12 + $0x25f8] sm:$0xff] }
 0x25d   : > { %9066 = vmatpush3.bf16.msra.mxu1 %v9065_v41  ;;  %9036 = vmatprep.subr.bf16.mxu0 %v9035_v8  ;;  %v9075_v46 = vpack.c.bf16 %v1526_v32, %v1525_v27  ;;  %v1531_v41 = vld [vmem:[%s9610_s12 + $0x25e0] sm:$0xff]  ;;  %v1532_v8 = vld [vmem:[%s9610_s12 + $0x25e8] sm:$0xff]  ;;  %v9055_v10 = vpack.c.bf16 %v1500_v6, %v1499_v63  ;;  %v1485_v32 = vld [vmem:[%s9610_s12 + $0x2470] sm:$0xff] }
 0x25e   : > { %9068 = vmatprep.subr.bf16.mxu1 %v9067_v11  ;;  %4863 = vmatprep.mubr.f32.mxu0 %v2119_v52  ;;  %v1483_v11 = vld [vmem:[%s9610_s12 + $0x2460] sm:$0xff]  ;;  %v9087_v52 = vpack.c.bf16 %v1532_v8, %v1531_v41  ;;  %v1537_v49 = vld [vmem:[%s9610_s12 + $0x2610] sm:$0xff]  ;;  %v1556_v6 = vld [vmem:[%s9610_s12 + $0x26a8] sm:$0xff]  ;;  %v2136_v41 = vcombine.high %v11116_v39, %v11116_v39 }
 0x25f   : > { %4933 = vmatprep.mubr.f32.mxu1 %v2120_v22  ;;  %v1502_v22 = vld [vmem:[%s9610_s12 + $0x24f8] sm:$0xff]  ;;  %v1555_v63 = vld [vmem:[%s9610_s12 + $0x26a0] sm:$0xff]  ;;  %v1561_v35 = vld [vmem:[%s9610_s12 + $0x26d0] sm:$0xff] }
 0x260   : > { %9038 = vmatpush3.bf16.msra.mxu0 %v9037_v17  ;;  %v9059_v27 = vpack.c.bf16 %v1502_v22, %v1501_v21  ;;  %v1587_v8 = vld [vmem:[%s9610_s12 + $0x27a0] sm:$0xff]  ;;  %v1557_v21 = vld [vmem:[%s9610_s12 + $0x26b0] sm:$0xff]  ;;  %v1558_v22 = vld [vmem:[%s9610_s12 + $0x26b8] sm:$0xff] }
 0x261   : > { %9070 = vmatpush3.bf16.msra.mxu1 %v9069_v24  ;;  %9040 = vmatprep.subr.bf16.mxu0 %v9039_v36  ;;  %v1533_v36 = vld [vmem:[%s9610_s12 + $0x25f0] sm:$0xff] }
 0x262   : > { %9072 = vmatprep.subr.bf16.mxu1 %v9071_v2  ;;  %v9057_v2 = vpack.c.bf16 %v1484_v25, %v1483_v11  ;;  %v9091_v7 = vpack.c.bf16 %v1534_v20, %v1533_v36  ;;  %v9133_v11 = vpack.c.bf16 %v1570_v12, %v1569_v0  ;;  %v9103_v25 = vpack.c.bf16 %v1556_v6, %v1555_v63  ;;  %v1548_v12 = vld [vmem:[%s9610_s12 + $0x2668] sm:$0xff]  ;;  %v1579_v63 = vld [vmem:[%s9610_s12 + $0x2760] sm:$0xff] }
 0x263   : > { %v9107_v20 = vpack.c.bf16 %v1558_v22, %v1557_v21 }
 0x264   : > { %9042 = vmatpush3.bf16.msra.mxu0 %v9041_v33  ;;  %v1486_v33 = vld [vmem:[%s9610_s12 + $0x2478] sm:$0xff] }
 0x265   : > { %9074 = vmatpush3.bf16.msra.mxu1 %v9073_v48  ;;  %9044 = vmatprep.subr.bf16.mxu0 %v9043_v37  ;;  %v1517_v48 = vld [vmem:[%s9610_s12 + $0x2570] sm:$0xff] }
 0x266   : > { %9076 = vmatprep.subr.bf16.mxu1 %v9075_v46  ;;  %v1552_v46 = vld [vmem:[%s9610_s12 + $0x2688] sm:$0xff]  ;;  %v9093_v47 = vpack.c.bf16 %v1518_v40, %v1517_v48  ;;  %v1543_v40 = vld [vmem:[%s9610_s12 + $0x2640] sm:$0xff] }
 0x268   : > { %9046 = vmatpush3.bf16.msra.mxu0 %v9045_v58  ;;  %v9095_v58 = vpack.c.bf16 %v1552_v46, %v1551_v26  ;;  %v1544_v26 = vld [vmem:[%s9610_s12 + $0x2648] sm:$0xff]  ;;  %v1575_v46 = vld [vmem:[%s9610_s12 + $0x2740] sm:$0xff] }
 0x269   : > { %9078 = vmatpush3.bf16.msra.mxu1 %v9077_v42  ;;  %9048 = vmatprep.subr.bf16.mxu0 %v9047_v18  ;;  %v1535_v42 = vld [vmem:[%s9610_s12 + $0x2600] sm:$0xff]  ;;  %v1536_v18 = vld [vmem:[%s9610_s12 + $0x2608] sm:$0xff] }
 0x26a   : > { %9080 = vmatprep.subr.bf16.mxu1 %v9079_v54  ;;  %v1553_v54 = vld [vmem:[%s9610_s12 + $0x2690] sm:$0xff] }
 0x26c   : > { %9050 = vmatpush3.bf16.msra.mxu0 %v9049_v59  ;;  %v9097_v59 = vpack.c.bf16 %v1536_v18, %v1535_v42  ;;  %v9113_v42 = vpack.c.bf16 %v1544_v26, %v1543_v40  ;;  %v9145_v18 = vpack.c.bf16 %v1576_v45, %v1575_v46  ;;  %v1631_v40 = vld [vmem:[%s9610_s12 + $0x2900] sm:$0xff]  ;;  %v1632_v46 = vld [vmem:[%s9610_s12 + $0x2908] sm:$0xff]  ;;  %v1618_v45 = vld [vmem:[%s9610_s12 + $0x2898] sm:$0xff] }
 0x26d   : > { %9082 = vmatpush3.bf16.msra.mxu1 %v9081_v28  ;;  %9052 = vmatprep.subr.bf16.mxu0 %v9051_v62  ;;  %v9129_v28 = vpack.c.bf16 %v1568_v53, %v1567_v51  ;;  %v9099_v62 = vpack.c.bf16 %v1554_v56, %v1553_v54  ;;  %v1546_v53 = vld [vmem:[%s9610_s12 + $0x2658] sm:$0xff]  ;;  %v1577_v54 = vld [vmem:[%s9610_s12 + $0x2750] sm:$0xff] }
 0x26e   : > { %v7011_v16 = vpop.f32.mrb[22].mxu0  ;;  %9084 = vmatprep.subr.bf16.mxu1 %v9083_v3  ;;  %v9131_v3 = vpack.c.bf16 %v1586_v57, %v1585_v4  ;;  %v1578_v4 = vld [vmem:[%s9610_s12 + $0x2758] sm:$0xff]  ;;  %v1563_v57 = vld [vmem:[%s9610_s12 + $0x26e0] sm:$0xff] }
 0x26f   : > { %v7012_v17 = vpop.f32.mrb[23].mxu0  ;;  %v7046_v24 = vpop.f32.mrb[22].mxu1 }
 0x270   : > { %v7013_v61 = vadd.f32 %v7012_v17, %v7011_v16  ;;  %9054 = vmatpush3.bf16.msra.mxu0 %v9053_v60  ;;  %v7047_v23 = vpop.f32.mrb[23].mxu1  ;;  %v1588_v60 = vld [vmem:[%s9610_s12 + $0x27a8] sm:$0xff]  ;;  %v1571_v16 = vld [vmem:[%s9610_s12 + $0x2720] sm:$0xff]  ;;  %v1590_v17 = vld [vmem:[%s9610_s12 + $0x27b8] sm:$0xff] }
 0x271   : > { %v7048_v30 = vadd.f32 %v7047_v23, %v7046_v24  ;;  %9086 = vmatpush3.bf16.msra.mxu1 %v9085_v9  ;;  %9056 = vmatprep.subr.bf16.mxu0 %v9055_v10  ;;  %v2137_v9 = vcombine.high %v11121_v5, %v11121_v5  ;;  %v9101_v10 = vpack.c.bf16 %v1538_v43, %v1537_v49  ;;  %v1542_v23 = vld [vmem:[%s9610_s12 + $0x2638] sm:$0xff] }
 0x272   : > { %v3886_v37 = vadd.f32 %v7013_v61, %v11027_v34  ;;  %9088 = vmatprep.subr.bf16.mxu1 %v9087_v52  ;;  %v9061_v34 = vpack.c.bf16 %v1486_v33, %v1485_v32  ;;  %v9135_v52 = vpack.c.bf16 %v1588_v60, %v1587_v8  ;;  %v9137_v36 = vpack.c.bf16 %v1572_v19, %v1571_v16  ;;  %v1541_v61 = vld [vmem:[%s9610_s12 + $0x2630] sm:$0xff]  ;;  %v1591_v32 = vld [vmem:[%s9610_s12 + $0x27c0] sm:$0xff]  ;;  %v1592_v33 = vld [vmem:[%s9610_s12 + $0x27c8] sm:$0xff] }
 0x273   : > { %v9109_v48 = vpack.c.bf16 %v1542_v23, %v1541_v61  ;;  %v9143_v44 = vpack.c.bf16 %v1592_v33, %v1591_v32  ;;  %v9149_v43 = vpack.c.bf16 %v1578_v4, %v1577_v54  ;;  %v1580_v8 = vld [vmem:[%s9610_s12 + $0x2768] sm:$0xff]  ;;  %v1565_v60 = vld [vmem:[%s9610_s12 + $0x26f0] sm:$0xff]  ;;  %v316_v19 = vld [vmem:[%s9605_s8 + $0xa0] sm:$0xff] }
 0x274   : > { %v11107_v55 = vadd.f32 %v7048_v30, %v3886_v37  ;;  %9058 = vmatpush3.bf16.msra.mxu0 %v9057_v2  ;;  %v1573_v2 = vld [vmem:[%s9610_s12 + $0x2730] sm:$0xff]  ;;  %v1574_v30 = vld [vmem:[%s9610_s12 + $0x2738] sm:$0xff]  ;;  %v9153_v22 = vpack.c.bf16 %v1580_v8, %v1579_v63  ;;  %v1603_v63 = vld [vmem:[%s9610_s12 + $0x2820] sm:$0xff] }
 0x275   : > { %9090 = vmatpush3.bf16.msra.mxu1 %v9089_v31  ;;  %9060 = vmatprep.subr.bf16.mxu0 %v9059_v27  ;;  %v1559_v31 = vld [vmem:[%s9610_s12 + $0x26c0] sm:$0xff]  ;;  %v1560_v27 = vld [vmem:[%s9610_s12 + $0x26c8] sm:$0xff]  ;;  %v9141_v37 = vpack.c.bf16 %v1574_v30, %v1573_v2  ;;  %v1582_v23 = vld [vmem:[%s9610_s12 + $0x2778] sm:$0xff] }
 0x276   : > { %9092 = vmatprep.subr.bf16.mxu1 %v9091_v7  ;;  %v9111_v7 = vpack.c.bf16 %v1560_v27, %v1559_v31  ;;  %v1615_v2 = vld [vmem:[%s9610_s12 + $0x2880] sm:$0xff]  ;;  %v1648_v31 = vld [vmem:[%s9610_s12 + $0x2988] sm:$0xff]  ;;  %v2138_v27 = vcombine.high %v316_v19, %v316_v19  ;;  %v1633_v54 = vld [vmem:[%s9610_s12 + $0x2910] sm:$0xff] }
 0x277   : > { %v1647_v30 = vld [vmem:[%s9610_s12 + $0x2980] sm:$0xff]  ;;  %v1634_v4 = vld [vmem:[%s9610_s12 + $0x2918] sm:$0xff]  ;;  %v1636_v8 = vld [vmem:[%s9610_s12 + $0x2928] sm:$0xff] }
 0x278   : > { %9062 = vmatpush3.bf16.msra.mxu0 %v9061_v34  ;;  %v1562_v34 = vld [vmem:[%s9610_s12 + $0x26d8] sm:$0xff]  ;;  %v9191_v26 = vpack.c.bf16 %v1648_v31, %v1647_v30  ;;  %v1640_v31 = vld [vmem:[%s9610_s12 + $0x2948] sm:$0xff] }
 0x279   : > { %9094 = vmatpush3.bf16.msra.mxu1 %v9093_v47  ;;  %9096 = vmatprep.subr.bf16.mxu0 %v9095_v58  ;;  %v1593_v47 = vld [vmem:[%s9610_s12 + $0x27d0] sm:$0xff]  ;;  %v1594_v58 = vld [vmem:[%s9610_s12 + $0x27d8] sm:$0xff]  ;;  %v9115_v51 = vpack.c.bf16 %v1562_v34, %v1561_v35  ;;  %v11196_v35 = vrot.slane %v316_v19, %v9666_v14 }
 0x27a   : > { %9128 = vmatprep.subr.bf16.mxu1 %v9127_v38  ;;  %v1545_v38 = vld [vmem:[%s9610_s12 + $0x2650] sm:$0xff]  ;;  %v9147_v56 = vpack.c.bf16 %v1594_v58, %v1593_v47  ;;  %v1650_v47 = vld [vmem:[%s9610_s12 + $0x2998] sm:$0xff]  ;;  %v11201_v58 = vrot.slane %v2138_v27, %v9666_v14 }
 0x27b   : > { %4864 = vmatmul.mubr.f32.vlgmr.msra.gmra.mrb[36].mxu0 %v11036_v50  ;;  %v1540_v50 = vld [vmem:[%s9610_s12 + $0x2628] sm:$0xff]  ;;  %v9117_v49 = vpack.c.bf16 %v1546_v53, %v1545_v38  ;;  %v1649_v34 = vld [vmem:[%s9610_s12 + $0x2990] sm:$0xff]  ;;  %v1602_v53 = vld [vmem:[%s9610_s12 + $0x2818] sm:$0xff] }
 0x27c   : > { %9098 = vmatpush3.bf16.msra.mxu0 %v9097_v59  ;;  %4934 = vmatmul.mubr.f32.vlgmr.msra.gmra.mrb[36].mxu1 %v11041_v15  ;;  %v1589_v15 = vld [vmem:[%s9610_s12 + $0x27b0] sm:$0xff]  ;;  %v9105_v24 = vpack.c.bf16 %v1540_v50, %v1539_v13  ;;  %v1564_v59 = vld [vmem:[%s9610_s12 + $0x26e8] sm:$0xff]  ;;  %v1598_v13 = vld [vmem:[%s9610_s12 + $0x27f8] sm:$0xff] }
 0x27d   : > { %9130 = vmatpush3.bf16.msra.mxu1 %v9129_v28  ;;  %9100 = vmatprep.subr.bf16.mxu0 %v9099_v62  ;;  %v9139_v29 = vpack.c.bf16 %v1590_v17, %v1589_v15  ;;  %v1595_v28 = vld [vmem:[%s9610_s12 + $0x27e0] sm:$0xff]  ;;  %v1596_v62 = vld [vmem:[%s9610_s12 + $0x27e8] sm:$0xff]  ;;  %v9119_v0 = vpack.c.bf16 %v1564_v59, %v1563_v57  ;;  %v1549_v17 = vld [vmem:[%s9610_s12 + $0x2670] sm:$0xff] }
 0x27e   : > { %9132 = vmatprep.subr.bf16.mxu1 %v9131_v3  ;;  %5003 = vmatprep.mubr.f32.mxu0 %v2136_v41  ;;  %v1547_v3 = vld [vmem:[%s9610_s12 + $0x2660] sm:$0xff]  ;;  %v9151_v41 = vpack.c.bf16 %v1596_v62, %v1595_v28  ;;  %v1601_v38 = vld [vmem:[%s9610_s12 + $0x2810] sm:$0xff]  ;;  %v1620_v59 = vld [vmem:[%s9610_s12 + $0x28a8] sm:$0xff]  ;;  %v2153_v28 = vcombine.high %v11196_v35, %v11196_v35 }
 0x27f   : > { %5073 = vmatprep.mubr.f32.mxu1 %v2137_v9  ;;  %v1566_v9 = vld [vmem:[%s9610_s12 + $0x26f8] sm:$0xff]  ;;  %v1619_v57 = vld [vmem:[%s9610_s12 + $0x28a0] sm:$0xff]  ;;  %v1625_v27 = vld [vmem:[%s9610_s12 + $0x28d0] sm:$0xff] }
 0x280   : > { %9102 = vmatpush3.bf16.msra.mxu0 %v9101_v10  ;;  %v9123_v15 = vpack.c.bf16 %v1566_v9, %v1565_v60  ;;  %v1651_v62 = vld [vmem:[%s9610_s12 + $0x29a0] sm:$0xff]  ;;  %v1621_v60 = vld [vmem:[%s9610_s12 + $0x28b0] sm:$0xff]  ;;  %v1622_v9 = vld [vmem:[%s9610_s12 + $0x28b8] sm:$0xff] }
 0x281   : > { %9134 = vmatpush3.bf16.msra.mxu1 %v9133_v11  ;;  %9104 = vmatprep.subr.bf16.mxu0 %v9103_v25  ;;  %v1597_v25 = vld [vmem:[%s9610_s12 + $0x27f0] sm:$0xff] }
 0x282   : > { %9136 = vmatprep.subr.bf16.mxu1 %v9135_v52  ;;  %v9121_v52 = vpack.c.bf16 %v1548_v12, %v1547_v3  ;;  %v9155_v61 = vpack.c.bf16 %v1598_v13, %v1597_v25  ;;  %v9197_v3 = vpack.c.bf16 %v1634_v4, %v1633_v54  ;;  %v9167_v12 = vpack.c.bf16 %v1620_v59, %v1619_v57  ;;  %v1612_v4 = vld [vmem:[%s9610_s12 + $0x2868] sm:$0xff]  ;;  %v1643_v57 = vld [vmem:[%s9610_s12 + $0x2960] sm:$0xff] }
 0x283   : > { %v9171_v13 = vpack.c.bf16 %v1622_v9, %v1621_v60 }
 0x284   : > { %9106 = vmatpush3.bf16.msra.mxu0 %v9105_v24  ;;  %v1550_v24 = vld [vmem:[%s9610_s12 + $0x2678] sm:$0xff] }
 0x285   : > { %9138 = vmatpush3.bf16.msra.mxu1 %v9137_v36  ;;  %9108 = vmatprep.subr.bf16.mxu0 %v9107_v20  ;;  %v1581_v36 = vld [vmem:[%s9610_s12 + $0x2770] sm:$0xff] }
 0x286   : > { %9140 = vmatprep.subr.bf16.mxu1 %v9139_v29  ;;  %v1616_v29 = vld [vmem:[%s9610_s12 + $0x2888] sm:$0xff]  ;;  %v9157_v33 = vpack.c.bf16 %v1582_v23, %v1581_v36  ;;  %v1607_v23 = vld [vmem:[%s9610_s12 + $0x2840] sm:$0xff] }
 0x288   : > { %9110 = vmatpush3.bf16.msra.mxu0 %v9109_v48  ;;  %v9159_v48 = vpack.c.bf16 %v1616_v29, %v1615_v2  ;;  %v1608_v2 = vld [vmem:[%s9610_s12 + $0x2848] sm:$0xff]  ;;  %v1639_v29 = vld [vmem:[%s9610_s12 + $0x2940] sm:$0xff] }
 0x289   : > { %9142 = vmatpush3.bf16.msra.mxu1 %v9141_v37  ;;  %9112 = vmatprep.subr.bf16.mxu0 %v9111_v7  ;;  %v1599_v37 = vld [vmem:[%s9610_s12 + $0x2800] sm:$0xff]  ;;  %v1600_v7 = vld [vmem:[%s9610_s12 + $0x2808] sm:$0xff] }
 0x28a   : > { %9144 = vmatprep.subr.bf16.mxu1 %v9143_v44  ;;  %v1617_v44 = vld [vmem:[%s9610_s12 + $0x2890] sm:$0xff] }
 0x28c   : > { %9114 = vmatpush3.bf16.msra.mxu0 %v9113_v42  ;;  %v9161_v42 = vpack.c.bf16 %v1600_v7, %v1599_v37  ;;  %v9177_v37 = vpack.c.bf16 %v1608_v2, %v1607_v23  ;;  %v9209_v7 = vpack.c.bf16 %v1640_v31, %v1639_v29  ;;  %v1695_v23 = vld [vmem:[%s9610_s12 + $0x2b00] sm:$0xff]  ;;  %v1696_v29 = vld [vmem:[%s9610_s12 + $0x2b08] sm:$0xff]  ;;  %v1682_v31 = vld [vmem:[%s9610_s12 + $0x2a98] sm:$0xff] }
 0x28d   : > { %9146 = vmatpush3.bf16.msra.mxu1 %v9145_v18  ;;  %9116 = vmatprep.subr.bf16.mxu0 %v9115_v51  ;;  %v9193_v18 = vpack.c.bf16 %v1632_v46, %v1631_v40  ;;  %v9163_v51 = vpack.c.bf16 %v1618_v45, %v1617_v44  ;;  %v1610_v46 = vld [vmem:[%s9610_s12 + $0x2858] sm:$0xff]  ;;  %v1641_v44 = vld [vmem:[%s9610_s12 + $0x2950] sm:$0xff] }
 0x28e   : > { %v7081_v6 = vpop.f32.mrb[24].mxu0  ;;  %9148 = vmatprep.subr.bf16.mxu1 %v9147_v56  ;;  %v9195_v56 = vpack.c.bf16 %v1650_v47, %v1649_v34  ;;  %v1642_v34 = vld [vmem:[%s9610_s12 + $0x2958] sm:$0xff]  ;;  %v1627_v47 = vld [vmem:[%s9610_s12 + $0x28e0] sm:$0xff] }
 0x28f   : > { %v7082_v10 = vpop.f32.mrb[25].mxu0  ;;  %v7116_v11 = vpop.f32.mrb[24].mxu1 }
 0x290   : > { %v7083_v50 = vadd.f32 %v7082_v10, %v7081_v6  ;;  %9118 = vmatpush3.bf16.msra.mxu0 %v9117_v49  ;;  %v7117_v16 = vpop.f32.mrb[25].mxu1  ;;  %v1652_v49 = vld [vmem:[%s9610_s12 + $0x29a8] sm:$0xff]  ;;  %v1635_v6 = vld [vmem:[%s9610_s12 + $0x2920] sm:$0xff]  ;;  %v1654_v10 = vld [vmem:[%s9610_s12 + $0x29b8] sm:$0xff] }
 0x291   : > { %v7118_v21 = vadd.f32 %v7117_v16, %v7116_v11  ;;  %9150 = vmatpush3.bf16.msra.mxu1 %v9149_v43  ;;  %9120 = vmatprep.subr.bf16.mxu0 %v9119_v0  ;;  %v2154_v43 = vcombine.high %v11201_v58, %v11201_v58  ;;  %v9165_v0 = vpack.c.bf16 %v1602_v53, %v1601_v38  ;;  %v1606_v16 = vld [vmem:[%s9610_s12 + $0x2838] sm:$0xff] }
 0x292   : > { %v4026_v20 = vadd.f32 %v7083_v50, %v11107_v55  ;;  %9152 = vmatprep.subr.bf16.mxu1 %v9151_v41  ;;  %v9125_v55 = vpack.c.bf16 %v1550_v24, %v1549_v17  ;;  %v9199_v41 = vpack.c.bf16 %v1652_v49, %v1651_v62  ;;  %v9201_v25 = vpack.c.bf16 %v1636_v8, %v1635_v6  ;;  %v1605_v50 = vld [vmem:[%s9610_s12 + $0x2830] sm:$0xff]  ;;  %v1655_v17 = vld [vmem:[%s9610_s12 + $0x29c0] sm:$0xff]  ;;  %v1656_v24 = vld [vmem:[%s9610_s12 + $0x29c8] sm:$0xff] }
 0x293   : > { %v9173_v36 = vpack.c.bf16 %v1606_v16, %v1605_v50  ;;  %v9207_v30 = vpack.c.bf16 %v1656_v24, %v1655_v17  ;;  %v9213_v53 = vpack.c.bf16 %v1642_v34, %v1641_v44  ;;  %v1644_v62 = vld [vmem:[%s9610_s12 + $0x2968] sm:$0xff]  ;;  %v1629_v49 = vld [vmem:[%s9610_s12 + $0x28f0] sm:$0xff]  ;;  %v1646_v16 = vld [vmem:[%s9610_s12 + $0x2978] sm:$0xff] }
 0x294   : > { %v11187_v32 = vadd.f32 %v7118_v21, %v4026_v20  ;;  %9122 = vmatpush3.bf16.msra.mxu0 %v9121_v52  ;;  %v1637_v52 = vld [vmem:[%s9610_s12 + $0x2930] sm:$0xff]  ;;  %v1638_v21 = vld [vmem:[%s9610_s12 + $0x2938] sm:$0xff]  ;;  %v317_v8 = vld [vmem:[%s9605_s8 + $0xa8] sm:$0xff]  ;;  %v9217_v9 = vpack.c.bf16 %v1644_v62, %v1643_v57 }
 0x295   : > { %9154 = vmatpush3.bf16.msra.mxu1 %v9153_v22  ;;  %9124 = vmatprep.subr.bf16.mxu0 %v9123_v15  ;;  %v1623_v22 = vld [vmem:[%s9610_s12 + $0x28c0] sm:$0xff]  ;;  %v1624_v15 = vld [vmem:[%s9610_s12 + $0x28c8] sm:$0xff]  ;;  %v9205_v20 = vpack.c.bf16 %v1638_v21, %v1637_v52  ;;  %v1697_v44 = vld [vmem:[%s9610_s12 + $0x2b10] sm:$0xff] }
 0x296   : > { %9156 = vmatprep.subr.bf16.mxu1 %v9155_v61  ;;  %v9175_v61 = vpack.c.bf16 %v1624_v15, %v1623_v22  ;;  %v1679_v52 = vld [vmem:[%s9610_s12 + $0x2a80] sm:$0xff]  ;;  %v1712_v22 = vld [vmem:[%s9610_s12 + $0x2b88] sm:$0xff]  ;;  %v2155_v15 = vcombine.high %v317_v8, %v317_v8  ;;  %v1698_v34 = vld [vmem:[%s9610_s12 + $0x2b18] sm:$0xff] }
 0x297   : > { %v1711_v21 = vld [vmem:[%s9610_s12 + $0x2b80] sm:$0xff]  ;;  %v1700_v62 = vld [vmem:[%s9610_s12 + $0x2b28] sm:$0xff] }
 0x298   : > { %9126 = vmatpush3.bf16.msra.mxu0 %v9125_v55  ;;  %v1626_v55 = vld [vmem:[%s9610_s12 + $0x28d8] sm:$0xff]  ;;  %v9255_v2 = vpack.c.bf16 %v1712_v22, %v1711_v21  ;;  %v1667_v57 = vld [vmem:[%s9610_s12 + $0x2a20] sm:$0xff]  ;;  %v1704_v22 = vld [vmem:[%s9610_s12 + $0x2b48] sm:$0xff] }
 0x299   : > { %9158 = vmatpush3.bf16.msra.mxu1 %v9157_v33  ;;  %9160 = vmatprep.subr.bf16.mxu0 %v9159_v48  ;;  %v1657_v33 = vld [vmem:[%s9610_s12 + $0x29d0] sm:$0xff]  ;;  %v1658_v48 = vld [vmem:[%s9610_s12 + $0x29d8] sm:$0xff]  ;;  %v9179_v40 = vpack.c.bf16 %v1626_v55, %v1625_v27  ;;  %v11276_v27 = vrot.slane %v317_v8, %v9666_v14 }
 0x29a   : > { %9192 = vmatprep.subr.bf16.mxu1 %v9191_v26  ;;  %v1609_v26 = vld [vmem:[%s9610_s12 + $0x2850] sm:$0xff]  ;;  %v9211_v45 = vpack.c.bf16 %v1658_v48, %v1657_v33  ;;  %v1714_v33 = vld [vmem:[%s9610_s12 + $0x2b98] sm:$0xff]  ;;  %v11281_v48 = vrot.slane %v2155_v15, %v9666_v14 }
 0x29b   : > { %5004 = vmatmul.mubr.f32.vlgmr.msra.gmra.mrb[38].mxu0 %v11116_v39  ;;  %v1604_v39 = vld [vmem:[%s9610_s12 + $0x2828] sm:$0xff]  ;;  %v9181_v38 = vpack.c.bf16 %v1610_v46, %v1609_v26  ;;  %v1713_v55 = vld [vmem:[%s9610_s12 + $0x2b90] sm:$0xff]  ;;  %v1666_v46 = vld [vmem:[%s9610_s12 + $0x2a18] sm:$0xff] }
 0x29c   : > { %9162 = vmatpush3.bf16.msra.mxu0 %v9161_v42  ;;  %5074 = vmatmul.mubr.f32.vlgmr.msra.gmra.mrb[38].mxu1 %v11121_v5  ;;  %v1653_v5 = vld [vmem:[%s9610_s12 + $0x29b0] sm:$0xff]  ;;  %v9169_v11 = vpack.c.bf16 %v1604_v39, %v1603_v63  ;;  %v1628_v42 = vld [vmem:[%s9610_s12 + $0x28e8] sm:$0xff]  ;;  %v1662_v63 = vld [vmem:[%s9610_s12 + $0x29f8] sm:$0xff] }
 0x29d   : > { %9194 = vmatpush3.bf16.msra.mxu1 %v9193_v18  ;;  %9164 = vmatprep.subr.bf16.mxu0 %v9163_v51  ;;  %v9203_v19 = vpack.c.bf16 %v1654_v10, %v1653_v5  ;;  %v1659_v18 = vld [vmem:[%s9610_s12 + $0x29e0] sm:$0xff]  ;;  %v1660_v51 = vld [vmem:[%s9610_s12 + $0x29e8] sm:$0xff]  ;;  %v9183_v54 = vpack.c.bf16 %v1628_v42, %v1627_v47  ;;  %v1613_v10 = vld [vmem:[%s9610_s12 + $0x2870] sm:$0xff] }
 0x29e   : > { %9196 = vmatprep.subr.bf16.mxu1 %v9195_v56  ;;  %5143 = vmatprep.mubr.f32.mxu0 %v2153_v28  ;;  %v1611_v56 = vld [vmem:[%s9610_s12 + $0x2860] sm:$0xff]  ;;  %v9215_v28 = vpack.c.bf16 %v1660_v51, %v1659_v18  ;;  %v1665_v26 = vld [vmem:[%s9610_s12 + $0x2a10] sm:$0xff]  ;;  %v1684_v42 = vld [vmem:[%s9610_s12 + $0x2aa8] sm:$0xff]  ;;  %v2170_v18 = vcombine.high %v11276_v27, %v11276_v27 }
 0x29f   : > { %5213 = vmatprep.mubr.f32.mxu1 %v2154_v43  ;;  %v1630_v43 = vld [vmem:[%s9610_s12 + $0x28f8] sm:$0xff]  ;;  %v1683_v47 = vld [vmem:[%s9610_s12 + $0x2aa0] sm:$0xff]  ;;  %v1689_v15 = vld [vmem:[%s9610_s12 + $0x2ad0] sm:$0xff] }
 0x2a0   : > { %9166 = vmatpush3.bf16.msra.mxu0 %v9165_v0  ;;  %v9187_v5 = vpack.c.bf16 %v1630_v43, %v1629_v49  ;;  %v1715_v51 = vld [vmem:[%s9610_s12 + $0x2ba0] sm:$0xff]  ;;  %v1685_v49 = vld [vmem:[%s9610_s12 + $0x2ab0] sm:$0xff]  ;;  %v1686_v43 = vld [vmem:[%s9610_s12 + $0x2ab8] sm:$0xff] }
 0x2a1   : > { %9198 = vmatpush3.bf16.msra.mxu1 %v9197_v3  ;;  %9168 = vmatprep.subr.bf16.mxu0 %v9167_v12  ;;  %v1661_v12 = vld [vmem:[%s9610_s12 + $0x29f0] sm:$0xff] }
 0x2a2   : > { %9200 = vmatprep.subr.bf16.mxu1 %v9199_v41  ;;  %v9185_v41 = vpack.c.bf16 %v1612_v4, %v1611_v56  ;;  %v9219_v50 = vpack.c.bf16 %v1662_v63, %v1661_v12  ;;  %v9261_v56 = vpack.c.bf16 %v1698_v34, %v1697_v44  ;;  %v9231_v4 = vpack.c.bf16 %v1684_v42, %v1683_v47  ;;  %v1676_v34 = vld [vmem:[%s9610_s12 + $0x2a68] sm:$0xff]  ;;  %v1707_v47 = vld [vmem:[%s9610_s12 + $0x2b60] sm:$0xff] }
 0x2a3   : > { %v9235_v63 = vpack.c.bf16 %v1686_v43, %v1685_v49 }
 0x2a4   : > { %9170 = vmatpush3.bf16.msra.mxu0 %v9169_v11  ;;  %v1614_v11 = vld [vmem:[%s9610_s12 + $0x2878] sm:$0xff] }
 0x2a5   : > { %9202 = vmatpush3.bf16.msra.mxu1 %v9201_v25  ;;  %9172 = vmatprep.subr.bf16.mxu0 %v9171_v13  ;;  %v1645_v25 = vld [vmem:[%s9610_s12 + $0x2970] sm:$0xff] }
 0x2a6   : > { %9204 = vmatprep.subr.bf16.mxu1 %v9203_v19  ;;  %v1680_v19 = vld [vmem:[%s9610_s12 + $0x2a88] sm:$0xff]  ;;  %v9221_v24 = vpack.c.bf16 %v1646_v16, %v1645_v25  ;;  %v1671_v16 = vld [vmem:[%s9610_s12 + $0x2a40] sm:$0xff] }
 0x2a8   : > { %9174 = vmatpush3.bf16.msra.mxu0 %v9173_v36  ;;  %v9223_v36 = vpack.c.bf16 %v1680_v19, %v1679_v52  ;;  %v1672_v52 = vld [vmem:[%s9610_s12 + $0x2a48] sm:$0xff]  ;;  %v1703_v19 = vld [vmem:[%s9610_s12 + $0x2b40] sm:$0xff] }
 0x2a9   : > { %9206 = vmatpush3.bf16.msra.mxu1 %v9205_v20  ;;  %9176 = vmatprep.subr.bf16.mxu0 %v9175_v61  ;;  %v1663_v20 = vld [vmem:[%s9610_s12 + $0x2a00] sm:$0xff]  ;;  %v1664_v61 = vld [vmem:[%s9610_s12 + $0x2a08] sm:$0xff] }
 0x2aa   : > { %9208 = vmatprep.subr.bf16.mxu1 %v9207_v30  ;;  %v1681_v30 = vld [vmem:[%s9610_s12 + $0x2a90] sm:$0xff] }
 0x2ac   : > { %9178 = vmatpush3.bf16.msra.mxu0 %v9177_v37  ;;  %v9225_v37 = vpack.c.bf16 %v1664_v61, %v1663_v20  ;;  %v9241_v20 = vpack.c.bf16 %v1672_v52, %v1671_v16  ;;  %v9273_v61 = vpack.c.bf16 %v1704_v22, %v1703_v19  ;;  %v1760_v16 = vld [vmem:[%s9610_s12 + $0x2d08] sm:$0xff]  ;;  %v1729_v22 = vld [vmem:[%s9610_s12 + $0x2c10] sm:$0xff] }
 0x2ad   : > { %9210 = vmatpush3.bf16.msra.mxu1 %v9209_v7  ;;  %9180 = vmatprep.subr.bf16.mxu0 %v9179_v40  ;;  %v9257_v7 = vpack.c.bf16 %v1696_v29, %v1695_v23  ;;  %v9227_v40 = vpack.c.bf16 %v1682_v31, %v1681_v30  ;;  %v1674_v29 = vld [vmem:[%s9610_s12 + $0x2a58] sm:$0xff]  ;;  %v1705_v30 = vld [vmem:[%s9610_s12 + $0x2b50] sm:$0xff] }
 0x2ae   : > { %v7151_v59 = vpop.f32.mrb[26].mxu0  ;;  %9212 = vmatprep.subr.bf16.mxu1 %v9211_v45  ;;  %v9259_v45 = vpack.c.bf16 %v1714_v33, %v1713_v55  ;;  %v1706_v55 = vld [vmem:[%s9610_s12 + $0x2b58] sm:$0xff]  ;;  %v1691_v33 = vld [vmem:[%s9610_s12 + $0x2ae0] sm:$0xff] }
 0x2af   : > { %v7152_v0 = vpop.f32.mrb[27].mxu0  ;;  %v7186_v3 = vpop.f32.mrb[26].mxu1 }
 0x2b0   : > { %v7153_v39 = vadd.f32 %v7152_v0, %v7151_v59  ;;  %9182 = vmatpush3.bf16.msra.mxu0 %v9181_v38  ;;  %v7187_v6 = vpop.f32.mrb[27].mxu1  ;;  %v1716_v38 = vld [vmem:[%s9610_s12 + $0x2ba8] sm:$0xff]  ;;  %v1699_v59 = vld [vmem:[%s9610_s12 + $0x2b20] sm:$0xff]  ;;  %v1718_v0 = vld [vmem:[%s9610_s12 + $0x2bb8] sm:$0xff] }
 0x2b1   : > { %v7188_v60 = vadd.f32 %v7187_v6, %v7186_v3  ;;  %9214 = vmatpush3.bf16.msra.mxu1 %v9213_v53  ;;  %9184 = vmatprep.subr.bf16.mxu0 %v9183_v54  ;;  %v2171_v53 = vcombine.high %v11281_v48, %v11281_v48  ;;  %v9229_v54 = vpack.c.bf16 %v1666_v46, %v1665_v26  ;;  %v1670_v6 = vld [vmem:[%s9610_s12 + $0x2a38] sm:$0xff] }
 0x2b2   : > { %v4166_v13 = vadd.f32 %v7153_v39, %v11187_v32  ;;  %9216 = vmatprep.subr.bf16.mxu1 %v9215_v28  ;;  %v9189_v32 = vpack.c.bf16 %v1614_v11, %v1613_v10  ;;  %v9263_v28 = vpack.c.bf16 %v1716_v38, %v1715_v51  ;;  %v9265_v12 = vpack.c.bf16 %v1700_v62, %v1699_v59  ;;  %v1669_v39 = vld [vmem:[%s9610_s12 + $0x2a30] sm:$0xff]  ;;  %v1719_v10 = vld [vmem:[%s9610_s12 + $0x2bc0] sm:$0xff]  ;;  %v1720_v11 = vld [vmem:[%s9610_s12 + $0x2bc8] sm:$0xff] }
 0x2b3   : > { %v9237_v25 = vpack.c.bf16 %v1670_v6, %v1669_v39  ;;  %v9271_v21 = vpack.c.bf16 %v1720_v11, %v1719_v10  ;;  %v9277_v46 = vpack.c.bf16 %v1706_v55, %v1705_v30  ;;  %v1708_v51 = vld [vmem:[%s9610_s12 + $0x2b68] sm:$0xff]  ;;  %v1693_v38 = vld [vmem:[%s9610_s12 + $0x2af0] sm:$0xff]  ;;  %v1710_v39 = vld [vmem:[%s9610_s12 + $0x2b78] sm:$0xff] }
 0x2b4   : > { %v11267_v17 = vadd.f32 %v7188_v60, %v4166_v13  ;;  %9186 = vmatpush3.bf16.msra.mxu0 %v9185_v41  ;;  %v1701_v41 = vld [vmem:[%s9610_s12 + $0x2b30] sm:$0xff]  ;;  %v1702_v60 = vld [vmem:[%s9610_s12 + $0x2b38] sm:$0xff]  ;;  %v9281_v49 = vpack.c.bf16 %v1708_v51, %v1707_v47  ;;  %v1743_v6 = vld [vmem:[%s9610_s12 + $0x2c80] sm:$0xff] }
 0x2b5   : > { %9218 = vmatpush3.bf16.msra.mxu1 %v9217_v9  ;;  %9188 = vmatprep.subr.bf16.mxu0 %v9187_v5  ;;  %v1687_v9 = vld [vmem:[%s9610_s12 + $0x2ac0] sm:$0xff]  ;;  %v1688_v5 = vld [vmem:[%s9610_s12 + $0x2ac8] sm:$0xff]  ;;  %v9269_v13 = vpack.c.bf16 %v1702_v60, %v1701_v41  ;;  %v1766_v51 = vld [vmem:[%s9610_s12 + $0x2d38] sm:$0xff] }
 0x2b6   : > { %9220 = vmatprep.subr.bf16.mxu1 %v9219_v50  ;;  %v9239_v50 = vpack.c.bf16 %v1688_v5, %v1687_v9  ;;  %v1744_v41 = vld [vmem:[%s9610_s12 + $0x2c88] sm:$0xff]  ;;  %v1727_v10 = vld [vmem:[%s9610_s12 + $0x2c00] sm:$0xff] }
 0x2b7   : > { %v1728_v11 = vld [vmem:[%s9610_s12 + $0x2c08] sm:$0xff]  ;;  %v1751_v47 = vld [vmem:[%s9610_s12 + $0x2cc0] sm:$0xff] }
 0x2b8   : > { %9190 = vmatpush3.bf16.msra.mxu0 %v9189_v32  ;;  %v1690_v32 = vld [vmem:[%s9610_s12 + $0x2ad8] sm:$0xff]  ;;  %v9289_v19 = vpack.c.bf16 %v1728_v11, %v1727_v10  ;;  %v1732_v55 = vld [vmem:[%s9610_s12 + $0x2c28] sm:$0xff]  ;;  %v1757_v10 = vld [vmem:[%s9610_s12 + $0x2cf0] sm:$0xff] }
 0x2b9   : > { %9222 = vmatpush3.bf16.msra.mxu1 %v9221_v24  ;;  %9224 = vmatprep.subr.bf16.mxu0 %v9223_v36  ;;  %v1721_v24 = vld [vmem:[%s9610_s12 + $0x2bd0] sm:$0xff]  ;;  %v1722_v36 = vld [vmem:[%s9610_s12 + $0x2bd8] sm:$0xff]  ;;  %v9243_v23 = vpack.c.bf16 %v1690_v32, %v1689_v15 }
 0x2ba   : > { %9256 = vmatprep.subr.bf16.mxu1 %v9255_v2  ;;  %v1673_v2 = vld [vmem:[%s9610_s12 + $0x2a50] sm:$0xff]  ;;  %v9275_v31 = vpack.c.bf16 %v1722_v36, %v1721_v24  ;;  %v1730_v15 = vld [vmem:[%s9610_s12 + $0x2c18] sm:$0xff]  ;;  %v1747_v24 = vld [vmem:[%s9610_s12 + $0x2ca0] sm:$0xff]  ;;  %v9543_v36 = vmov 0.0|0.0  }
 0x2bb   : > { %5144 = vmatmul.mubr.f32.vlgmr.msra.gmra.mrb[40].mxu0 %v11196_v35  ;;  %v1668_v35 = vld [vmem:[%s9610_s12 + $0x2a28] sm:$0xff]  ;;  %v9245_v26 = vpack.c.bf16 %v1674_v29, %v1673_v2  ;;  %v9293_v29 = vpack.c.bf16 %v1730_v15, %v1729_v22 }
 0x2bc   : > { %9226 = vmatpush3.bf16.msra.mxu0 %v9225_v37  ;;  %5214 = vmatmul.mubr.f32.vlgmr.msra.gmra.mrb[40].mxu1 %v11201_v58  ;;  %v1717_v58 = vld [vmem:[%s9610_s12 + $0x2bb0] sm:$0xff]  ;;  %v9233_v3 = vpack.c.bf16 %v1668_v35, %v1667_v57  ;;  %v1692_v37 = vld [vmem:[%s9610_s12 + $0x2ae8] sm:$0xff]  ;;  %v1726_v57 = vld [vmem:[%s9610_s12 + $0x2bf8] sm:$0xff] }
 0x2bd   : > { %9258 = vmatpush3.bf16.msra.mxu1 %v9257_v7  ;;  %9228 = vmatprep.subr.bf16.mxu0 %v9227_v40  ;;  %v9267_v8 = vpack.c.bf16 %v1718_v0, %v1717_v58  ;;  %v1723_v7 = vld [vmem:[%s9610_s12 + $0x2be0] sm:$0xff]  ;;  %v1724_v40 = vld [vmem:[%s9610_s12 + $0x2be8] sm:$0xff]  ;;  %v9247_v44 = vpack.c.bf16 %v1692_v37, %v1691_v33  ;;  %v1677_v58 = vld [vmem:[%s9610_s12 + $0x2a70] sm:$0xff] }
 0x2be   : > { %9260 = vmatprep.subr.bf16.mxu1 %v9259_v45  ;;  %5283 = vmatprep.mubr.f32.mxu0 %v2170_v18  ;;  %v1675_v45 = vld [vmem:[%s9610_s12 + $0x2a60] sm:$0xff]  ;;  %v9279_v18 = vpack.c.bf16 %v1724_v40, %v1723_v7  ;;  %v1678_v0 = vld [vmem:[%s9610_s12 + $0x2a78] sm:$0xff]  ;;  %v1749_v37 = vld [vmem:[%s9610_s12 + $0x2cb0] sm:$0xff] }
 0x2bf   : > { %5353 = vmatprep.mubr.f32.mxu1 %v2171_v53  ;;  %v1694_v53 = vld [vmem:[%s9610_s12 + $0x2af8] sm:$0xff]  ;;  %v9253_v9 = vpack.c.bf16 %v1678_v0, %v1677_v58  ;;  %v1763_v40 = vld [vmem:[%s9610_s12 + $0x2d20] sm:$0xff] }
 0x2c0   : > { %9230 = vmatpush3.bf16.msra.mxu0 %v9229_v54  ;;  %v9251_v43 = vpack.c.bf16 %v1694_v53, %v1693_v38  ;;  %v1750_v7 = vld [vmem:[%s9610_s12 + $0x2cb8] sm:$0xff] }
 0x2c1   : > { %9262 = vmatpush3.bf16.msra.mxu1 %v9261_v56  ;;  %9232 = vmatprep.subr.bf16.mxu0 %v9231_v4  ;;  %v1725_v4 = vld [vmem:[%s9610_s12 + $0x2bf0] sm:$0xff]  ;;  %v1738_v58 = vld [vmem:[%s9610_s12 + $0x2c58] sm:$0xff] }
 0x2c2   : > { %9264 = vmatprep.subr.bf16.mxu1 %v9263_v28  ;;  %v9249_v28 = vpack.c.bf16 %v1676_v34, %v1675_v45  ;;  %v1734_v45 = vld [vmem:[%s9610_s12 + $0x2c38] sm:$0xff] }
 0x2c4   : > { %9234 = vmatpush3.bf16.msra.mxu0 %v9233_v3  ;;  %v1709_v3 = vld [vmem:[%s9610_s12 + $0x2b70] sm:$0xff] }
 0x2c5   : > { %9266 = vmatpush3.bf16.msra.mxu1 %v9265_v12  ;;  %9236 = vmatprep.subr.bf16.mxu0 %v9235_v63  ;;  %v9283_v63 = vpack.c.bf16 %v1726_v57, %v1725_v4  ;;  %v9285_v5 = vpack.c.bf16 %v1710_v39, %v1709_v3  ;;  %v1753_v57 = vld [vmem:[%s9610_s12 + $0x2cd0] sm:$0xff]  ;;  %v1755_v3 = vld [vmem:[%s9610_s12 + $0x2ce0] sm:$0xff]  ;;  %v1770_v39 = vld [vmem:[%s9610_s12 + $0x2d58] sm:$0xff] }
 0x2c6   : > { %9268 = vmatprep.subr.bf16.mxu1 %v9267_v8  ;;  %v11345_v8 = vld [vmem:[%s9605_s8 + $0xb0] sm:$0x3f] }
 0x2c7   : > { %v11357_v52 = vrot.slane %v11345_v8, %v9666_v14 }
 0x2c8   : > { %9238 = vmatpush3.bf16.msra.mxu0 %v9237_v25  ;;  %v1745_v25 = vld [vmem:[%s9610_s12 + $0x2c90] sm:$0xff] }
 0x2c9   : > { %9270 = vmatpush3.bf16.msra.mxu1 %v9269_v13  ;;  %9240 = vmatprep.subr.bf16.mxu0 %v9239_v50  ;;  %v1746_v13 = vld [vmem:[%s9610_s12 + $0x2c98] sm:$0xff]  ;;  %v1759_v50 = vld [vmem:[%s9610_s12 + $0x2d00] sm:$0xff]  ;;  %v2187_v2 = vcombine.high %v11357_v52, %v11357_v52 }
 0x2ca   : > { %9272 = vmatprep.subr.bf16.mxu1 %v9271_v21  ;;  %v9291_v21 = vpack.c.bf16 %v1746_v13, %v1745_v25  ;;  %v9320_v32 = vpack.c.bf16 %v1760_v16, %v1759_v50  ;;  %v1758_v25 = vld [vmem:[%s9610_s12 + $0x2cf8] sm:$0xff]  ;;  %v1771_v13 = vld [vmem:[%s9610_s12 + $0x2d60] sm:$0xff]  ;;  %v1772_v50 = vld [vmem:[%s9610_s12 + $0x2d68] sm:$0xff] }
 0x2cc   : > { %9242 = vmatpush3.bf16.msra.mxu0 %v9241_v20  ;;  %v1748_v20 = vld [vmem:[%s9610_s12 + $0x2ca8] sm:$0xff] }
 0x2cd   : > { %9274 = vmatpush3.bf16.msra.mxu1 %v9273_v61  ;;  %9244 = vmatprep.subr.bf16.mxu0 %v9243_v23  ;;  %v1761_v61 = vld [vmem:[%s9610_s12 + $0x2d10] sm:$0xff]  ;;  %v1762_v23 = vld [vmem:[%s9610_s12 + $0x2d18] sm:$0xff]  ;;  %v9295_v30 = vpack.c.bf16 %v1748_v20, %v1747_v24  ;;  %v9315_v24 = vpack.c.bf16 %v1758_v25, %v1757_v10 }
 0x2ce   : > { %v7221_v42 = vpop.f32.mrb[28].mxu0  ;;  %9276 = vmatprep.subr.bf16.mxu1 %v9275_v31  ;;  %v1731_v31 = vld [vmem:[%s9610_s12 + $0x2c20] sm:$0xff]  ;;  %v9323_v33 = vpack.c.bf16 %v1762_v23, %v1761_v61  ;;  %v1741_v20 = vld [vmem:[%s9610_s12 + $0x2c70] sm:$0xff]  ;;  %v1742_v61 = vld [vmem:[%s9610_s12 + $0x2c78] sm:$0xff]  ;;  %v9338_v23 = vpack.c.bf16 %v1772_v50, %v1771_v13 }
 0x2cf   : > { %v7222_v54 = vpop.f32.mrb[29].mxu0  ;;  %v7256_v56 = vpop.f32.mrb[28].mxu1 }
 0x2d0   : > { %v7223_v35 = vadd.f32 %v7222_v54, %v7221_v42  ;;  %9246 = vmatpush3.bf16.msra.mxu0 %v9245_v26  ;;  %v7257_v59 = vpop.f32.mrb[29].mxu1  ;;  %v9297_v26 = vpack.c.bf16 %v1732_v55, %v1731_v31  ;;  %v1752_v42 = vld [vmem:[%s9610_s12 + $0x2cc8] sm:$0xff]  ;;  %v1735_v54 = vld [vmem:[%s9610_s12 + $0x2c40] sm:$0xff]  ;;  %v9317_v55 = vpack.c.bf16 %v1742_v61, %v1741_v20 }
 0x2d1   : > { %v7258_v62 = vadd.f32 %v7257_v59, %v7256_v56  ;;  %9278 = vmatpush3.bf16.msra.mxu1 %v9277_v46  ;;  %9248 = vmatprep.subr.bf16.mxu0 %v9247_v44  ;;  %v9299_v46 = vpack.c.bf16 %v1750_v7, %v1749_v37  ;;  %v1733_v44 = vld [vmem:[%s9610_s12 + $0x2c30] sm:$0xff]  ;;  %v9303_v53 = vpack.c.bf16 %v1752_v42, %v1751_v47  ;;  %v1736_v56 = vld [vmem:[%s9610_s12 + $0x2c48] sm:$0xff]  ;;  %v1767_v59 = vld [vmem:[%s9610_s12 + $0x2d40] sm:$0xff] }
 0x2d2   : > { %v4306_v12 = vadd.f32 %v7223_v35, %v11267_v17  ;;  %9280 = vmatprep.subr.bf16.mxu1 %v9279_v18  ;;  %v9287_v17 = vpack.c.bf16 %v1744_v41, %v1743_v6  ;;  %v1765_v18 = vld [vmem:[%s9610_s12 + $0x2d30] sm:$0xff]  ;;  %v9301_v38 = vpack.c.bf16 %v1734_v45, %v1733_v44  ;;  %v1754_v35 = vld [vmem:[%s9610_s12 + $0x2cd8] sm:$0xff] }
 0x2d3   : > { %v9329_v4 = vpack.c.bf16 %v1766_v51, %v1765_v18 }
 0x2d4   : > { %v11347_v60 = vadd.f32 %v7258_v62, %v4306_v12  ;;  %9250 = vmatpush3.bf16.msra.mxu0 %v9249_v28  ;;  %v1768_v28 = vld [vmem:[%s9610_s12 + $0x2d48] sm:$0xff]  ;;  %v9305_v62 = vpack.c.bf16 %v1736_v56, %v1735_v54 }
 0x2d5   : > { %9282 = vmatpush3.bf16.msra.mxu1 %v9281_v49  ;;  %9252 = vmatprep.subr.bf16.mxu0 %v9251_v43  ;;  %v9307_v49 = vpack.c.bf16 %v1754_v35, %v1753_v57  ;;  %v1737_v43 = vld [vmem:[%s9610_s12 + $0x2c50] sm:$0xff]  ;;  %v9332_v0 = vpack.c.bf16 %v1768_v28, %v1767_v59  ;;  %v1756_v12 = vld [vmem:[%s9610_s12 + $0x2ce8] sm:$0xff] }
 0x2d6   : > { %9284 = vmatprep.subr.bf16.mxu1 %v9283_v63  ;;  %v1769_v63 = vld [vmem:[%s9610_s12 + $0x2d50] sm:$0xff]  ;;  %v9309_v6 = vpack.c.bf16 %v1738_v58, %v1737_v43  ;;  %v9311_v41 = vpack.c.bf16 %v1756_v12, %v1755_v3 }
 0x2d8   : > { %9254 = vmatpush3.bf16.msra.mxu0 %v9253_v9  ;;  %v1739_v9 = vld [vmem:[%s9610_s12 + $0x2c60] sm:$0xff] }
 0x2d9   : > { %9286 = vmatpush3.bf16.msra.mxu1 %v9285_v5  ;;  %9288 = vmatprep.subr.bf16.mxu0 %v9287_v17  ;;  %v1740_v5 = vld [vmem:[%s9610_s12 + $0x2c68] sm:$0xff]  ;;  %v9335_v17 = vpack.c.bf16 %v1770_v39, %v1769_v63 }
 0x2da   : > { %9319 = vmatprep.subr.bf16.mxu1 %v9543_v36  ;;  %v9313_v15 = vpack.c.bf16 %v1740_v5, %v1739_v9 }
 0x2db   : > { %5284 = vmatmul.mubr.f32.vlgmr.msra.gmra.mrb[42].mxu0 %v11276_v27  ;;  %v1764_v27 = vld [vmem:[%s9610_s12 + $0x2d28] sm:$0xff] }
 0x2dc   : > { %9290 = vmatpush3.bf16.msra.mxu0 %v9289_v19  ;;  %5354 = vmatmul.mubr.f32.vlgmr.msra.gmra.mrb[42].mxu1 %v11281_v48  ;;  %v9545_v48 = vmov 0.0   ;;  %v9326_v34 = vpack.c.bf16 %v1764_v27, %v1763_v40 }
 0x2dd   : > { %9292 = vmatprep.subr.bf16.mxu0 %v9291_v21  ;;  %9321 = vmatpush3.bf16.msra.mxu1 %v9320_v32 }
 0x2de   : > { %9322 = vmatprep.subr.bf16.mxu1 %v9543_v36  ;;  %5423 = vmatprep.mubr.f32.mxu0 %v2187_v2 }
 0x2df   : > { %7847 = vmatprep.mubr.msk.f32.mxu1 %vm9544_vm1, %v9545_v48 }
 0x2e0   : > { %9294 = vmatpush3.bf16.msra.mxu0 %v9293_v29  ;;  %v1773_v29 = vld [vmem:[%s9610_s12 + $0x2d70] sm:$0xff] }
 0x2e1   : > { %9296 = vmatprep.subr.bf16.mxu0 %v9295_v30  ;;  %9324 = vmatpush3.bf16.msra.mxu1 %v9323_v33  ;;  %v1774_v30 = vld [vmem:[%s9610_s12 + $0x2d78] sm:$0xff]  ;;  %v2172_v33 = vcombine.high %v11345_v8, %v11345_v8 }
 0x2e2   : > { %9325 = vmatprep.subr.bf16.mxu1 %v9543_v36  ;;  %v9341_v37 = vpack.c.bf16 %v1774_v30, %v1773_v29 }
 0x2e3   : > { %v2186_v7 = vrot.slane %v2172_v33, %v9666_v14  ;;  %v5517_v33 = vld [vmem:[%s11850_s3 + $0x10] sm:$0xff] (!%p6188_p6) }
 0x2e4   : > { %9298 = vmatpush3.bf16.msra.mxu0 %v9297_v26 }
 0x2e5   : > { %9300 = vmatprep.subr.bf16.mxu0 %v9299_v46  ;;  %9327 = vmatpush3.bf16.msra.mxu1 %v9326_v34 }
 0x2e6   : > { %9328 = vmatprep.subr.bf16.mxu1 %v9543_v36 }
 0x2e8   : > { %9302 = vmatpush3.bf16.msra.mxu0 %v9301_v38 }
 0x2e9   : > { %9304 = vmatprep.subr.bf16.mxu0 %v9303_v53  ;;  %9330 = vmatpush3.bf16.msra.mxu1 %v9329_v4 }
 0x2ea   : > { %9331 = vmatprep.subr.bf16.mxu1 %v9543_v36 }
 0x2ec   : > { %9306 = vmatpush3.bf16.msra.mxu0 %v9305_v62 }
 0x2ed   : > { %9308 = vmatprep.subr.bf16.mxu0 %v9307_v49  ;;  %9333 = vmatpush3.bf16.msra.mxu1 %v9332_v0 }
 0x2ee   : > { %v7291_v11 = vpop.f32.mrb[30].mxu0  ;;  %9334 = vmatprep.subr.bf16.mxu1 %v9543_v36 }
 0x2ef   : > { %v7292_v16 = vpop.f32.mrb[31].mxu0  ;;  %v7326_v19 = vpop.f32.mrb[30].mxu1 }
 0x2f0   : > { %v7293_v21 = vadd.f32 %v7292_v16, %v7291_v11  ;;  %9310 = vmatpush3.bf16.msra.mxu0 %v9309_v6  ;;  %v7327_v22 = vpop.f32.mrb[31].mxu1 }
 0x2f1   : > { %v7328_v32 = vadd.f32 %v7327_v22, %v7326_v19  ;;  %9312 = vmatprep.subr.bf16.mxu0 %v9311_v41  ;;  %9336 = vmatpush3.bf16.msra.mxu1 %v9335_v17 }
 0x2f2   : > { %v4446_v2 = vadd.f32 %v7293_v21, %v11347_v60  ;;  %9337 = vmatprep.subr.bf16.mxu1 %v9543_v36 }
 0x2f4   : > { %v4516_v31 = vadd.f32 %v7328_v32, %v4446_v2  ;;  %9314 = vmatpush3.bf16.msra.mxu0 %v9313_v15  ;;  %v295_v2 = vld [vmem:[#allocation2] sm:$0x3] }
 0x2f5   : > { %9316 = vmatprep.subr.bf16.mxu0 %v9315_v24  ;;  %9339 = vmatpush3.bf16.msra.mxu1 %v9338_v23 }
 0x2f6   : > { %9340 = vmatprep.subr.bf16.mxu1 %v9543_v36 }
 0x2f8   : > { %9318 = vmatpush3.bf16.msra.mxu0 %v9317_v55  ;;  %v5516_v55 = vld [vmem:[%s11850_s3 + $0x8] sm:$0xff] (!%p6188_p6) }
 0x2f9   : > { %9342 = vmatpush3.bf16.msra.mxu1 %v9341_v37  ;;  %v9546_v37 = vmov (!%p6188_p6), 0.0|0.0  }
 0x2fa   : > { %9343 = vmatprep.subr.bf16.mxu0 (!%p6188_p6), %v9546_v37 }
 0x2fb   : > { %5424 = vmatmul.mubr.f32.vlgmr.msra.gmra.mrb[44].mxu0 %v11357_v52 }
 0x2fc   : > { %7848 = vmatmul.mubr.f32.vlgmr.msra.gmra.mrb[44].mxu1 %v2186_v7 }
 0x30e   : > { %v7361_v60 = vpop.f32.mrb[32].mxu0 }
 0x30f   : > { %v7362_v40 = vpop.f32.mrb[33].mxu0  ;;  %v7396_v27 = vpop.f32.mrb[32].mxu1 }
 0x310   : > { %v7363_v48 = vadd.f32 %v7362_v40, %v7361_v60  ;;  %v7397_v26 = vpop.f32.mrb[33].mxu1  ;;  %v5518_v60 = vld [vmem:[%s11850_s3 + $0x18] sm:$0xff] (!%p6188_p6)  ;;  %v9547_v40 = vmov (!%p6188_p6), 0.0  }
 0x311   : > { %v7398_v46 = vadd.f32 %v7397_v26, %v7396_v27  ;;  %5850 = vmatprep.mubr.f32.mxu1 (!%p6188_p6), %v9547_v40  ;;  %7876 = vmatprep.mubr.msk.f32.mxu0 (!%p6188_p6), %vm9548_vm3, %v9547_v40  ;;  %v9347_v27 = vpack.c.bf16 (!%p6188_p6), %v5518_v60, %v5517_v33  ;;  %v5520_v26 = vld [vmem:[%s11850_s3 + $0x28] sm:$0xff] (!%p6188_p6) }
 0x312   : > { %v4586_v44 = vadd.f32 %v7363_v48, %v4516_v31  ;;  %v5515_v31 = vld [vmem:[%s11850_s3] sm:$0xff] (!%p6188_p6) }
 0x313   : > { %v9344_v7 = vpack.c.bf16 (!%p6188_p6), %v5516_v55, %v5515_v31  ;;  %v5519_v48 = vld [vmem:[%s11850_s3 + $0x20] sm:$0xff] (!%p6188_p6)  ;;  %v5640_v31 = vld [vmem:[%s11852_s5 + $0xd8] sm:$0xff] (!%p6188_p6) }
 0x314   : > { %v4656_v8 = vadd.f32 %v7398_v46, %v4586_v44  ;;  %v5614_v46 = vld [vmem:[%s11852_s5 + $0x8] sm:$0xff] (!%p6188_p6)  ;;  %v5527_v55 = vld [vmem:[%s11850_s3 + $0x60] sm:$0xf] (!%p6188_p6) }
 0x315   : > { %9345 = vmatpush3.bf16.msra.mxu0 (!%p6188_p6), %v9344_v7  ;;  %v5622_v44 = vld [vmem:[%s11852_s5 + $0x48] sm:$0xff] (!%p6188_p6) }
 0x316   : > { %9346 = vmatprep.subr.bf16.mxu0 (!%p6188_p6), %v9546_v37 }
 0x319   : > { %9348 = vmatpush3.bf16.msra.mxu0 (!%p6188_p6), %v9347_v27 }
 0x31a   : > { %9349 = vmatprep.subr.bf16.mxu0 (!%p6188_p6), %v9546_v37 }
 0x32e   : > { %v7431_v45 = vpop.f32.mrb[34].mxu0 }
 0x32f   : > { %v7432_v34 = vpop.f32.mrb[35].mxu0  ;;  %v7466_v47 = vpop.f32.mrb[34].mxu1 }
 0x330   : > { %v7433_v42 = vadd.f32 %v7432_v34, %v7431_v45  ;;  %v7467_v36 = vpop.f32.mrb[35].mxu1  ;;  %v5613_v45 = vld [vmem:[%s11852_s5] sm:$0xff] (!%p6188_p6) }
 0x331   : > { %v7468_v18 = vadd.f32 %v7467_v36, %v7466_v47  ;;  %v5621_v34 = vld [vmem:[%s11852_s5 + $0x40] sm:$0xff] (!%p6188_p6)  ;;  %v9350_v47 = vpack.c.bf16 (!%p6188_p6), %v5520_v26, %v5519_v48  ;;  %v5630_v36 = vld [vmem:[%s11852_s5 + $0x88] sm:$0xff] (!%p6188_p6)  ;;  %v5631_v48 = vld [vmem:[%s11852_s5 + $0x90] sm:$0xff] (!%p6188_p6) }
 0x332   : > { %v4726_v51 = vadd.f32 %v7433_v42, %v4656_v8  ;;  %v9361_v8 = vpack.c.bf16 (!%p6188_p6), %v5622_v44, %v5614_v46  ;;  %v9363_v42 = vpack.c.bf16 (!%p6188_p6), %v5621_v34, %v5613_v45  ;;  %v5639_v26 = vld [vmem:[%s11852_s5 + $0xd0] sm:$0xff] (!%p6188_p6)  ;;  %v5648_v46 = vld [vmem:[%s11852_s5 + $0x118] sm:$0xff] (!%p6188_p6) }
 0x333   : > { %9351 = vmatpush3.bf16.msra.mxu0 (!%p6188_p6), %v9350_v47  ;;  %v5656_v44 = vld [vmem:[%s11852_s5 + $0x158] sm:$0xff] (!%p6188_p6)  ;;  %v5647_v34 = vld [vmem:[%s11852_s5 + $0x110] sm:$0xff] (!%p6188_p6) }
 0x334   : > { %v4796_v38 = vadd.f32 %v7468_v18, %v4726_v51  ;;  %v5521_v18 = vld [vmem:[%s11850_s3 + $0x30] sm:$0xff] (!%p6188_p6)  ;;  %v5522_v51 = vld [vmem:[%s11850_s3 + $0x38] sm:$0xff] (!%p6188_p6)  ;;  %9362 = vmatprep.subr.bf16.mxu1 (!%p6188_p6), %v9361_v8  ;;  %9352 = vmatprep.subr.bf16.mxu0 (!%p6188_p6), %v9546_v37  ;;  %v9391_v8 = vpack.c.bf16 (!%p6188_p6), %v5639_v26, %v5631_v48  ;;  %v9393_v45 = vpack.c.bf16 (!%p6188_p6), %v5656_v44, %v5648_v46  ;;  %v5649_v46 = vld [vmem:[%s11852_s5 + $0x120] sm:$0xff] (!%p6188_p6) }
 0x335   : > { %9364 = vmatpush1.bf16.msra.mxu1 (!%p6188_p6), %v9363_v42  ;;  %v5655_v47 = vld [vmem:[%s11852_s5 + $0x150] sm:$0xff] (!%p6188_p6)  ;;  %v5664_v42 = vld [vmem:[%s11852_s5 + $0x198] sm:$0xff] (!%p6188_p6)  ;;  %v5657_v44 = vld [vmem:[%s11852_s5 + $0x160] sm:$0xff] (!%p6188_p6) }
 0x34e   : > { %v7501_v53 = vpop.f32.mrb[36].mxu0 }
 0x34f   : > { %v7502_v54 = vpop.f32.mrb[37].mxu0  ;;  %v7536_v52 = vpop.f32.mrb[36].mxu1 }
 0x350   : > { %v7503_v56 = vadd.f32 %v7502_v54, %v7501_v53  ;;  %v7537_v4 = vpop.f32.mrb[37].mxu1  ;;  %v5629_v54 = vld [vmem:[%s11852_s5 + $0x80] sm:$0xff] (!%p6188_p6) }
 0x351   : > { %v7538_v57 = vadd.f32 %v7537_v4, %v7536_v52  ;;  %v5637_v52 = vld [vmem:[%s11852_s5 + $0xc0] sm:$0xff] (!%p6188_p6)  ;;  %v5646_v4 = vld [vmem:[%s11852_s5 + $0x108] sm:$0xff] (!%p6188_p6) }
 0x352   : > { %v4866_v35 = vadd.f32 %v7503_v56, %v4796_v38  ;;  %v5638_v38 = vld [vmem:[%s11852_s5 + $0xc8] sm:$0xff] (!%p6188_p6)  ;;  %v9367_v56 = vpack.c.bf16 (!%p6188_p6), %v5637_v52, %v5629_v54  ;;  %v5680_v54 = vld [vmem:[%s11852_s5 + $0x218] sm:$0xff] (!%p6188_p6) }
 0x353   : > { %v9365_v53 = vpack.c.bf16 (!%p6188_p6), %v5638_v38, %v5630_v36  ;;  %v5672_v36 = vld [vmem:[%s11852_s5 + $0x1d8] sm:$0xff] (!%p6188_p6)  ;;  %v5663_v38 = vld [vmem:[%s11852_s5 + $0x190] sm:$0xff] (!%p6188_p6) }
 0x354   : > { %v4936_v59 = vadd.f32 %v7538_v57, %v4866_v35  ;;  %v5654_v57 = vld [vmem:[%s11852_s5 + $0x148] sm:$0xff] (!%p6188_p6)  ;;  %v9353_v35 = vpack.c.bf16 (!%p6188_p6), %v5522_v51, %v5521_v18  ;;  %v9395_v18 = vpack.c.bf16 (!%p6188_p6), %v5655_v47, %v5647_v34  ;;  %v9397_v51 = vpack.c.bf16 (!%p6188_p6), %v5672_v36, %v5664_v42  ;;  %v5688_v52 = vld [vmem:[%s11852_s5 + $0x258] sm:$0xff] (!%p6188_p6)  ;;  %v5651_v34 = vld [vmem:[%s11852_s5 + $0x130] sm:$0xff] (!%p6188_p6) }
 0x355   : > { %9366 = vmatprep.subr.bf16.mxu1 (!%p6188_p6), %v9365_v53  ;;  %v5671_v53 = vld [vmem:[%s11852_s5 + $0x1d0] sm:$0xff] (!%p6188_p6)  ;;  %v5666_v42 = vld [vmem:[%s11852_s5 + $0x1a8] sm:$0xff] (!%p6188_p6) }
 0x356   : > { %9368 = vmatpush1.bf16.msra.mxu1 (!%p6188_p6), %v9367_v56  ;;  %9354 = vmatpush3.bf16.msra.mxu0 (!%p6188_p6), %v9353_v35  ;;  %v9399_v56 = vpack.c.bf16 (!%p6188_p6), %v5671_v53, %v5663_v38  ;;  %v5687_v35 = vld [vmem:[%s11852_s5 + $0x250] sm:$0xff] (!%p6188_p6)  ;;  %v5674_v36 = vld [vmem:[%s11852_s5 + $0x1e8] sm:$0xff] (!%p6188_p6)  ;;  %v9419_v38 = vpack.c.bf16 (!%p6188_p6), %v5657_v44, %v5649_v46 }
 0x357   : > { %9355 = vmatprep.subr.bf16.mxu0 (!%p6188_p6), %v9546_v37  ;;  %v5659_v47 = vld [vmem:[%s11852_s5 + $0x170] sm:$0xff] (!%p6188_p6) }
 0x358   : > { %v9443_v53 = vpack.c.bf16 (!%p6188_p6), %v5659_v47, %v5651_v34 }
 0x36e   : > { %v7571_v28 = vpop.f32.mrb[38].mxu0 }
 0x36f   : > { %v7572_v62 = vpop.f32.mrb[39].mxu0  ;;  %v7606_v49 = vpop.f32.mrb[38].mxu1 }
 0x370   : > { %v7573_v43 = vadd.f32 %v7572_v62, %v7571_v28  ;;  %v7607_v58 = vpop.f32.mrb[39].mxu1  ;;  %v5645_v28 = vld [vmem:[%s11852_s5 + $0x100] sm:$0xff] (!%p6188_p6) }
 0x371   : > { %v7608_v0 = vadd.f32 %v7607_v58, %v7606_v49  ;;  %v5523_v62 = vld [vmem:[%s11850_s3 + $0x40] sm:$0xff] (!%p6188_p6)  ;;  %v5524_v49 = vld [vmem:[%s11850_s3 + $0x48] sm:$0xff] (!%p6188_p6) }
 0x372   : > { %v5006_v3 = vadd.f32 %v7573_v43, %v4936_v59  ;;  %v9369_v59 = vpack.c.bf16 (!%p6188_p6), %v5654_v57, %v5646_v4  ;;  %v5653_v43 = vld [vmem:[%s11852_s5 + $0x140] sm:$0xff] (!%p6188_p6)  ;;  %v9401_v4 = vpack.c.bf16 (!%p6188_p6), %v5688_v52, %v5680_v54  ;;  %v5679_v57 = vld [vmem:[%s11852_s5 + $0x210] sm:$0xff] (!%p6188_p6) }
 0x373   : > { %v9371_v58 = vpack.c.bf16 (!%p6188_p6), %v5653_v43, %v5645_v28  ;;  %v5704_v28 = vld [vmem:[%s11852_s5 + $0x2d8] sm:$0xff] (!%p6188_p6)  ;;  %v5695_v43 = vld [vmem:[%s11852_s5 + $0x290] sm:$0xff] (!%p6188_p6)  ;;  %v5665_v54 = vld [vmem:[%s11852_s5 + $0x1a0] sm:$0xff] (!%p6188_p6) }
 0x374   : > { %v5076_v12 = vadd.f32 %v7608_v0, %v5006_v3  ;;  %v5662_v0 = vld [vmem:[%s11852_s5 + $0x188] sm:$0xff] (!%p6188_p6)  ;;  %9370 = vmatprep.subr.bf16.mxu1 (!%p6188_p6), %v9369_v59  ;;  %v5696_v59 = vld [vmem:[%s11852_s5 + $0x298] sm:$0xff] (!%p6188_p6)  ;;  %v5673_v52 = vld [vmem:[%s11852_s5 + $0x1e0] sm:$0xff] (!%p6188_p6) }
 0x375   : > { %v5670_v3 = vld [vmem:[%s11852_s5 + $0x1c8] sm:$0xff] (!%p6188_p6)  ;;  %9372 = vmatpush1.bf16.msra.mxu1 (!%p6188_p6), %v9371_v58  ;;  %v5703_v58 = vld [vmem:[%s11852_s5 + $0x2d0] sm:$0xff] (!%p6188_p6) }
 0x38e   : > { %v7641_v63 = vpop.f32.mrb[40].mxu0 }
 0x38f   : > { %v7642_v39 = vpop.f32.mrb[41].mxu0  ;;  %v7676_v6 = vpop.f32.mrb[40].mxu1 }
 0x390   : > { %v7643_v41 = vadd.f32 %v7642_v39, %v7641_v63  ;;  %v7677_v9 = vpop.f32.mrb[41].mxu1  ;;  %v5661_v63 = vld [vmem:[%s11852_s5 + $0x180] sm:$0xff] (!%p6188_p6) }
 0x391   : > { %v7678_v5 = vadd.f32 %v7677_v9, %v7676_v6  ;;  %v5669_v39 = vld [vmem:[%s11852_s5 + $0x1c0] sm:$0xff] (!%p6188_p6)  ;;  %v9356_v6 = vpack.c.bf16 (!%p6188_p6), %v5524_v49, %v5523_v62  ;;  %v5525_v9 = vld [vmem:[%s11850_s3 + $0x50] sm:$0xff] (!%p6188_p6)  ;;  %v9403_v62 = vpack.c.bf16 (!%p6188_p6), %v5687_v35, %v5679_v57  ;;  %v9405_v49 = vpack.c.bf16 (!%p6188_p6), %v5704_v28, %v5696_v59  ;;  %v5682_v35 = vld [vmem:[%s11852_s5 + $0x228] sm:$0xff] (!%p6188_p6) }
 0x392   : > { %v5146_v17 = vadd.f32 %v7643_v41, %v5076_v12  ;;  %v9373_v12 = vpack.c.bf16 (!%p6188_p6), %v5670_v3, %v5662_v0  ;;  %v5678_v41 = vld [vmem:[%s11852_s5 + $0x208] sm:$0xff] (!%p6188_p6)  ;;  %v9407_v0 = vpack.c.bf16 (!%p6188_p6), %v5703_v58, %v5695_v43  ;;  %v5675_v57 = vld [vmem:[%s11852_s5 + $0x1f0] sm:$0xff] (!%p6188_p6)  ;;  %v5684_v28 = vld [vmem:[%s11852_s5 + $0x238] sm:$0xff] (!%p6188_p6) }
 0x393   : > { %9357 = vmatpush3.bf16.msra.mxu0 (!%p6188_p6), %v9356_v6  ;;  %v5710_v3 = vld [vmem:[%s11852_s5 + $0x308] sm:$0xf] (!%p6188_p6)  ;;  %v5711_v6 = vld [vmem:[%s11852_s5 + $0x310] sm:$0xf] (!%p6188_p6)  ;;  %v5681_v58 = vld [vmem:[%s11852_s5 + $0x220] sm:$0xff] (!%p6188_p6) }
 0x394   : > { %v5216_v10 = vadd.f32 %v7678_v5, %v5146_v17  ;;  %v5526_v5 = vld [vmem:[%s11850_s3 + $0x58] sm:$0xff] (!%p6188_p6)  ;;  %v5686_v17 = vld [vmem:[%s11852_s5 + $0x248] sm:$0xff] (!%p6188_p6)  ;;  %9374 = vmatprep.subr.bf16.mxu1 (!%p6188_p6), %v9373_v12  ;;  %9358 = vmatprep.subr.bf16.mxu0 (!%p6188_p6), %v9546_v37 }
 0x395   : > { %v5712_v12 = vld [vmem:[%s11852_s5 + $0x318] sm:$0xf] (!%p6188_p6)  ;;  %v5690_v59 = vld [vmem:[%s11852_s5 + $0x268] sm:$0xff] (!%p6188_p6) }
 0x3ae   : > { %v7711_v11 = vpop.f32.mrb[42].mxu0 }
 0x3af   : > { %v7712_v25 = vpop.f32.mrb[43].mxu0  ;;  %v7746_v13 = vpop.f32.mrb[42].mxu1 }
 0x3b0   : > { %v7713_v50 = vadd.f32 %v7712_v25, %v7711_v11  ;;  %v7747_v16 = vpop.f32.mrb[43].mxu1  ;;  %v9377_v11 = vpack.c.bf16 (!%p6188_p6), %v5686_v17, %v5678_v41  ;;  %v5677_v25 = vld [vmem:[%s11852_s5 + $0x200] sm:$0xff] (!%p6188_p6)  ;;  %v5626_v41 = vld [vmem:[%s11852_s5 + $0x68] sm:$0xff] (!%p6188_p6)  ;;  %v5628_v17 = vld [vmem:[%s11852_s5 + $0x78] sm:$0xff] (!%p6188_p6) }
 0x3b1   : > { %v7748_v19 = vadd.f32 %v7747_v16, %v7746_v13  ;;  %v5685_v13 = vld [vmem:[%s11852_s5 + $0x240] sm:$0xff] (!%p6188_p6)  ;;  %v5694_v16 = vld [vmem:[%s11852_s5 + $0x288] sm:$0xff] (!%p6188_p6) }
 0x3b2   : > { %v5286_v21 = vadd.f32 %v7713_v50, %v5216_v10  ;;  %v9375_v10 = vpack.c.bf16 (!%p6188_p6), %v5669_v39, %v5661_v63  ;;  %v9359_v50 = vpack.c.bf16 (!%p6188_p6), %v5526_v5, %v5525_v9  ;;  %v5618_v63 = vld [vmem:[%s11852_s5 + $0x28] sm:$0xff] (!%p6188_p6)  ;;  %v5709_v39 = vld [vmem:[%s11852_s5 + $0x300] sm:$0xf] (!%p6188_p6)  ;;  %v5620_v5 = vld [vmem:[%s11852_s5 + $0x38] sm:$0xff] (!%p6188_p6) }
 0x3b3   : > { %v9409_v9 = vpack.c.bf16 (!%p6188_p6), %v5626_v41, %v5618_v63  ;;  %v5683_v63 = vld [vmem:[%s11852_s5 + $0x230] sm:$0xff] (!%p6188_p6)  ;;  %v5706_v41 = vld [vmem:[%s11852_s5 + $0x2e8] sm:$0xff] (!%p6188_p6) }
 0x3b4   : > { %v5356_v22 = vadd.f32 %v7748_v19, %v5286_v21  ;;  %v5702_v19 = vld [vmem:[%s11852_s5 + $0x2c8] sm:$0xff] (!%p6188_p6)  ;;  %9376 = vmatpush1.bf16.msra.mxu1 (!%p6188_p6), %v9375_v10  ;;  %9360 = vmatpush3.bf16.msra.mxu0 (!%p6188_p6), %v9359_v50  ;;  %v9433_v10 = vpack.c.bf16 (!%p6188_p6), %v5628_v17, %v5620_v5  ;;  %v5619_v50 = vld [vmem:[%s11852_s5 + $0x30] sm:$0xff] (!%p6188_p6)  ;;  %v5708_v5 = vld [vmem:[%s11852_s5 + $0x2f8] sm:$0xff] (!%p6188_p6) }
 0x3b5   : > { %9378 = vmatprep.subr.bf16.mxu1 (!%p6188_p6), %v9377_v11  ;;  %7874 = vmatprep.subr.mxu0 (!%p6188_p6), %v9547_v40  ;;  %v6190_v11 = vld [vmem:[%s11851_s4] ss:$0 sm:$0xff] (!%p6188_p6) }
 0x3b8   : > { %7875 = vmatpush3.msk.msra.mxu0 (!%p6188_p6), %vm5539_vm4, %v5527_v55  ;;  %v5635_v55 = vld [vmem:[%s11852_s5 + $0xb0] sm:$0xff] (!%p6188_p6) }
 0x3ce   : > { %v7781_v15 = vpop.f32.mrb[44].mxu0 }
 0x3cf   : > { %v7782_v32 = vpop.f32.mrb[45].mxu0  ;;  %v5495_v24 = vpop.f32.mrb[44].mxu1 }
 0x3d0   : > { %v7783_v20 = vadd.f32 %v7782_v32, %v7781_v15  ;;  %v7849_v61 = vpop.f32.mrb[45].mxu1  ;;  %v5616_v15 = vld [vmem:[%s11852_s5 + $0x18] sm:$0xff] (!%p6188_p6) }
 0x3d1   : > { %v5624_v32 = vld [vmem:[%s11852_s5 + $0x58] sm:$0xff] (!%p6188_p6)  ;;  %v5623_v61 = vld [vmem:[%s11852_s5 + $0x50] sm:$0xff] (!%p6188_p6) }
 0x3d2   : > { %v5426_v23 = vadd.f32 %v7783_v20, %v5356_v22  ;;  %5505 = sbr.rel (%p6188_p6) target bundleno = 1456 (0x5b0), region = 56  ;;  %v6189_v22 = vld [vmem:[%s11849_s2] ss:$0 sm:$0xff] (!%p6188_p6)  ;;  %v9379_v20 = vpack.c.bf16 (!%p6188_p6), %v5685_v13, %v5677_v25  ;;  %v9385_v37 = vpack.c.bf16 (!%p6188_p6), %v5624_v32, %v5616_v15  ;;  %v5644_v15 = vld [vmem:[%s11852_s5 + $0xf8] sm:$0xff] (!%p6188_p6) }
 0x3d3   : > { %v5617_v25 = vld [vmem:[%s11852_s5 + $0x20] sm:$0xff] (!%p6188_p6) }
 0x3d4   : > { %v5496_v29 = vadd.f32 %v5495_v24, %v5426_v23  ;;  %v5615_v24 = vld [vmem:[%s11852_s5 + $0x10] sm:$0xff] (!%p6188_p6)  ;;  %v9381_v23 = vpack.c.bf16 (!%p6188_p6), %v5702_v19, %v5694_v16  ;;  %9380 = vmatpush1.bf16.msra.mxu1 (!%p6188_p6), %v9379_v20  ;;  %9386 = vmatprep.subr.bf16.mxu0 (!%p6188_p6), %v9385_v37  ;;  %v5625_v13 = vld [vmem:[%s11852_s5 + $0x60] sm:$0xff] (!%p6188_p6)  ;;  %v5634_v19 = vld [vmem:[%s11852_s5 + $0xa8] sm:$0xff] (!%p6188_p6) }
 0x3d5   : > { %v9387_v7 = vpack.c.bf16 (!%p6188_p6), %v5623_v61, %v5615_v24  ;;  %v5627_v16 = vld [vmem:[%s11852_s5 + $0x70] sm:$0xff] (!%p6188_p6)  ;;  %v9411_v24 = vpack.c.bf16 (!%p6188_p6), %v5625_v13, %v5617_v25  ;;  %v5633_v61 = vld [vmem:[%s11852_s5 + $0xa0] sm:$0xff] (!%p6188_p6)  ;;  %v5650_v37 = vld [vmem:[%s11852_s5 + $0x128] sm:$0xff] (!%p6188_p6) }
 0x3d6   : > { %v5499_v30 = vadd.f32 %v5496_v29, %v295_v2  ;;  %v5693_v2 = vld [vmem:[%s11852_s5 + $0x280] sm:$0xff] (!%p6188_p6)  ;;  %9382 = vmatprep.subr.bf16.mxu1 (!%p6188_p6), %v9381_v23  ;;  %v9435_v20 = vpack.c.bf16 (!%p6188_p6), %v5627_v16, %v5619_v50  ;;  %v5699_v16 = vld [vmem:[%s11852_s5 + $0x2b0] sm:$0xff] (!%p6188_p6) }
 0x3d7   : > { %v5701_v29 = vld [vmem:[%s11852_s5 + $0x2c0] sm:$0xff] (!%p6188_p6) }
 0x3d8   : > { %5501 = vst.msk [vmem:[#allocation2] sm:$0x3] %vm5500_vm2, %v5499_v30  ;;  %v5632_v30 = vld [vmem:[%s11852_s5 + $0x98] sm:$0xff] (!%p6188_p6)  ;;  %v9383_v60 = vpack.c.bf16 (!%p6188_p6), %v5701_v29, %v5693_v2  ;;  %v5641_v23 = vld [vmem:[%s11852_s5 + $0xe0] sm:$0xff] (!%p6188_p6) }
 0x3d9   : > { %v9389_v27 = vpack.c.bf16 %v5640_v31, %v5632_v30  ;;  %v9415_v48 = vpack.c.bf16 %v5641_v23, %v5633_v61  ;;  %v5705_v50 = vld [vmem:[%s11852_s5 + $0x2e0] sm:$0xff]  ;;  %v5721_v61 = vsub.s32 0, %v9655_v1  ;;  %v5729_v23 = vsub.s32 2, %v9655_v1 }
 0x3da   : > { %9384 = vmatpush1.bf16.msra.mxu1 %v9383_v60  ;;  %v5652_v60 = vld [vmem:[%s11852_s5 + $0x138] sm:$0xff] }
 0x3db   : > { %6193 = vmatprep.subr.msk.mxu1 %vm5539_vm4, %v5710_v3  ;;  %v9425_v3 = vpack.c.bf16 %v5690_v59, %v5682_v35 }
 0x3de   : > { %6194 = vmatpush1.msk.msra.mxu1 %vm5539_vm4, %v5709_v39  ;;  %v5691_v39 = vld [vmem:[%s11852_s5 + $0x270] sm:$0xff] }
 0x3df   : > { %v5506_v21 = vld [vmem:[#allocation2] sm:$0x3]  ;;  %9410 = vmatprep.subr.bf16.mxu1 %v9409_v9  ;;  %v5700_v9 = vld [vmem:[%s11852_s5 + $0x2b8] sm:$0xff] }
 0x3e0   : > { %v5514_v33 = vadd.f32 %v6189_v22, %v5506_v21  ;;  %v5642_v21 = vld [vmem:[%s11852_s5 + $0xe8] sm:$0xff]  ;;  %v5636_v22 = vld [vmem:[%s11852_s5 + $0xb8] sm:$0xff]  ;;  %v9453_v13 = vpack.c.bf16 %v5708_v5, %v5700_v9 }
 0x3e1   : > { %v9413_v30 = vpack.c.bf16 %v5642_v21, %v5634_v19  ;;  %v9437_v31 = vpack.c.bf16 %v5644_v15, %v5636_v22  ;;  %v5707_v19 = vld [vmem:[%s11852_s5 + $0x2f0] sm:$0xff]  ;;  %v5714_v15 = vld [vmem:[%s11852_s5 + $0x328] sm:$0xf] }
 0x3e2   : > { %7877 = vmatmul.mubr.msk.f32.vlgmr.msra.gmra.mrb[0].mxu0 %vm5535_vm5, %v5514_v33  ;;  %v5643_v33 = vld [vmem:[%s11852_s5 + $0xf0] sm:$0xff]  ;;  %v9455_v22 = vpack.c.bf16 %v5707_v19, %v5699_v16 }
 0x3e3   : > { %9388 = vmatpush1.bf16.msra.mxu0 %v9387_v7  ;;  %5921 = vmatprep.mubr.f32.mxu0 %v9547_v40  ;;  %v5658_v7 = vld [vmem:[%s11852_s5 + $0x168] sm:$0xff]  ;;  %v9439_v26 = vpack.c.bf16 %v5643_v33, %v5635_v55 }
 0x3e4   : > { %9390 = vmatprep.subr.bf16.mxu0 %v9389_v27  ;;  %v5660_v27 = vld [vmem:[%s11852_s5 + $0x178] sm:$0xff] }
 0x3e7   : > { %9392 = vmatpush1.bf16.msra.mxu0 %v9391_v8  ;;  %v9417_v8 = vpack.c.bf16 %v5658_v7, %v5650_v37 }
 0x3e8   : > { %9394 = vmatprep.subr.bf16.mxu0 %v9393_v45  ;;  %v9441_v45 = vpack.c.bf16 %v5660_v27, %v5652_v60 }
 0x3eb   : > { %9396 = vmatpush1.bf16.msra.mxu0 %v9395_v18  ;;  %v5668_v18 = vld [vmem:[%s11852_s5 + $0x1b8] sm:$0xff] }
 0x3ec   : > { %9398 = vmatprep.subr.bf16.mxu0 %v9397_v51  ;;  %v5676_v51 = vld [vmem:[%s11852_s5 + $0x1f8] sm:$0xff] }
 0x3ef   : > { %9400 = vmatpush1.bf16.msra.mxu0 %v9399_v56  ;;  %v9421_v56 = vpack.c.bf16 %v5674_v36, %v5666_v42 }
 0x3f0   : > { %9402 = vmatprep.subr.bf16.mxu0 %v9401_v4  ;;  %v9445_v4 = vpack.c.bf16 %v5676_v51, %v5668_v18  ;;  %v5737_v18 = vsub.s32 4, %v9655_v1  ;;  %v5745_v51 = vsub.s32 6, %v9655_v1 }
 0x3f3   : > { %9404 = vmatpush1.bf16.msra.mxu0 %v9403_v62  ;;  %v5692_v62 = vld [vmem:[%s11852_s5 + $0x278] sm:$0xff] }
 0x3f4   : > { %9406 = vmatprep.subr.bf16.mxu0 %v9405_v49  ;;  %v9423_v49 = vpack.c.bf16 %v5673_v52, %v5665_v54 }
 0x3f7   : > { %9408 = vmatpush1.bf16.msra.mxu0 %v9407_v0  ;;  %v5689_v0 = vld [vmem:[%s11852_s5 + $0x260] sm:$0xff] }
 0x3f8   : > { %6196 = vmatprep.subr.msk.mxu0 %vm5539_vm4, %v5712_v12  ;;  %v9449_v12 = vpack.c.bf16 %v5692_v62, %v5684_v28  ;;  %v9427_v17 = vpack.c.bf16 %v5689_v0, %v5681_v58 }
 0x3fb   : > { %6197 = vmatpush1.msk.msra.mxu0 %vm5539_vm4, %v5711_v6  ;;  %v5698_v6 = vld [vmem:[%s11852_s5 + $0x2a8] sm:$0xff] }
 0x3fc   : > { %9434 = vmatprep.subr.bf16.mxu0 %v9433_v10  ;;  %v9451_v10 = vpack.c.bf16 %v5691_v39, %v5683_v63  ;;  %v9429_v25 = vpack.c.bf16 %v5706_v41, %v5698_v6 }
 0x4b5   : > { %v5609_v32 = vpop.f32.mrb[0].mxu0 }
 0x4b6   : > { %v11676_v2 = vadd.f32 %v6190_v11, %v5609_v32  ;;  %v7878_v29 = vpop.f32.mrb[1].mxu0  ;;  %v5697_v11 = vld [vmem:[%s11852_s5 + $0x2a0] sm:$0xff]  ;;  %v5716_v32 = vld [vmem:[%s11852_s5 + $0x338] sm:$0xf] }
 0x4b7   : > { %v9431_v21 = vpack.c.bf16 %v5705_v50, %v5697_v11  ;;  %v5717_v29 = vld [vmem:[%s11853_s6] sm:$0xff] }
 0x4b8   : > { %6195 = vmatmul.mubr.msk.f32.vlgmr.msra.gmra.mrb[0].mxu1 %vm5535_vm5, %v11676_v2  ;;  %6198 = vmatmul.mubr.msk.f32.vlgmr.msra.gmra.mrb[2].mxu0 %vm5535_vm5, %v11676_v2  ;;  %v5722_v55 = vrot.slane %v5717_v29, %v5721_v61  ;;  %v5730_v33 = vrot.slane %v5717_v29, %v5729_v23  ;;  %v5738_v54 = vrot.slane %v5717_v29, %v5737_v18 }
 0x4b9   : > { %9412 = vmatpush1.bf16.msra.mxu1 %v9411_v24  ;;  %9436 = vmatpush1.bf16.msra.mxu0 %v9435_v20  ;;  %v5713_v24 = vld [vmem:[%s11852_s5 + $0x320] sm:$0xf]  ;;  %v5715_v20 = vld [vmem:[%s11852_s5 + $0x330] sm:$0xf]  ;;  %v5746_v52 = vrot.slane %v5717_v29, %v5745_v51 }
 0x4ba   : > { %9414 = vmatprep.subr.bf16.mxu1 %v9413_v30  ;;  %9438 = vmatprep.subr.bf16.mxu0 %v9437_v31  ;;  %v5725_v30 = vsub.s32 1, %v9655_v1  ;;  %v5733_v31 = vsub.s32 3, %v9655_v1 }
 0x4bb   : > { %5992 = vmatprep.mubr.f32.mxu1 %v9547_v40  ;;  %6063 = vmatprep.mubr.f32.mxu0 %v9547_v40  ;;  %v5667_v40 = vld [vmem:[%s11852_s5 + $0x1b0] sm:$0xff] }
 0x4bc   : > { %v9447_v43 = vpack.c.bf16 %v5675_v57, %v5667_v40  ;;  %v5726_v37 = vrot.slane %v5717_v29, %v5725_v30  ;;  %v5734_v7 = vrot.slane %v5717_v29, %v5733_v31 }
 0x4bd   : > { %9416 = vmatpush1.bf16.msra.mxu1 %v9415_v48  ;;  %9440 = vmatpush1.bf16.msra.mxu0 %v9439_v26 }
 0x4be   : > { %9418 = vmatprep.subr.bf16.mxu1 %v9417_v8  ;;  %9442 = vmatprep.subr.bf16.mxu0 %v9441_v45 }
 0x4c1   : > { %9420 = vmatpush1.bf16.msra.mxu1 %v9419_v38  ;;  %9444 = vmatpush1.bf16.msra.mxu0 %v9443_v53  ;;  %v5741_v38 = vsub.s32 5, %v9655_v1  ;;  %v5749_v53 = vsub.s32 7, %v9655_v1 }
 0x4c2   : > { %9422 = vmatprep.subr.bf16.mxu1 %v9421_v56  ;;  %9446 = vmatprep.subr.bf16.mxu0 %v9445_v4 }
 0x4c3   : > { %v5742_v56 = vrot.slane %v5717_v29, %v5741_v38  ;;  %v5750_v4 = vrot.slane %v5717_v29, %v5749_v53 }
 0x4c5   : > { %9424 = vmatpush1.bf16.msra.mxu1 %v9423_v49  ;;  %9448 = vmatpush1.bf16.msra.mxu0 %v9447_v43 }
 0x4c6   : > { %9426 = vmatprep.subr.bf16.mxu1 %v9425_v3  ;;  %9450 = vmatprep.subr.bf16.mxu0 %v9449_v12 }
 0x4c9   : > { %9428 = vmatpush1.bf16.msra.mxu1 %v9427_v17  ;;  %9452 = vmatpush1.bf16.msra.mxu0 %v9451_v10 }
 0x4ca   : > { %9430 = vmatprep.subr.bf16.mxu1 %v9429_v25  ;;  %9454 = vmatprep.subr.bf16.mxu0 %v9453_v13 }
 0x4cd   : > { %9432 = vmatpush1.bf16.msra.mxu1 %v9431_v21  ;;  %9456 = vmatpush1.bf16.msra.mxu0 %v9455_v22 }
 0x4ce   : > { %6199 = vmatprep.subr.msk.mxu1 %vm5539_vm4, %v5714_v15  ;;  %6202 = vmatprep.subr.msk.mxu0 %vm5539_vm4, %v5716_v32 }
 0x4d1   : > { %6200 = vmatpush1.msk.msra.mxu1 %vm5539_vm4, %v5713_v24  ;;  %6203 = vmatpush1.msk.msra.mxu0 %vm5539_vm4, %v5715_v20 }
 0x4d2   : > { %6201 = vmatmul.mubr.msk.f32.vlgmr.msra.gmra.mrb[2].mxu1 %vm5535_vm5, %v11676_v2  ;;  %6204 = vmatmul.mubr.msk.f32.vlgmr.msra.gmra.mrb[4].mxu0 %vm5535_vm5, %v11676_v2 }
 0x58b   : > { %v5852_v60 = vpop.f32.mrb[0].mxu1  ;;  %v5923_v27 = vpop.f32.mrb[2].mxu0 }
 0x58c   : > { %v5853_v48 = vadd.f32 %v5852_v60, %v5722_v55  ;;  %v5924_v2 = vadd.f32 %v5923_v27, %v5730_v33  ;;  %v5854_v26 = vpop.f32.mrb[1].mxu1  ;;  %v5925_v46 = vpop.f32.mrb[3].mxu0 }
 0x58d   : > { %v5855_v44 = vadd.f32 %v5854_v26, %v5726_v37  ;;  %v5926_v8 = vadd.f32 %v5925_v46, %v5734_v7 }
 0x58f   : > { %v6078_v45 = vcombine.low %v5853_v48, %v5855_v44  ;;  %v6079_v34 = vcombine.low %v5924_v2, %v5926_v8 }
 0x591   : > { %v6086_v47 = vrot.slane %v6078_v45, %v9666_v14  ;;  %v6093_v42 = vrot.slane %v6079_v34, %v9666_v14 }
 0x593   : > { %v6094_v36 = vcombine.low %v6086_v47, %v6093_v42 }
 0x595   : > { %6114 = vst [vmem:[#allocation3] sm:$0xff] %v6094_v36 }
 0x5a5   : > { %v5994_v40 = vpop.f32.mrb[2].mxu1  ;;  %v6065_v57 = vpop.f32.mrb[4].mxu0 }
 0x5a6   : > { %v5995_v35 = vadd.f32 %v5994_v40, %v5738_v54  ;;  %v6066_v59 = vadd.f32 %v6065_v57, %v5746_v52  ;;  %v5996_v28 = vpop.f32.mrb[3].mxu1  ;;  %v6067_v62 = vpop.f32.mrb[5].mxu0 }
 0x5a7   : > { %v5997_v49 = vadd.f32 %v5996_v28, %v5742_v56  ;;  %v6068_v43 = vadd.f32 %v6067_v62, %v5750_v4 }
 0x5a9   : > { %v6095_v58 = vcombine.low %v5995_v35, %v5997_v49  ;;  %v6096_v0 = vcombine.low %v6066_v59, %v6068_v43 }
 0x5ab   : > { %v6103_v1 = vrot.slane %v6095_v58, %v9666_v14  ;;  %v6110_v3 = vrot.slane %v6096_v0, %v9666_v14 }
 0x5ad   : > { %v6111_v12 = vcombine.low %v6103_v1, %v6110_v3 }
 0x5af   : > { %6122 = vst.msk [vmem:[#allocation3 + $0x8] sm:$0xff] %vm6121_vm12, %v6111_v12 }
 0x5b0 PF: > { %p9461_p7 = scmp.eq.s32.totalorder %s9596_s25, 1  ;;  %s9549_s22 = smov [#allocation3]  }
 0x5b1   : > { %s6130_s23 = sshll.u32 %s9549_s22, 4  ;;  %s6131_s23 = int_to_ptr.vmem [resolvable:$true] %s6130_s23 }
 0x5b2   : > { %s9503_s26 = scalar_lea.vmem %s6131_s23, 256  ;;  %p9510_p11 = scmp.lt.s32.totalorder %s6131_s23, %s6131_s23 }
 0x5b3   : > { %p9504_p8 = scmp.ne.s32.totalorder %s6131_s23, %s9503_s26  ;;  %p9511_p12 = scmp.lt.s32.totalorder %s9503_s26, %s9503_s26 }
 0x5b5   : > { %p9505_p9 = pnand %p9504_p8, %p9461_p7  ;;  %p9512_p13 = por %p9511_p12, %p9510_p11 }
 0x5b7   : > { %p9506_p10 = pneg %p9505_p9 }
 0x5b9   : > { %p9513_p0 = pnand %p9512_p13, %p9506_p10 }
 0x5bb   : > { %9516 = shalt.err (!%p9513_p0)
}
 0x5bc   : > { %s9517_s29 = scalar_lea.hbm %s11854_s7, 256 }
 0x5bd   : > { %p9518_p1 = scmp.ne.s32.totalorder %s11854_s7, %s9517_s29  ;;  %p9523_p4 = scmp.lt.u32.totalorder %s9517_s29, %s11854_s7 }
 0x5bf   : > { %p9519_p2 = pnand %p9518_p1, %p9461_p7 }
 0x5c1   : > { %p9520_p3 = pneg %p9519_p2 }
 0x5c3   : > { %p9525_p5 = pnand %p9523_p4, %p9520_p3 }
 0x5c5   : > { %9528 = shalt.err (!%p9525_p5)
}
 0x5c6   : > { %9458 = dma.vmem_to_hbm [thread:$0]  (%p9461_p7), %s6131_s23, 256, %s11854_s7, [#allocation4]  }
 0x5c7   : > { %9534 = dma.done.wait (%p9461_p7), [#allocation4], 256  }
 0x5c8   : > { %9536 = vsyncadd (%p9461_p7), [#allocation4], 4294967040 }
 0x5c9 PF: > { %s18_s24 = sadd.s32 1, %s9539_s24  }
 0x5ca   : > { %p15_p6 = scmp.ge.s32.totalorder %s18_s24, 4  }
 0x5cc   :  { %17 = sbr.rel (!%p15_p6) target bundleno = 1 (0x1), region = 86 }
 0x5d3   :  { %6143 = vsyncpa [#allocation4], 1 }
 0x5d4   :  { %6145 = vsyncpa [#allocation4 + $0x1], 1 }

</bundles_post_ra>
